<compile_context>
chip_gen: v7x
topology: tpu7x:2x2x1
jax: 0.10.0
libtpu: 0.0.40
codegen_flags: <defaults>
</compile_context>

<pallas_src>
import jax
import jax.numpy as jnp
from jax.experimental import pallas as pl
from jax.experimental.pallas import tpu as pltpu


BN_EPS = 1e-5


def fused_add_relu_conv1x1_bn_kernel(x1_ref, x2_ref, w_ref, gamma_ref, beta_ref,
                                     o_ref, z_ref):
    # Compute z = relu(x1 + x2) once per core (first inner grid step) into a
    # persistent VMEM scratch; every Cout block on this core reuses it.
    @pl.when(pl.program_id(1) == 0)
    def _():
        z_ref[...] = jnp.maximum(x1_ref[...] + x2_ref[...], 0.0).astype(z_ref.dtype)

    # 1x1 conv == MXU matmul: W_block [tc, Cin] (bf16) @ z [Cin, M] (bf16),
    # accumulated in f32.
    y = jnp.dot(w_ref[...], z_ref[...], preferred_element_type=jnp.float32)

    # BatchNorm2d (training mode): biased batch statistics per output channel
    # (per row), reduced over the M = N*H*W lane axis.  Affine folded into a
    # per-row scale/bias so the [tc, M] tensor only gets 2 elementwise passes.
    mu = jnp.mean(y, axis=-1, keepdims=True)                      # [tc, 1]
    var = jnp.mean((y - mu) * (y - mu), axis=-1, keepdims=True)   # [tc, 1]
    inv = jax.lax.rsqrt(var + BN_EPS)
    scale = inv * gamma_ref[...]                                  # [tc, 1]
    bias = beta_ref[...] - mu * scale                             # [tc, 1]
    o_ref[...] = (y * scale + bias).astype(o_ref.dtype)


def _num_tensorcores():
    """2 on v7x-class chips (2 TensorCores per chip), else 1."""
    try:
        kind = jax.devices()[0].device_kind.lower()
    except Exception:
        return 1
    return 2 if ("v7" in kind or "7x" in kind) else 1


def _pick_grid(cout, n_cores_hint):
    """Pick (n_cores, blocks_per_core) so the Cout block is sublane-aligned."""
    for n_cores in (n_cores_hint, 1):
        # blocks_per_core is a tuning knob (sweep {1, 2, 4}): more blocks give
        # W-block-DMA / matmul overlap, fewer avoid per-grid-step overhead.
        for bpc in (2, 1):
            total = n_cores * bpc
            if cout % total:
                continue
            tc = cout // total
            if tc == cout or tc % 8 == 0:
                return n_cores, bpc
    return 1, 1


def fused_forward(x109, x117, conv_w, gamma, beta):
    """x109, x117: [N, C, H, W]; conv_w: [Cout, Cin, 1, 1]; gamma, beta: [Cout]."""
    N, C, H, W = x109.shape
    Cout = conv_w.shape[0]
    M = N * H * W

    # Channels-on-sublanes layout [C, M]; zero-copy for N == 1 (the module's
    # case), transpose fallback for N > 1.
    if N == 1:
        a = x109.reshape(C, M)
        b = x117.reshape(C, M)
    else:
        a = jnp.transpose(x109, (1, 0, 2, 3)).reshape(C, M)
        b = jnp.transpose(x117, (1, 0, 2, 3)).reshape(C, M)

    # Weight [Cout, Cin, 1, 1] -> [Cout, Cin] and down-cast to bf16 (halves the
    # dominant HBM term; MXU still accumulates in f32).  In deployment this
    # cast is done once at parameter-load time, not per call.
    wmat = conv_w.reshape(Cout, C).astype(jnp.bfloat16)
    g = gamma.reshape(Cout, 1).astype(jnp.float32)
    bt = beta.reshape(Cout, 1).astype(jnp.float32)

    n_cores, bpc = _pick_grid(Cout, _num_tensorcores())
    tc = Cout // (n_cores * bpc)
    core_sem = pltpu.CORE_PARALLEL if n_cores > 1 else pltpu.PARALLEL

    out = pl.pallas_call(
        fused_add_relu_conv1x1_bn_kernel,
        out_shape=jax.ShapeDtypeStruct((Cout, M), jnp.float32),
        grid=(n_cores, bpc),
        in_specs=[
            pl.BlockSpec((C, M), lambda i, j: (0, 0)),             # x1 (resident)
            pl.BlockSpec((C, M), lambda i, j: (0, 0)),             # x2 (resident)
            pl.BlockSpec((tc, C), lambda i, j: (i * bpc + j, 0)),  # W rows
            pl.BlockSpec((tc, 1), lambda i, j: (i * bpc + j, 0)),  # gamma
            pl.BlockSpec((tc, 1), lambda i, j: (i * bpc + j, 0)),  # beta
        ],
        out_specs=pl.BlockSpec((tc, M), lambda i, j: (i * bpc + j, 0)),
        scratch_shapes=[pltpu.VMEM((C, M), jnp.bfloat16)],          # z scratch
        compiler_params=pltpu.CompilerParams(
            dimension_semantics=(core_sem, pltpu.ARBITRARY)),
    )(a, b, wmat, g, bt)

    # [Cout, M] -> NCHW (zero-copy for N == 1).
    if N == 1:
        return out.reshape(1, Cout, H, W)
    return jnp.transpose(out.reshape(Cout, N, H, W), (1, 0, 2, 3))


def reference_forward(x109, x117, conv_w, gamma, beta):
    """Pure-JAX f32 reference mirroring the PyTorch module (train-mode BN)."""
    z = jnp.maximum(x109 + x117, 0.0)
    y = jnp.einsum("nchw,oc->nohw", z, conv_w[:, :, 0, 0])
    mu = jnp.mean(y, axis=(0, 2, 3), keepdims=True)
    var = jnp.mean((y - mu) ** 2, axis=(0, 2, 3), keepdims=True)
    yhat = (y - mu) * jax.lax.rsqrt(var + BN_EPS)
    return yhat * gamma[None, :, None, None] + beta[None, :, None, None]


if __name__ == "__main__":
    # Shapes implied by the module: x109, x117 ~ [1, 720, 14, 14]; conv 720->720 1x1.
    N, C, H, W = 1, 720, 14, 14
    Cout = 720

    key = jax.random.PRNGKey(0)
    k1, k2, k3, k4, k5 = jax.random.split(key, 5)
    x109 = jax.random.normal(k1, (N, C, H, W), dtype=jnp.float32)
    x117 = jax.random.normal(k2, (N, C, H, W), dtype=jnp.float32)
    conv_w = jax.random.normal(k3, (Cout, C, 1, 1), dtype=jnp.float32) * 0.05
    gamma = 1.0 + 0.1 * jax.random.normal(k4, (Cout,), dtype=jnp.float32)
    beta = 0.1 * jax.random.normal(k5, (Cout,), dtype=jnp.float32)

    out = fused_forward(x109, x117, conv_w, gamma, beta)
    out = jax.block_until_ready(out)

    ref = reference_forward(x109, x117, conv_w, gamma, beta)
    assert out.shape == (N, Cout, H, W), out.shape
    # Tolerance sized for the bf16 weight/activation quantization in the K=720
    # matmul (expected max abs error ~1e-2 on the BN-normalized output).
    assert jnp.allclose(out, ref, atol=3e-2, rtol=1e-2), "mismatch vs reference"

    print("KERNEL_OK")
</pallas_src>

<mosaic_0001>
module attributes {stable_mosaic.version = 11 : i64} {
  func.func @fused_add_relu_conv1x1_bn_kernel(%arg0: i32, %arg1: i32, %arg2: memref<720x196xf32, #tpu.memory_space<vmem>>, %arg3: memref<720x196xf32, #tpu.memory_space<vmem>>, %arg4: memref<360x720xbf16, #tpu.memory_space<vmem>>, %arg5: memref<360x1xf32, #tpu.memory_space<vmem>>, %arg6: memref<360x1xf32, #tpu.memory_space<vmem>>, %arg7: memref<360x196xf32, #tpu.memory_space<vmem>>, %arg8: memref<720x196xbf16, #tpu.memory_space<vmem>>) attributes {dimension_semantics = [#tpu.dimension_semantics<parallel>, #tpu.dimension_semantics<arbitrary>], iteration_bounds = array<i64: 1, 2>, scalar_prefetch = 0 : i64, scratch_operands = 1 : i64, tpu.core_type = #tpu.core_type<tc>, window_params = [{pipeline_mode = #tpu.pipeline_mode<synchronous>, transform_indices = @transform_0, window_bounds = array<i64: 720, 196>}, {pipeline_mode = #tpu.pipeline_mode<synchronous>, transform_indices = @transform_1, window_bounds = array<i64: 720, 196>}, {transform_indices = @transform_2, window_bounds = array<i64: 360, 720>}, {transform_indices = @transform_3, window_bounds = array<i64: 360, 1>}, {transform_indices = @transform_4, window_bounds = array<i64: 360, 1>}, {transform_indices = @transform_5, window_bounds = array<i64: 360, 196>}]} {
    %c0_i32 = arith.constant 0 : i32
    %0 = arith.cmpi eq, %arg1, %c0_i32 : i32
    %1 = arith.extui %0 : i1 to i32
    %c0_i32_0 = arith.constant 0 : i32
    %2 = arith.cmpi ne, %1, %c0_i32_0 : i32
    scf.if %2 {
      %c0_15 = arith.constant 0 : index
      %c0_16 = arith.constant 0 : index
      %32 = vector.load %arg2[%c0_15, %c0_16] : memref<720x196xf32, #tpu.memory_space<vmem>>, vector<720x196xf32>
      %c0_17 = arith.constant 0 : index
      %c0_18 = arith.constant 0 : index
      %33 = vector.load %arg3[%c0_17, %c0_18] : memref<720x196xf32, #tpu.memory_space<vmem>>, vector<720x196xf32>
      %34 = arith.addf %32, %33 : vector<720x196xf32>
      %cst_19 = arith.constant 0.000000e+00 : f32
      %35 = vector.broadcast %cst_19 : f32 to vector<720x196xf32>
      %36 = arith.maximumf %34, %35 : vector<720x196xf32>
      %37 = arith.truncf %36 : vector<720x196xf32> to vector<720x196xbf16>
      %c0_20 = arith.constant 0 : index
      %c0_21 = arith.constant 0 : index
      %38 = vector.load %arg8[%c0_20, %c0_21] : memref<720x196xbf16, #tpu.memory_space<vmem>>, vector<720x196xbf16>
      tpu.vector_store %arg8[%c0_20, %c0_21], %37 {strides = array<i32>} : memref<720x196xbf16, #tpu.memory_space<vmem>>, vector<720x196xbf16>,
    } else {
    }
    %c0 = arith.constant 0 : index
    %c0_1 = arith.constant 0 : index
    %3 = vector.load %arg4[%c0, %c0_1] : memref<360x720xbf16, #tpu.memory_space<vmem>>, vector<360x720xbf16>
    %c0_2 = arith.constant 0 : index
    %c0_3 = arith.constant 0 : index
    %4 = vector.load %arg8[%c0_2, %c0_3] : memref<720x196xbf16, #tpu.memory_space<vmem>>, vector<720x196xbf16>
    %cst = arith.constant dense<0.000000e+00> : vector<360x196xf32>
    %5 = tpu.matmul %3, %4, %cst {dimension_numbers = #tpu.dot_dimension_numbers<[1], [0], [0], [1], [0, 0, 1, 1], [], []>} : vector<360x720xbf16>, vector<720x196xbf16>, vector<360x196xf32> -> vector<360x196xf32>
    %cst_4 = arith.constant dense<0.000000e+00> : vector<360xf32>
    %6 = vector.multi_reduction <add>, %5, %cst_4 [1] : vector<360x196xf32> to vector<360xf32>
    %7 = vector.shape_cast %6 : vector<360xf32> to vector<360x1xf32>
    %cst_5 = arith.constant 1.960000e+02 : f32
    %8 = vector.broadcast %cst_5 : f32 to vector<360x1xf32>
    %9 = arith.divf %7, %8 : vector<360x1xf32>
    %10 = vector.broadcast %9 : vector<360x1xf32> to vector<360x196xf32>
    %11 = arith.subf %5, %10 : vector<360x196xf32>
    %12 = vector.broadcast %9 : vector<360x1xf32> to vector<360x196xf32>
    %13 = arith.subf %5, %12 : vector<360x196xf32>
    %14 = arith.mulf %11, %13 : vector<360x196xf32>
    %cst_6 = arith.constant dense<0.000000e+00> : vector<360xf32>
    %15 = vector.multi_reduction <add>, %14, %cst_6 [1] : vector<360x196xf32> to vector<360xf32>
    %16 = vector.shape_cast %15 : vector<360xf32> to vector<360x1xf32>
    %cst_7 = arith.constant 1.960000e+02 : f32
    %17 = vector.broadcast %cst_7 : f32 to vector<360x1xf32>
    %18 = arith.divf %16, %17 : vector<360x1xf32>
    %cst_8 = arith.constant 9.99999974E-6 : f32
    %19 = vector.broadcast %cst_8 : f32 to vector<360x1xf32>
    %20 = arith.addf %18, %19 : vector<360x1xf32>
    %21 = math.rsqrt %20 : vector<360x1xf32>
    %c0_9 = arith.constant 0 : index
    %c0_10 = arith.constant 0 : index
    %22 = vector.load %arg5[%c0_9, %c0_10] : memref<360x1xf32, #tpu.memory_space<vmem>>, vector<360x1xf32>
    %23 = arith.mulf %21, %22 : vector<360x1xf32>
    %c0_11 = arith.constant 0 : index
    %c0_12 = arith.constant 0 : index
    %24 = vector.load %arg6[%c0_11, %c0_12] : memref<360x1xf32, #tpu.memory_space<vmem>>, vector<360x1xf32>
    %25 = arith.mulf %9, %23 : vector<360x1xf32>
    %26 = arith.subf %24, %25 : vector<360x1xf32>
    %27 = vector.broadcast %23 : vector<360x1xf32> to vector<360x196xf32>
    %28 = arith.mulf %5, %27 : vector<360x196xf32>
    %29 = vector.broadcast %26 : vector<360x1xf32> to vector<360x196xf32>
    %30 = arith.addf %28, %29 : vector<360x196xf32>
    %c0_13 = arith.constant 0 : index
    %c0_14 = arith.constant 0 : index
    %31 = vector.load %arg7[%c0_13, %c0_14] : memref<360x196xf32, #tpu.memory_space<vmem>>, vector<360x196xf32>
    tpu.vector_store %arg7[%c0_13, %c0_14], %30 {strides = array<i32>} : memref<360x196xf32, #tpu.memory_space<vmem>>, vector<360x196xf32>,
    return
  }
  func.func @transform_0(%arg0: i32, %arg1: i32) -> (i32, i32) {
    %c0_i32 = arith.constant 0 : i32
    %c0_i32_0 = arith.constant 0 : i32
    %c0_i32_1 = arith.constant 0 : i32
    return %c0_i32, %c0_i32_0 : i32, i32
  }
  func.func @transform_1(%arg0: i32, %arg1: i32) -> (i32, i32) {
    %c0_i32 = arith.constant 0 : i32
    %c0_i32_0 = arith.constant 0 : i32
    %c0_i32_1 = arith.constant 0 : i32
    return %c0_i32, %c0_i32_0 : i32, i32
  }
  func.func @transform_2(%arg0: i32, %arg1: i32) -> (i32, i32) {
    %c2_i32 = arith.constant 2 : i32
    %0 = arith.muli %arg0, %c2_i32 : i32
    %1 = arith.addi %0, %arg1 : i32
    %c0_i32 = arith.constant 0 : i32
    %c0_i32_0 = arith.constant 0 : i32
    return %1, %c0_i32 : i32, i32
  }
  func.func @transform_3(%arg0: i32, %arg1: i32) -> (i32, i32) {
    %c2_i32 = arith.constant 2 : i32
    %0 = arith.muli %arg0, %c2_i32 : i32
    %1 = arith.addi %0, %arg1 : i32
    %c0_i32 = arith.constant 0 : i32
    %c0_i32_0 = arith.constant 0 : i32
    return %1, %c0_i32 : i32, i32
  }
  func.func @transform_4(%arg0: i32, %arg1: i32) -> (i32, i32) {
    %c2_i32 = arith.constant 2 : i32
    %0 = arith.muli %arg0, %c2_i32 : i32
    %1 = arith.addi %0, %arg1 : i32
    %c0_i32 = arith.constant 0 : i32
    %c0_i32_0 = arith.constant 0 : i32
    return %1, %c0_i32 : i32, i32
  }
  func.func @transform_5(%arg0: i32, %arg1: i32) -> (i32, i32) {
    %c2_i32 = arith.constant 2 : i32
    %0 = arith.muli %arg0, %c2_i32 : i32
    %1 = arith.addi %0, %arg1 : i32
    %c0_i32 = arith.constant 0 : i32
    %c0_i32_0 = arith.constant 0 : i32
    return %1, %c0_i32 : i32, i32
  }
}

</mosaic_0001>

<bundles_post_ra>
// kernel: tpu_custom_call.1
= control target key start
LH: loop header
LB: loop body
LE: loop exit
PB: predicated region body
PF: predicated region fallthrough
CT: control target
= control target key end

     0   :  { %s5513_s18 = smov 0   ;;  %s5515_s19 = smov 0   ;;  %s8350_s0 = inlined_call_operand.vmem [shape: f32[720,196], index: 0, kind: input, shape index: {}]   ;;  %s8351_s1 = inlined_call_operand.vmem [shape: f32[720,196], index: 1, kind: input, shape index: {}]   ;;  %s8352_s2 = inlined_call_operand.vmem [shape: bf16[720,720], index: 2, kind: input, shape index: {}]   ;;  %s8353_s3 = inlined_call_operand.vmem [shape: f32[720,1], index: 3, kind: input, shape index: {}]   ;;  %s8354_s4 = inlined_call_operand.vmem [shape: f32[720,1], index: 4, kind: input, shape index: {}]   ;;  %s8355_s5 = inlined_call_operand.vmem [shape: f32[720,196], index: 5, kind: output, shape index: {}]  }
   0x1   :  { %s5517_s20 = smov 0  }
   0x2 LB: > { %s24_s21 = sadd.s32 1, %s5476_s19  ;;  %p4751_p0 = scmp.ge.s32.totalorder %s5480_s20, 1  ;;  %s5480_s20 = sphi %s5517_s20, %s15_s20   ;;  %s5476_s19 = sphi %s5515_s19, %s8739_s19   ;;  %s5472_s18 = sphi %s5513_s18, %s8738_s18  }
   0x3   : > { %p25_p1 = scmp.ge.s32.totalorder %s24_s21, 2  ;;  %p251_p2 = scmp.lt.s32.totalorder %s5480_s20, 3 }
   0x5   : > { %s8741_s21 = smov (%p25_p1, %s24_s21), 0  ;;  %p252_p3 = pnand %p4751_p0, %p251_p2 }
   0x7   : > { %255 = sbr.rel (%p252_p3) target bundleno = 1270 (0x4f6), region = 40 }
   0xe   : > { %s301_s22 = smul.u32 45, %s5472_s18  ;;  %p4757_p5 = scmp.ne.s32.totalorder %s5472_s18, 0 }
   0xf   : > { %v346_v0 = vld [vmem:[%s8350_s0] sm:$0xff] (!%p4757_p5)  ;;  %v348_v1 = vld [vmem:[%s8350_s0 + $0x10] sm:$0xff] (!%p4757_p5)  ;;  %v347_v5 = vld [vmem:[%s8350_s0 + $0x8] sm:$0xff] (!%p4757_p5)  ;;  %vm1157_vm0 = vcmask (!%p4757_p5), 556032  }
  0x10   : > { %p302_p4 = scmp.lt.s32.totalorder %s301_s22, 89  ;;  %345 = sbr.rel (%p4757_p5) target bundleno = 143 (0x8f), region = 44  ;;  %v526_v2 = vld [vmem:[%s8351_s1] sm:$0xff] (!%p4757_p5)  ;;  %v528_v3 = vld [vmem:[%s8351_s1 + $0x10] sm:$0xff] (!%p4757_p5)  ;;  %v349_v6 = vld [vmem:[%s8350_s0 + $0x18] sm:$0xff] (!%p4757_p5) }
  0x11   : > { %v706_v4 = vadd.f32 (!%p4757_p5), %v526_v2, %v346_v0  ;;  %v708_v7 = vadd.f32 (!%p4757_p5), %v528_v3, %v348_v1  ;;  %v527_v8 = vld [vmem:[%s8351_s1 + $0x8] sm:$0xff] (!%p4757_p5)  ;;  %v529_v9 = vld [vmem:[%s8351_s1 + $0x18] sm:$0xff] (!%p4757_p5)  ;;  %v350_v10 = vld [vmem:[%s8350_s0 + $0x20] sm:$0xff] (!%p4757_p5) }
  0x12   : > { %s8743_s22 = smov (!%p302_p4, %s301_s22), 89  ;;  %v707_v12 = vadd.f32 (!%p4757_p5), %v527_v8, %v347_v5  ;;  %v709_v13 = vadd.f32 (!%p4757_p5), %v529_v9, %v349_v6  ;;  %v352_v14 = vld [vmem:[%s8350_s0 + $0x30] sm:$0xff] (!%p4757_p5)  ;;  %v530_v15 = vld [vmem:[%s8351_s1 + $0x20] sm:$0xff] (!%p4757_p5)  ;;  %v351_v20 = vld [vmem:[%s8350_s0 + $0x28] sm:$0xff] (!%p4757_p5) }
  0x13   : > { %s5136_s23 = smul.u32 24, %s8743_s22  ;;  %s4753_s24 = sshll.u32 %s8743_s22, 3  ;;  %v886_v11 = vmax.f32 (!%p4757_p5), %v706_v4, 0.0  ;;  %v532_v16 = vld [vmem:[%s8351_s1 + $0x30] sm:$0xff] (!%p4757_p5)  ;;  %v888_v17 = vmax.f32 (!%p4757_p5), %v708_v7, 0.0  ;;  %v710_v18 = vadd.f32 (!%p4757_p5), %v530_v15, %v350_v10  ;;  %v353_v21 = vld [vmem:[%s8350_s0 + $0x38] sm:$0xff] (!%p4757_p5) }
  0x14   : > { %s5534_s27 = scalar_lea.vmem %s8353_s3, %s4753_s24  ;;  %s5539_s30 = scalar_lea.vmem %s8354_s4, %s4753_s24  ;;  %v712_v19 = vadd.f32 (!%p4757_p5), %v532_v16, %v352_v14  ;;  %v531_v22 = vld [vmem:[%s8351_s1 + $0x28] sm:$0xff] (!%p4757_p5)  ;;  %v887_v23 = vmax.f32 (!%p4757_p5), %v707_v12, 0.0  ;;  %v889_v24 = vmax.f32 (!%p4757_p5), %v709_v13, 0.0  ;;  %v533_v25 = vld [vmem:[%s8351_s1 + $0x38] sm:$0xff] (!%p4757_p5)  ;;  %v354_v27 = vld [vmem:[%s8350_s0 + $0x40] sm:$0xff] (!%p4757_p5) }
  0x15   : > { %s5544_s8 = scalar_lea.vmem %s8352_s2, %s5136_s23  ;;  %s4921_s9 = sshll.u32 %s8743_s22, 4  ;;  %v711_v26 = vadd.f32 (!%p4757_p5), %v531_v22, %v351_v20  ;;  %v356_v28 = vld [vmem:[%s8350_s0 + $0x50] sm:$0xff] (!%p4757_p5)  ;;  %v1066_v29 = vpack.c.bf16 (!%p4757_p5), %v888_v17, %v886_v11  ;;  %v890_v30 = vmax.f32 (!%p4757_p5), %v710_v18, 0.0  ;;  %v713_v32 = vadd.f32 (!%p4757_p5), %v533_v25, %v353_v21  ;;  %v534_v33 = vld [vmem:[%s8351_s1 + $0x40] sm:$0xff] (!%p4757_p5)  ;;  %v355_v35 = vld [vmem:[%s8350_s0 + $0x48] sm:$0xff] (!%p4757_p5) }
  0x16   : > { %s5549_s12 = scalar_lea.vmem %s8355_s5, %s4921_s9  ;;  %v892_v31 = vmax.f32 (!%p4757_p5), %v712_v19, 0.0  ;;  %v536_v34 = vld [vmem:[%s8351_s1 + $0x50] sm:$0xff] (!%p4757_p5)  ;;  %v1067_v36 = vpack.c.bf16 (!%p4757_p5), %v889_v24, %v887_v23  ;;  %v714_v38 = vadd.f32 (!%p4757_p5), %v534_v33, %v354_v27  ;;  %v357_v40 = vld [vmem:[%s8350_s0 + $0x58] sm:$0xff] (!%p4757_p5)  ;;  %v535_v41 = vld [vmem:[%s8351_s1 + $0x48] sm:$0xff] (!%p4757_p5) }
  0x17   : > { %v891_v37 = vmax.f32 %v711_v26, 0.0  ;;  %v716_v39 = vadd.f32 %v536_v34, %v356_v28  ;;  %v537_v42 = vld [vmem:[%s8351_s1 + $0x58] sm:$0xff]  ;;  %1156 = vst [vmem:[#allocation2] sm:$0xff] %v1066_v29  ;;  %v893_v44 = vmax.f32 %v713_v32, 0.0  ;;  %v715_v45 = vadd.f32 %v535_v41, %v355_v35  ;;  %v358_v47 = vld [vmem:[%s8350_s0 + $0x60] sm:$0xff]  ;;  %v360_v48 = vld [vmem:[%s8350_s0 + $0x70] sm:$0xff] }
  0x18   : > { %v1068_v43 = vpack.c.bf16 %v892_v31, %v890_v30  ;;  %v717_v46 = vadd.f32 %v537_v42, %v357_v40  ;;  %v538_v49 = vld [vmem:[%s8351_s1 + $0x60] sm:$0xff]  ;;  %1158 = vst.msk [vmem:[#allocation2 + $0x8] sm:$0xff] %vm1157_vm0, %v1067_v36  ;;  %v894_v50 = vmax.f32 %v714_v38, 0.0  ;;  %v540_v52 = vld [vmem:[%s8351_s1 + $0x70] sm:$0xff]  ;;  %v359_v54 = vld [vmem:[%s8350_s0 + $0x68] sm:$0xff] }
  0x19   : > { %v896_v51 = vmax.f32 %v716_v39, 0.0  ;;  %v718_v53 = vadd.f32 %v538_v49, %v358_v47  ;;  %v361_v55 = vld [vmem:[%s8350_s0 + $0x78] sm:$0xff]  ;;  %v1069_v56 = vpack.c.bf16 %v893_v44, %v891_v37  ;;  %v895_v57 = vmax.f32 %v715_v45, 0.0  ;;  %v539_v60 = vld [vmem:[%s8351_s1 + $0x68] sm:$0xff]  ;;  %v362_v62 = vld [vmem:[%s8350_s0 + $0x80] sm:$0xff] }
  0x1a   : > { %1159 = vst [vmem:[#allocation2 + $0x10] sm:$0xff] %v1068_v43  ;;  %v897_v58 = vmax.f32 %v717_v46, 0.0  ;;  %v720_v59 = vadd.f32 %v540_v52, %v360_v48  ;;  %v541_v61 = vld [vmem:[%s8351_s1 + $0x78] sm:$0xff]  ;;  %v719_v1 = vadd.f32 %v539_v60, %v359_v54  ;;  %v364_v3 = vld [vmem:[%s8350_s0 + $0x90] sm:$0xff]  ;;  %v542_v4 = vld [vmem:[%s8351_s1 + $0x80] sm:$0xff] }
  0x1b   : > { %v1070_v63 = vpack.c.bf16 %v896_v51, %v894_v50  ;;  %v898_v0 = vmax.f32 %v718_v53, 0.0  ;;  %v721_v2 = vadd.f32 %v541_v61, %v361_v55  ;;  %v544_v5 = vld [vmem:[%s8351_s1 + $0x90] sm:$0xff]  ;;  %1160 = vst.msk [vmem:[#allocation2 + $0x18] sm:$0xff] %vm1157_vm0, %v1069_v56  ;;  %v722_v8 = vadd.f32 %v542_v4, %v362_v62  ;;  %v363_v10 = vld [vmem:[%s8350_s0 + $0x88] sm:$0xff]  ;;  %v365_v11 = vld [vmem:[%s8350_s0 + $0x98] sm:$0xff] }
  0x1c   : > { %v1071_v6 = vpack.c.bf16 %v897_v58, %v895_v57  ;;  %v900_v7 = vmax.f32 %v720_v59, 0.0  ;;  %v724_v9 = vadd.f32 %v544_v5, %v364_v3  ;;  %v543_v12 = vld [vmem:[%s8351_s1 + $0x88] sm:$0xff]  ;;  %v899_v13 = vmax.f32 %v719_v1, 0.0  ;;  %v545_v15 = vld [vmem:[%s8351_s1 + $0x98] sm:$0xff]  ;;  %v366_v17 = vld [vmem:[%s8350_s0 + $0xa0] sm:$0xff] }
  0x1d   : > { %1161 = vst [vmem:[#allocation2 + $0x20] sm:$0xff] %v1070_v63  ;;  %v901_v14 = vmax.f32 %v721_v2, 0.0  ;;  %v723_v16 = vadd.f32 %v543_v12, %v363_v10  ;;  %v368_v18 = vld [vmem:[%s8350_s0 + $0xb0] sm:$0xff]  ;;  %v902_v20 = vmax.f32 %v722_v8, 0.0  ;;  %v725_v22 = vadd.f32 %v545_v15, %v365_v11  ;;  %v546_v23 = vld [vmem:[%s8351_s1 + $0xa0] sm:$0xff]  ;;  %v367_v25 = vld [vmem:[%s8350_s0 + $0xa8] sm:$0xff] }
  0x1e   : > { %1162 = vst.msk [vmem:[#allocation2 + $0x28] sm:$0xff] %vm1157_vm0, %v1071_v6  ;;  %v1072_v19 = vpack.c.bf16 %v900_v7, %v898_v0  ;;  %v904_v21 = vmax.f32 %v724_v9, 0.0  ;;  %v548_v24 = vld [vmem:[%s8351_s1 + $0xb0] sm:$0xff]  ;;  %v726_v28 = vadd.f32 %v546_v23, %v366_v17  ;;  %v369_v30 = vld [vmem:[%s8350_s0 + $0xb8] sm:$0xff]  ;;  %v547_v31 = vld [vmem:[%s8351_s1 + $0xa8] sm:$0xff] }
  0x1f   : > { %v1073_v26 = vpack.c.bf16 %v901_v14, %v899_v13  ;;  %v903_v27 = vmax.f32 %v723_v16, 0.0  ;;  %v728_v29 = vadd.f32 %v548_v24, %v368_v18  ;;  %v549_v32 = vld [vmem:[%s8351_s1 + $0xb8] sm:$0xff]  ;;  %v905_v34 = vmax.f32 %v725_v22, 0.0  ;;  %v370_v37 = vld [vmem:[%s8350_s0 + $0xc0] sm:$0xff]  ;;  %v372_v38 = vld [vmem:[%s8350_s0 + $0xd0] sm:$0xff] }
  0x20   : > { %1163 = vst [vmem:[#allocation2 + $0x30] sm:$0xff] %v1072_v19  ;;  %v1074_v33 = vpack.c.bf16 %v904_v21, %v902_v20  ;;  %v727_v35 = vadd.f32 %v547_v31, %v367_v25  ;;  %v729_v36 = vadd.f32 %v549_v32, %v369_v30  ;;  %v550_v39 = vld [vmem:[%s8351_s1 + $0xc0] sm:$0xff]  ;;  %v906_v40 = vmax.f32 %v726_v28, 0.0  ;;  %v552_v42 = vld [vmem:[%s8351_s1 + $0xd0] sm:$0xff]  ;;  %v371_v44 = vld [vmem:[%s8350_s0 + $0xc8] sm:$0xff] }
  0x21   : > { %1164 = vst.msk [vmem:[#allocation2 + $0x38] sm:$0xff] %vm1157_vm0, %v1073_v26  ;;  %v908_v41 = vmax.f32 %v728_v29, 0.0  ;;  %v730_v43 = vadd.f32 %v550_v39, %v370_v37  ;;  %v373_v45 = vld [vmem:[%s8350_s0 + $0xd8] sm:$0xff]  ;;  %v1075_v46 = vpack.c.bf16 %v905_v34, %v903_v27  ;;  %v732_v49 = vadd.f32 %v552_v42, %v372_v38  ;;  %v551_v50 = vld [vmem:[%s8351_s1 + $0xc8] sm:$0xff]  ;;  %v374_v52 = vld [vmem:[%s8350_s0 + $0xe0] sm:$0xff] }
  0x22   : > { %1165 = vst [vmem:[#allocation2 + $0x40] sm:$0xff] %v1074_v33  ;;  %v907_v47 = vmax.f32 %v727_v35, 0.0  ;;  %v909_v48 = vmax.f32 %v729_v36, 0.0  ;;  %v553_v51 = vld [vmem:[%s8351_s1 + $0xd8] sm:$0xff]  ;;  %v731_v55 = vadd.f32 %v551_v50, %v371_v44  ;;  %v376_v57 = vld [vmem:[%s8350_s0 + $0xf0] sm:$0xff]  ;;  %v554_v58 = vld [vmem:[%s8351_s1 + $0xe0] sm:$0xff] }
  0x23   : > { %v1076_v53 = vpack.c.bf16 %v908_v41, %v906_v40  ;;  %v910_v54 = vmax.f32 %v730_v43, 0.0  ;;  %v733_v56 = vadd.f32 %v553_v51, %v373_v45  ;;  %v556_v59 = vld [vmem:[%s8351_s1 + $0xf0] sm:$0xff]  ;;  %1166 = vst.msk [vmem:[#allocation2 + $0x48] sm:$0xff] %vm1157_vm0, %v1075_v46  ;;  %v912_v61 = vmax.f32 %v732_v49, 0.0  ;;  %v375_v0 = vld [vmem:[%s8350_s0 + $0xe8] sm:$0xff]  ;;  %v377_v1 = vld [vmem:[%s8350_s0 + $0xf8] sm:$0xff] }
  0x24   : > { %v1077_v60 = vpack.c.bf16 %v909_v48, %v907_v47  ;;  %v734_v62 = vadd.f32 %v554_v58, %v374_v52  ;;  %v736_v63 = vadd.f32 %v556_v59, %v376_v57  ;;  %v555_v2 = vld [vmem:[%s8351_s1 + $0xe8] sm:$0xff]  ;;  %v911_v3 = vmax.f32 %v731_v55, 0.0  ;;  %v557_v5 = vld [vmem:[%s8351_s1 + $0xf8] sm:$0xff]  ;;  %v378_v7 = vld [vmem:[%s8350_s0 + $0x100] sm:$0xff] }
  0x25   : > { %1167 = vst [vmem:[#allocation2 + $0x50] sm:$0xff] %v1076_v53  ;;  %v913_v4 = vmax.f32 %v733_v56, 0.0  ;;  %v735_v6 = vadd.f32 %v555_v2, %v375_v0  ;;  %v380_v8 = vld [vmem:[%s8350_s0 + $0x110] sm:$0xff]  ;;  %v1078_v9 = vpack.c.bf16 %v912_v61, %v910_v54  ;;  %v737_v12 = vadd.f32 %v557_v5, %v377_v1  ;;  %v558_v13 = vld [vmem:[%s8351_s1 + $0x100] sm:$0xff]  ;;  %v379_v15 = vld [vmem:[%s8350_s0 + $0x108] sm:$0xff] }
  0x26   : > { %1168 = vst.msk [vmem:[#allocation2 + $0x58] sm:$0xff] %vm1157_vm0, %v1077_v60  ;;  %v914_v10 = vmax.f32 %v734_v62, 0.0  ;;  %v916_v11 = vmax.f32 %v736_v63, 0.0  ;;  %v560_v14 = vld [vmem:[%s8351_s1 + $0x110] sm:$0xff]  ;;  %v738_v18 = vadd.f32 %v558_v13, %v378_v7  ;;  %v381_v20 = vld [vmem:[%s8350_s0 + $0x118] sm:$0xff]  ;;  %v559_v21 = vld [vmem:[%s8351_s1 + $0x108] sm:$0xff] }
  0x27   : > { %v1079_v16 = vpack.c.bf16 %v913_v4, %v911_v3  ;;  %v915_v17 = vmax.f32 %v735_v6, 0.0  ;;  %v740_v19 = vadd.f32 %v560_v14, %v380_v8  ;;  %v561_v22 = vld [vmem:[%s8351_s1 + $0x118] sm:$0xff]  ;;  %1169 = vst [vmem:[#allocation2 + $0x60] sm:$0xff] %v1078_v9  ;;  %v917_v24 = vmax.f32 %v737_v12, 0.0  ;;  %v382_v27 = vld [vmem:[%s8350_s0 + $0x120] sm:$0xff]  ;;  %v384_v28 = vld [vmem:[%s8350_s0 + $0x130] sm:$0xff] }
  0x28   : > { %v1080_v23 = vpack.c.bf16 %v916_v11, %v914_v10  ;;  %v739_v25 = vadd.f32 %v559_v21, %v379_v15  ;;  %v741_v26 = vadd.f32 %v561_v22, %v381_v20  ;;  %v562_v29 = vld [vmem:[%s8351_s1 + $0x120] sm:$0xff]  ;;  %v918_v30 = vmax.f32 %v738_v18, 0.0  ;;  %v564_v32 = vld [vmem:[%s8351_s1 + $0x130] sm:$0xff]  ;;  %v383_v34 = vld [vmem:[%s8350_s0 + $0x128] sm:$0xff] }
  0x29   : > { %1170 = vst.msk [vmem:[#allocation2 + $0x68] sm:$0xff] %vm1157_vm0, %v1079_v16  ;;  %v920_v31 = vmax.f32 %v740_v19, 0.0  ;;  %v742_v33 = vadd.f32 %v562_v29, %v382_v27  ;;  %v385_v35 = vld [vmem:[%s8350_s0 + $0x138] sm:$0xff]  ;;  %v1081_v36 = vpack.c.bf16 %v917_v24, %v915_v17  ;;  %v744_v39 = vadd.f32 %v564_v32, %v384_v28  ;;  %v563_v40 = vld [vmem:[%s8351_s1 + $0x128] sm:$0xff]  ;;  %v386_v42 = vld [vmem:[%s8350_s0 + $0x140] sm:$0xff] }
  0x2a   : > { %1171 = vst [vmem:[#allocation2 + $0x70] sm:$0xff] %v1080_v23  ;;  %v919_v37 = vmax.f32 %v739_v25, 0.0  ;;  %v921_v38 = vmax.f32 %v741_v26, 0.0  ;;  %v565_v41 = vld [vmem:[%s8351_s1 + $0x138] sm:$0xff]  ;;  %v743_v45 = vadd.f32 %v563_v40, %v383_v34  ;;  %v388_v47 = vld [vmem:[%s8350_s0 + $0x150] sm:$0xff]  ;;  %v566_v48 = vld [vmem:[%s8351_s1 + $0x140] sm:$0xff] }
  0x2b   : > { %v1082_v43 = vpack.c.bf16 %v920_v31, %v918_v30  ;;  %v922_v44 = vmax.f32 %v742_v33, 0.0  ;;  %v745_v46 = vadd.f32 %v565_v41, %v385_v35  ;;  %v568_v49 = vld [vmem:[%s8351_s1 + $0x150] sm:$0xff]  ;;  %1172 = vst.msk [vmem:[#allocation2 + $0x78] sm:$0xff] %vm1157_vm0, %v1081_v36  ;;  %v924_v51 = vmax.f32 %v744_v39, 0.0  ;;  %v387_v54 = vld [vmem:[%s8350_s0 + $0x148] sm:$0xff]  ;;  %v389_v55 = vld [vmem:[%s8350_s0 + $0x158] sm:$0xff] }
  0x2c   : > { %v1083_v50 = vpack.c.bf16 %v921_v38, %v919_v37  ;;  %v746_v52 = vadd.f32 %v566_v48, %v386_v42  ;;  %v748_v53 = vadd.f32 %v568_v49, %v388_v47  ;;  %v567_v56 = vld [vmem:[%s8351_s1 + $0x148] sm:$0xff]  ;;  %v923_v57 = vmax.f32 %v743_v45, 0.0  ;;  %v569_v59 = vld [vmem:[%s8351_s1 + $0x158] sm:$0xff]  ;;  %v390_v61 = vld [vmem:[%s8350_s0 + $0x160] sm:$0xff] }
  0x2d   : > { %1173 = vst [vmem:[#allocation2 + $0x80] sm:$0xff] %v1082_v43  ;;  %v925_v58 = vmax.f32 %v745_v46, 0.0  ;;  %v747_v60 = vadd.f32 %v567_v56, %v387_v54  ;;  %v392_v62 = vld [vmem:[%s8350_s0 + $0x170] sm:$0xff]  ;;  %v1084_v63 = vpack.c.bf16 %v924_v51, %v922_v44  ;;  %v749_v2 = vadd.f32 %v569_v59, %v389_v55  ;;  %v570_v3 = vld [vmem:[%s8351_s1 + $0x160] sm:$0xff]  ;;  %v391_v5 = vld [vmem:[%s8350_s0 + $0x168] sm:$0xff] }
  0x2e   : > { %1174 = vst.msk [vmem:[#allocation2 + $0x88] sm:$0xff] %vm1157_vm0, %v1083_v50  ;;  %v926_v0 = vmax.f32 %v746_v52, 0.0  ;;  %v928_v1 = vmax.f32 %v748_v53, 0.0  ;;  %v572_v4 = vld [vmem:[%s8351_s1 + $0x170] sm:$0xff]  ;;  %v750_v8 = vadd.f32 %v570_v3, %v390_v61  ;;  %v393_v10 = vld [vmem:[%s8350_s0 + $0x178] sm:$0xff]  ;;  %v571_v11 = vld [vmem:[%s8351_s1 + $0x168] sm:$0xff] }
  0x2f   : > { %v1085_v6 = vpack.c.bf16 %v925_v58, %v923_v57  ;;  %v927_v7 = vmax.f32 %v747_v60, 0.0  ;;  %v752_v9 = vadd.f32 %v572_v4, %v392_v62  ;;  %v573_v12 = vld [vmem:[%s8351_s1 + $0x178] sm:$0xff]  ;;  %1175 = vst [vmem:[#allocation2 + $0x90] sm:$0xff] %v1084_v63  ;;  %v929_v14 = vmax.f32 %v749_v2, 0.0  ;;  %v394_v17 = vld [vmem:[%s8350_s0 + $0x180] sm:$0xff]  ;;  %v396_v18 = vld [vmem:[%s8350_s0 + $0x190] sm:$0xff] }
  0x30   : > { %v1086_v13 = vpack.c.bf16 %v928_v1, %v926_v0  ;;  %v751_v15 = vadd.f32 %v571_v11, %v391_v5  ;;  %v753_v16 = vadd.f32 %v573_v12, %v393_v10  ;;  %v574_v19 = vld [vmem:[%s8351_s1 + $0x180] sm:$0xff]  ;;  %v930_v20 = vmax.f32 %v750_v8, 0.0  ;;  %v576_v22 = vld [vmem:[%s8351_s1 + $0x190] sm:$0xff]  ;;  %v395_v24 = vld [vmem:[%s8350_s0 + $0x188] sm:$0xff] }
  0x31   : > { %1176 = vst.msk [vmem:[#allocation2 + $0x98] sm:$0xff] %vm1157_vm0, %v1085_v6  ;;  %v932_v21 = vmax.f32 %v752_v9, 0.0  ;;  %v754_v23 = vadd.f32 %v574_v19, %v394_v17  ;;  %v397_v25 = vld [vmem:[%s8350_s0 + $0x198] sm:$0xff]  ;;  %v1087_v26 = vpack.c.bf16 %v929_v14, %v927_v7  ;;  %v756_v29 = vadd.f32 %v576_v22, %v396_v18  ;;  %v575_v30 = vld [vmem:[%s8351_s1 + $0x188] sm:$0xff]  ;;  %v398_v32 = vld [vmem:[%s8350_s0 + $0x1a0] sm:$0xff] }
  0x32   : > { %1177 = vst [vmem:[#allocation2 + $0xa0] sm:$0xff] %v1086_v13  ;;  %v931_v27 = vmax.f32 %v751_v15, 0.0  ;;  %v933_v28 = vmax.f32 %v753_v16, 0.0  ;;  %v577_v31 = vld [vmem:[%s8351_s1 + $0x198] sm:$0xff]  ;;  %v755_v35 = vadd.f32 %v575_v30, %v395_v24  ;;  %v400_v37 = vld [vmem:[%s8350_s0 + $0x1b0] sm:$0xff]  ;;  %v578_v38 = vld [vmem:[%s8351_s1 + $0x1a0] sm:$0xff] }
  0x33   : > { %v1088_v33 = vpack.c.bf16 %v932_v21, %v930_v20  ;;  %v934_v34 = vmax.f32 %v754_v23, 0.0  ;;  %v757_v36 = vadd.f32 %v577_v31, %v397_v25  ;;  %v580_v39 = vld [vmem:[%s8351_s1 + $0x1b0] sm:$0xff]  ;;  %1178 = vst.msk [vmem:[#allocation2 + $0xa8] sm:$0xff] %vm1157_vm0, %v1087_v26  ;;  %v936_v41 = vmax.f32 %v756_v29, 0.0  ;;  %v399_v44 = vld [vmem:[%s8350_s0 + $0x1a8] sm:$0xff]  ;;  %v401_v45 = vld [vmem:[%s8350_s0 + $0x1b8] sm:$0xff] }
  0x34   : > { %v1089_v40 = vpack.c.bf16 %v933_v28, %v931_v27  ;;  %v758_v42 = vadd.f32 %v578_v38, %v398_v32  ;;  %v760_v43 = vadd.f32 %v580_v39, %v400_v37  ;;  %v579_v46 = vld [vmem:[%s8351_s1 + $0x1a8] sm:$0xff]  ;;  %v935_v47 = vmax.f32 %v755_v35, 0.0  ;;  %v581_v49 = vld [vmem:[%s8351_s1 + $0x1b8] sm:$0xff]  ;;  %v402_v51 = vld [vmem:[%s8350_s0 + $0x1c0] sm:$0xff] }
  0x35   : > { %1179 = vst [vmem:[#allocation2 + $0xb0] sm:$0xff] %v1088_v33  ;;  %v937_v48 = vmax.f32 %v757_v36, 0.0  ;;  %v759_v50 = vadd.f32 %v579_v46, %v399_v44  ;;  %v404_v52 = vld [vmem:[%s8350_s0 + $0x1d0] sm:$0xff]  ;;  %v1090_v53 = vpack.c.bf16 %v936_v41, %v934_v34  ;;  %v761_v56 = vadd.f32 %v581_v49, %v401_v45  ;;  %v582_v57 = vld [vmem:[%s8351_s1 + $0x1c0] sm:$0xff]  ;;  %v403_v59 = vld [vmem:[%s8350_s0 + $0x1c8] sm:$0xff] }
  0x36   : > { %1180 = vst.msk [vmem:[#allocation2 + $0xb8] sm:$0xff] %vm1157_vm0, %v1089_v40  ;;  %v938_v54 = vmax.f32 %v758_v42, 0.0  ;;  %v940_v55 = vmax.f32 %v760_v43, 0.0  ;;  %v584_v58 = vld [vmem:[%s8351_s1 + $0x1d0] sm:$0xff]  ;;  %v762_v62 = vadd.f32 %v582_v57, %v402_v51  ;;  %v405_v0 = vld [vmem:[%s8350_s0 + $0x1d8] sm:$0xff]  ;;  %v583_v1 = vld [vmem:[%s8351_s1 + $0x1c8] sm:$0xff] }
  0x37   : > { %v1091_v60 = vpack.c.bf16 %v937_v48, %v935_v47  ;;  %v939_v61 = vmax.f32 %v759_v50, 0.0  ;;  %v764_v63 = vadd.f32 %v584_v58, %v404_v52  ;;  %v585_v2 = vld [vmem:[%s8351_s1 + $0x1d8] sm:$0xff]  ;;  %1181 = vst [vmem:[#allocation2 + $0xc0] sm:$0xff] %v1090_v53  ;;  %v941_v4 = vmax.f32 %v761_v56, 0.0  ;;  %v406_v7 = vld [vmem:[%s8350_s0 + $0x1e0] sm:$0xff]  ;;  %v408_v8 = vld [vmem:[%s8350_s0 + $0x1f0] sm:$0xff] }
  0x38   : > { %v1092_v3 = vpack.c.bf16 %v940_v55, %v938_v54  ;;  %v763_v5 = vadd.f32 %v583_v1, %v403_v59  ;;  %v765_v6 = vadd.f32 %v585_v2, %v405_v0  ;;  %v586_v9 = vld [vmem:[%s8351_s1 + $0x1e0] sm:$0xff]  ;;  %v942_v10 = vmax.f32 %v762_v62, 0.0  ;;  %v588_v12 = vld [vmem:[%s8351_s1 + $0x1f0] sm:$0xff]  ;;  %v407_v14 = vld [vmem:[%s8350_s0 + $0x1e8] sm:$0xff] }
  0x39   : > { %1182 = vst.msk [vmem:[#allocation2 + $0xc8] sm:$0xff] %vm1157_vm0, %v1091_v60  ;;  %v944_v11 = vmax.f32 %v764_v63, 0.0  ;;  %v766_v13 = vadd.f32 %v586_v9, %v406_v7  ;;  %v409_v15 = vld [vmem:[%s8350_s0 + $0x1f8] sm:$0xff]  ;;  %v1093_v16 = vpack.c.bf16 %v941_v4, %v939_v61  ;;  %v768_v19 = vadd.f32 %v588_v12, %v408_v8  ;;  %v587_v20 = vld [vmem:[%s8351_s1 + $0x1e8] sm:$0xff]  ;;  %v410_v22 = vld [vmem:[%s8350_s0 + $0x200] sm:$0xff] }
  0x3a   : > { %1183 = vst [vmem:[#allocation2 + $0xd0] sm:$0xff] %v1092_v3  ;;  %v943_v17 = vmax.f32 %v763_v5, 0.0  ;;  %v945_v18 = vmax.f32 %v765_v6, 0.0  ;;  %v589_v21 = vld [vmem:[%s8351_s1 + $0x1f8] sm:$0xff]  ;;  %v767_v25 = vadd.f32 %v587_v20, %v407_v14  ;;  %v412_v27 = vld [vmem:[%s8350_s0 + $0x210] sm:$0xff]  ;;  %v590_v28 = vld [vmem:[%s8351_s1 + $0x200] sm:$0xff] }
  0x3b   : > { %v1094_v23 = vpack.c.bf16 %v944_v11, %v942_v10  ;;  %v946_v24 = vmax.f32 %v766_v13, 0.0  ;;  %v769_v26 = vadd.f32 %v589_v21, %v409_v15  ;;  %v592_v29 = vld [vmem:[%s8351_s1 + $0x210] sm:$0xff]  ;;  %1184 = vst.msk [vmem:[#allocation2 + $0xd8] sm:$0xff] %vm1157_vm0, %v1093_v16  ;;  %v948_v31 = vmax.f32 %v768_v19, 0.0  ;;  %v411_v34 = vld [vmem:[%s8350_s0 + $0x208] sm:$0xff]  ;;  %v413_v35 = vld [vmem:[%s8350_s0 + $0x218] sm:$0xff] }
  0x3c   : > { %v1095_v30 = vpack.c.bf16 %v945_v18, %v943_v17  ;;  %v770_v32 = vadd.f32 %v590_v28, %v410_v22  ;;  %v772_v33 = vadd.f32 %v592_v29, %v412_v27  ;;  %v591_v36 = vld [vmem:[%s8351_s1 + $0x208] sm:$0xff]  ;;  %v947_v37 = vmax.f32 %v767_v25, 0.0  ;;  %v593_v39 = vld [vmem:[%s8351_s1 + $0x218] sm:$0xff]  ;;  %v414_v41 = vld [vmem:[%s8350_s0 + $0x220] sm:$0xff] }
  0x3d   : > { %1185 = vst [vmem:[#allocation2 + $0xe0] sm:$0xff] %v1094_v23  ;;  %v949_v38 = vmax.f32 %v769_v26, 0.0  ;;  %v771_v40 = vadd.f32 %v591_v36, %v411_v34  ;;  %v416_v42 = vld [vmem:[%s8350_s0 + $0x230] sm:$0xff]  ;;  %v1096_v43 = vpack.c.bf16 %v948_v31, %v946_v24  ;;  %v773_v46 = vadd.f32 %v593_v39, %v413_v35  ;;  %v594_v47 = vld [vmem:[%s8351_s1 + $0x220] sm:$0xff]  ;;  %v415_v49 = vld [vmem:[%s8350_s0 + $0x228] sm:$0xff] }
  0x3e   : > { %1186 = vst.msk [vmem:[#allocation2 + $0xe8] sm:$0xff] %vm1157_vm0, %v1095_v30  ;;  %v950_v44 = vmax.f32 %v770_v32, 0.0  ;;  %v952_v45 = vmax.f32 %v772_v33, 0.0  ;;  %v596_v48 = vld [vmem:[%s8351_s1 + $0x230] sm:$0xff]  ;;  %v774_v52 = vadd.f32 %v594_v47, %v414_v41  ;;  %v417_v54 = vld [vmem:[%s8350_s0 + $0x238] sm:$0xff]  ;;  %v595_v55 = vld [vmem:[%s8351_s1 + $0x228] sm:$0xff] }
  0x3f   : > { %v1097_v50 = vpack.c.bf16 %v949_v38, %v947_v37  ;;  %v951_v51 = vmax.f32 %v771_v40, 0.0  ;;  %v776_v53 = vadd.f32 %v596_v48, %v416_v42  ;;  %v597_v56 = vld [vmem:[%s8351_s1 + $0x238] sm:$0xff]  ;;  %1187 = vst [vmem:[#allocation2 + $0xf0] sm:$0xff] %v1096_v43  ;;  %v953_v58 = vmax.f32 %v773_v46, 0.0  ;;  %v418_v61 = vld [vmem:[%s8350_s0 + $0x240] sm:$0xff]  ;;  %v420_v62 = vld [vmem:[%s8350_s0 + $0x250] sm:$0xff] }
  0x40   : > { %v1098_v57 = vpack.c.bf16 %v952_v45, %v950_v44  ;;  %v775_v59 = vadd.f32 %v595_v55, %v415_v49  ;;  %v777_v60 = vadd.f32 %v597_v56, %v417_v54  ;;  %v598_v63 = vld [vmem:[%s8351_s1 + $0x240] sm:$0xff]  ;;  %v954_v0 = vmax.f32 %v774_v52, 0.0  ;;  %v600_v2 = vld [vmem:[%s8351_s1 + $0x250] sm:$0xff]  ;;  %v419_v4 = vld [vmem:[%s8350_s0 + $0x248] sm:$0xff] }
  0x41   : > { %1188 = vst.msk [vmem:[#allocation2 + $0xf8] sm:$0xff] %vm1157_vm0, %v1097_v50  ;;  %v956_v1 = vmax.f32 %v776_v53, 0.0  ;;  %v778_v3 = vadd.f32 %v598_v63, %v418_v61  ;;  %v421_v5 = vld [vmem:[%s8350_s0 + $0x258] sm:$0xff]  ;;  %v1099_v6 = vpack.c.bf16 %v953_v58, %v951_v51  ;;  %v780_v9 = vadd.f32 %v600_v2, %v420_v62  ;;  %v599_v10 = vld [vmem:[%s8351_s1 + $0x248] sm:$0xff]  ;;  %v422_v12 = vld [vmem:[%s8350_s0 + $0x260] sm:$0xff] }
  0x42   : > { %1189 = vst [vmem:[#allocation2 + $0x100] sm:$0xff] %v1098_v57  ;;  %v955_v7 = vmax.f32 %v775_v59, 0.0  ;;  %v957_v8 = vmax.f32 %v777_v60, 0.0  ;;  %v601_v11 = vld [vmem:[%s8351_s1 + $0x258] sm:$0xff]  ;;  %v779_v15 = vadd.f32 %v599_v10, %v419_v4  ;;  %v424_v17 = vld [vmem:[%s8350_s0 + $0x270] sm:$0xff]  ;;  %v602_v18 = vld [vmem:[%s8351_s1 + $0x260] sm:$0xff] }
  0x43   : > { %v1100_v13 = vpack.c.bf16 %v956_v1, %v954_v0  ;;  %v958_v14 = vmax.f32 %v778_v3, 0.0  ;;  %v781_v16 = vadd.f32 %v601_v11, %v421_v5  ;;  %v604_v19 = vld [vmem:[%s8351_s1 + $0x270] sm:$0xff]  ;;  %1190 = vst.msk [vmem:[#allocation2 + $0x108] sm:$0xff] %vm1157_vm0, %v1099_v6  ;;  %v960_v21 = vmax.f32 %v780_v9, 0.0  ;;  %v423_v24 = vld [vmem:[%s8350_s0 + $0x268] sm:$0xff]  ;;  %v425_v25 = vld [vmem:[%s8350_s0 + $0x278] sm:$0xff] }
  0x44   : > { %v1101_v20 = vpack.c.bf16 %v957_v8, %v955_v7  ;;  %v782_v22 = vadd.f32 %v602_v18, %v422_v12  ;;  %v784_v23 = vadd.f32 %v604_v19, %v424_v17  ;;  %v603_v26 = vld [vmem:[%s8351_s1 + $0x268] sm:$0xff]  ;;  %v959_v27 = vmax.f32 %v779_v15, 0.0  ;;  %v605_v29 = vld [vmem:[%s8351_s1 + $0x278] sm:$0xff]  ;;  %v426_v31 = vld [vmem:[%s8350_s0 + $0x280] sm:$0xff] }
  0x45   : > { %1191 = vst [vmem:[#allocation2 + $0x110] sm:$0xff] %v1100_v13  ;;  %v961_v28 = vmax.f32 %v781_v16, 0.0  ;;  %v783_v30 = vadd.f32 %v603_v26, %v423_v24  ;;  %v428_v32 = vld [vmem:[%s8350_s0 + $0x290] sm:$0xff]  ;;  %v1102_v33 = vpack.c.bf16 %v960_v21, %v958_v14  ;;  %v785_v36 = vadd.f32 %v605_v29, %v425_v25  ;;  %v606_v37 = vld [vmem:[%s8351_s1 + $0x280] sm:$0xff]  ;;  %v427_v39 = vld [vmem:[%s8350_s0 + $0x288] sm:$0xff] }
  0x46   : > { %1192 = vst.msk [vmem:[#allocation2 + $0x118] sm:$0xff] %vm1157_vm0, %v1101_v20  ;;  %v962_v34 = vmax.f32 %v782_v22, 0.0  ;;  %v964_v35 = vmax.f32 %v784_v23, 0.0  ;;  %v608_v38 = vld [vmem:[%s8351_s1 + $0x290] sm:$0xff]  ;;  %v786_v42 = vadd.f32 %v606_v37, %v426_v31  ;;  %v429_v44 = vld [vmem:[%s8350_s0 + $0x298] sm:$0xff]  ;;  %v607_v45 = vld [vmem:[%s8351_s1 + $0x288] sm:$0xff] }
  0x47   : > { %v1103_v40 = vpack.c.bf16 %v961_v28, %v959_v27  ;;  %v963_v41 = vmax.f32 %v783_v30, 0.0  ;;  %v788_v43 = vadd.f32 %v608_v38, %v428_v32  ;;  %v609_v46 = vld [vmem:[%s8351_s1 + $0x298] sm:$0xff]  ;;  %1193 = vst [vmem:[#allocation2 + $0x120] sm:$0xff] %v1102_v33  ;;  %v965_v48 = vmax.f32 %v785_v36, 0.0  ;;  %v430_v51 = vld [vmem:[%s8350_s0 + $0x2a0] sm:$0xff]  ;;  %v432_v52 = vld [vmem:[%s8350_s0 + $0x2b0] sm:$0xff] }
  0x48   : > { %v1104_v47 = vpack.c.bf16 %v964_v35, %v962_v34  ;;  %v787_v49 = vadd.f32 %v607_v45, %v427_v39  ;;  %v789_v50 = vadd.f32 %v609_v46, %v429_v44  ;;  %v610_v53 = vld [vmem:[%s8351_s1 + $0x2a0] sm:$0xff]  ;;  %v966_v54 = vmax.f32 %v786_v42, 0.0  ;;  %v612_v56 = vld [vmem:[%s8351_s1 + $0x2b0] sm:$0xff]  ;;  %v431_v58 = vld [vmem:[%s8350_s0 + $0x2a8] sm:$0xff] }
  0x49   : > { %1194 = vst.msk [vmem:[#allocation2 + $0x128] sm:$0xff] %vm1157_vm0, %v1103_v40  ;;  %v968_v55 = vmax.f32 %v788_v43, 0.0  ;;  %v790_v57 = vadd.f32 %v610_v53, %v430_v51  ;;  %v433_v59 = vld [vmem:[%s8350_s0 + $0x2b8] sm:$0xff]  ;;  %v1105_v60 = vpack.c.bf16 %v965_v48, %v963_v41  ;;  %v792_v63 = vadd.f32 %v612_v56, %v432_v52  ;;  %v611_v0 = vld [vmem:[%s8351_s1 + $0x2a8] sm:$0xff]  ;;  %v434_v2 = vld [vmem:[%s8350_s0 + $0x2c0] sm:$0xff] }
  0x4a   : > { %1195 = vst [vmem:[#allocation2 + $0x130] sm:$0xff] %v1104_v47  ;;  %v967_v61 = vmax.f32 %v787_v49, 0.0  ;;  %v969_v62 = vmax.f32 %v789_v50, 0.0  ;;  %v613_v1 = vld [vmem:[%s8351_s1 + $0x2b8] sm:$0xff]  ;;  %v791_v5 = vadd.f32 %v611_v0, %v431_v58  ;;  %v436_v7 = vld [vmem:[%s8350_s0 + $0x2d0] sm:$0xff]  ;;  %v614_v8 = vld [vmem:[%s8351_s1 + $0x2c0] sm:$0xff] }
  0x4b   : > { %v1106_v3 = vpack.c.bf16 %v968_v55, %v966_v54  ;;  %v970_v4 = vmax.f32 %v790_v57, 0.0  ;;  %v793_v6 = vadd.f32 %v613_v1, %v433_v59  ;;  %v616_v9 = vld [vmem:[%s8351_s1 + $0x2d0] sm:$0xff]  ;;  %1196 = vst.msk [vmem:[#allocation2 + $0x138] sm:$0xff] %vm1157_vm0, %v1105_v60  ;;  %v972_v11 = vmax.f32 %v792_v63, 0.0  ;;  %v435_v14 = vld [vmem:[%s8350_s0 + $0x2c8] sm:$0xff]  ;;  %v437_v15 = vld [vmem:[%s8350_s0 + $0x2d8] sm:$0xff] }
  0x4c   : > { %v1107_v10 = vpack.c.bf16 %v969_v62, %v967_v61  ;;  %v794_v12 = vadd.f32 %v614_v8, %v434_v2  ;;  %v796_v13 = vadd.f32 %v616_v9, %v436_v7  ;;  %v615_v16 = vld [vmem:[%s8351_s1 + $0x2c8] sm:$0xff]  ;;  %v971_v17 = vmax.f32 %v791_v5, 0.0  ;;  %v617_v19 = vld [vmem:[%s8351_s1 + $0x2d8] sm:$0xff]  ;;  %v438_v21 = vld [vmem:[%s8350_s0 + $0x2e0] sm:$0xff] }
  0x4d   : > { %1197 = vst [vmem:[#allocation2 + $0x140] sm:$0xff] %v1106_v3  ;;  %v973_v18 = vmax.f32 %v793_v6, 0.0  ;;  %v795_v20 = vadd.f32 %v615_v16, %v435_v14  ;;  %v440_v22 = vld [vmem:[%s8350_s0 + $0x2f0] sm:$0xff]  ;;  %v1108_v23 = vpack.c.bf16 %v972_v11, %v970_v4  ;;  %v797_v26 = vadd.f32 %v617_v19, %v437_v15  ;;  %v618_v27 = vld [vmem:[%s8351_s1 + $0x2e0] sm:$0xff]  ;;  %v439_v29 = vld [vmem:[%s8350_s0 + $0x2e8] sm:$0xff] }
  0x4e   : > { %1198 = vst.msk [vmem:[#allocation2 + $0x148] sm:$0xff] %vm1157_vm0, %v1107_v10  ;;  %v974_v24 = vmax.f32 %v794_v12, 0.0  ;;  %v976_v25 = vmax.f32 %v796_v13, 0.0  ;;  %v620_v28 = vld [vmem:[%s8351_s1 + $0x2f0] sm:$0xff]  ;;  %v798_v32 = vadd.f32 %v618_v27, %v438_v21  ;;  %v441_v34 = vld [vmem:[%s8350_s0 + $0x2f8] sm:$0xff]  ;;  %v619_v35 = vld [vmem:[%s8351_s1 + $0x2e8] sm:$0xff] }
  0x4f   : > { %v1109_v30 = vpack.c.bf16 %v973_v18, %v971_v17  ;;  %v975_v31 = vmax.f32 %v795_v20, 0.0  ;;  %v800_v33 = vadd.f32 %v620_v28, %v440_v22  ;;  %v621_v36 = vld [vmem:[%s8351_s1 + $0x2f8] sm:$0xff]  ;;  %1199 = vst [vmem:[#allocation2 + $0x150] sm:$0xff] %v1108_v23  ;;  %v977_v38 = vmax.f32 %v797_v26, 0.0  ;;  %v442_v41 = vld [vmem:[%s8350_s0 + $0x300] sm:$0xff]  ;;  %v444_v42 = vld [vmem:[%s8350_s0 + $0x310] sm:$0xff] }
  0x50   : > { %v1110_v37 = vpack.c.bf16 %v976_v25, %v974_v24  ;;  %v799_v39 = vadd.f32 %v619_v35, %v439_v29  ;;  %v801_v40 = vadd.f32 %v621_v36, %v441_v34  ;;  %v622_v43 = vld [vmem:[%s8351_s1 + $0x300] sm:$0xff]  ;;  %v978_v44 = vmax.f32 %v798_v32, 0.0  ;;  %v624_v46 = vld [vmem:[%s8351_s1 + $0x310] sm:$0xff]  ;;  %v443_v48 = vld [vmem:[%s8350_s0 + $0x308] sm:$0xff] }
  0x51   : > { %1200 = vst.msk [vmem:[#allocation2 + $0x158] sm:$0xff] %vm1157_vm0, %v1109_v30  ;;  %v980_v45 = vmax.f32 %v800_v33, 0.0  ;;  %v802_v47 = vadd.f32 %v622_v43, %v442_v41  ;;  %v445_v49 = vld [vmem:[%s8350_s0 + $0x318] sm:$0xff]  ;;  %v1111_v50 = vpack.c.bf16 %v977_v38, %v975_v31  ;;  %v804_v53 = vadd.f32 %v624_v46, %v444_v42  ;;  %v623_v54 = vld [vmem:[%s8351_s1 + $0x308] sm:$0xff]  ;;  %v446_v56 = vld [vmem:[%s8350_s0 + $0x320] sm:$0xff] }
  0x52   : > { %1201 = vst [vmem:[#allocation2 + $0x160] sm:$0xff] %v1110_v37  ;;  %v979_v51 = vmax.f32 %v799_v39, 0.0  ;;  %v981_v52 = vmax.f32 %v801_v40, 0.0  ;;  %v625_v55 = vld [vmem:[%s8351_s1 + $0x318] sm:$0xff]  ;;  %v803_v59 = vadd.f32 %v623_v54, %v443_v48  ;;  %v448_v61 = vld [vmem:[%s8350_s0 + $0x330] sm:$0xff]  ;;  %v626_v62 = vld [vmem:[%s8351_s1 + $0x320] sm:$0xff] }
  0x53   : > { %v1112_v57 = vpack.c.bf16 %v980_v45, %v978_v44  ;;  %v982_v58 = vmax.f32 %v802_v47, 0.0  ;;  %v805_v60 = vadd.f32 %v625_v55, %v445_v49  ;;  %v628_v63 = vld [vmem:[%s8351_s1 + $0x330] sm:$0xff]  ;;  %1202 = vst.msk [vmem:[#allocation2 + $0x168] sm:$0xff] %vm1157_vm0, %v1111_v50  ;;  %v984_v1 = vmax.f32 %v804_v53, 0.0  ;;  %v447_v4 = vld [vmem:[%s8350_s0 + $0x328] sm:$0xff]  ;;  %v449_v5 = vld [vmem:[%s8350_s0 + $0x338] sm:$0xff] }
  0x54   : > { %v1113_v0 = vpack.c.bf16 %v981_v52, %v979_v51  ;;  %v806_v2 = vadd.f32 %v626_v62, %v446_v56  ;;  %v808_v3 = vadd.f32 %v628_v63, %v448_v61  ;;  %v627_v6 = vld [vmem:[%s8351_s1 + $0x328] sm:$0xff]  ;;  %v983_v7 = vmax.f32 %v803_v59, 0.0  ;;  %v629_v9 = vld [vmem:[%s8351_s1 + $0x338] sm:$0xff]  ;;  %v450_v11 = vld [vmem:[%s8350_s0 + $0x340] sm:$0xff] }
  0x55   : > { %1203 = vst [vmem:[#allocation2 + $0x170] sm:$0xff] %v1112_v57  ;;  %v985_v8 = vmax.f32 %v805_v60, 0.0  ;;  %v807_v10 = vadd.f32 %v627_v6, %v447_v4  ;;  %v452_v12 = vld [vmem:[%s8350_s0 + $0x350] sm:$0xff]  ;;  %v1114_v13 = vpack.c.bf16 %v984_v1, %v982_v58  ;;  %v809_v16 = vadd.f32 %v629_v9, %v449_v5  ;;  %v630_v17 = vld [vmem:[%s8351_s1 + $0x340] sm:$0xff]  ;;  %v451_v19 = vld [vmem:[%s8350_s0 + $0x348] sm:$0xff] }
  0x56   : > { %1204 = vst.msk [vmem:[#allocation2 + $0x178] sm:$0xff] %vm1157_vm0, %v1113_v0  ;;  %v986_v14 = vmax.f32 %v806_v2, 0.0  ;;  %v988_v15 = vmax.f32 %v808_v3, 0.0  ;;  %v632_v18 = vld [vmem:[%s8351_s1 + $0x350] sm:$0xff]  ;;  %v810_v22 = vadd.f32 %v630_v17, %v450_v11  ;;  %v453_v24 = vld [vmem:[%s8350_s0 + $0x358] sm:$0xff]  ;;  %v631_v25 = vld [vmem:[%s8351_s1 + $0x348] sm:$0xff] }
  0x57   : > { %v1115_v20 = vpack.c.bf16 %v985_v8, %v983_v7  ;;  %v987_v21 = vmax.f32 %v807_v10, 0.0  ;;  %v812_v23 = vadd.f32 %v632_v18, %v452_v12  ;;  %v633_v26 = vld [vmem:[%s8351_s1 + $0x358] sm:$0xff]  ;;  %1205 = vst [vmem:[#allocation2 + $0x180] sm:$0xff] %v1114_v13  ;;  %v989_v28 = vmax.f32 %v809_v16, 0.0  ;;  %v454_v31 = vld [vmem:[%s8350_s0 + $0x360] sm:$0xff]  ;;  %v456_v32 = vld [vmem:[%s8350_s0 + $0x370] sm:$0xff] }
  0x58   : > { %v1116_v27 = vpack.c.bf16 %v988_v15, %v986_v14  ;;  %v811_v29 = vadd.f32 %v631_v25, %v451_v19  ;;  %v813_v30 = vadd.f32 %v633_v26, %v453_v24  ;;  %v634_v33 = vld [vmem:[%s8351_s1 + $0x360] sm:$0xff]  ;;  %v990_v34 = vmax.f32 %v810_v22, 0.0  ;;  %v636_v36 = vld [vmem:[%s8351_s1 + $0x370] sm:$0xff]  ;;  %v455_v38 = vld [vmem:[%s8350_s0 + $0x368] sm:$0xff] }
  0x59   : > { %1206 = vst.msk [vmem:[#allocation2 + $0x188] sm:$0xff] %vm1157_vm0, %v1115_v20  ;;  %v992_v35 = vmax.f32 %v812_v23, 0.0  ;;  %v814_v37 = vadd.f32 %v634_v33, %v454_v31  ;;  %v457_v39 = vld [vmem:[%s8350_s0 + $0x378] sm:$0xff]  ;;  %v1117_v40 = vpack.c.bf16 %v989_v28, %v987_v21  ;;  %v816_v43 = vadd.f32 %v636_v36, %v456_v32  ;;  %v635_v44 = vld [vmem:[%s8351_s1 + $0x368] sm:$0xff]  ;;  %v458_v46 = vld [vmem:[%s8350_s0 + $0x380] sm:$0xff] }
  0x5a   : > { %1207 = vst [vmem:[#allocation2 + $0x190] sm:$0xff] %v1116_v27  ;;  %v991_v41 = vmax.f32 %v811_v29, 0.0  ;;  %v993_v42 = vmax.f32 %v813_v30, 0.0  ;;  %v637_v45 = vld [vmem:[%s8351_s1 + $0x378] sm:$0xff]  ;;  %v815_v49 = vadd.f32 %v635_v44, %v455_v38  ;;  %v460_v51 = vld [vmem:[%s8350_s0 + $0x390] sm:$0xff]  ;;  %v638_v52 = vld [vmem:[%s8351_s1 + $0x380] sm:$0xff] }
  0x5b   : > { %v1118_v47 = vpack.c.bf16 %v992_v35, %v990_v34  ;;  %v994_v48 = vmax.f32 %v814_v37, 0.0  ;;  %v817_v50 = vadd.f32 %v637_v45, %v457_v39  ;;  %v640_v53 = vld [vmem:[%s8351_s1 + $0x390] sm:$0xff]  ;;  %1208 = vst.msk [vmem:[#allocation2 + $0x198] sm:$0xff] %vm1157_vm0, %v1117_v40  ;;  %v996_v55 = vmax.f32 %v816_v43, 0.0  ;;  %v459_v58 = vld [vmem:[%s8350_s0 + $0x388] sm:$0xff]  ;;  %v461_v59 = vld [vmem:[%s8350_s0 + $0x398] sm:$0xff] }
  0x5c   : > { %v1119_v54 = vpack.c.bf16 %v993_v42, %v991_v41  ;;  %v818_v56 = vadd.f32 %v638_v52, %v458_v46  ;;  %v820_v57 = vadd.f32 %v640_v53, %v460_v51  ;;  %v639_v60 = vld [vmem:[%s8351_s1 + $0x388] sm:$0xff]  ;;  %v995_v61 = vmax.f32 %v815_v49, 0.0  ;;  %v641_v63 = vld [vmem:[%s8351_s1 + $0x398] sm:$0xff]  ;;  %v462_v1 = vld [vmem:[%s8350_s0 + $0x3a0] sm:$0xff] }
  0x5d   : > { %1209 = vst [vmem:[#allocation2 + $0x1a0] sm:$0xff] %v1118_v47  ;;  %v997_v62 = vmax.f32 %v817_v50, 0.0  ;;  %v819_v0 = vadd.f32 %v639_v60, %v459_v58  ;;  %v464_v2 = vld [vmem:[%s8350_s0 + $0x3b0] sm:$0xff]  ;;  %v1120_v3 = vpack.c.bf16 %v996_v55, %v994_v48  ;;  %v821_v6 = vadd.f32 %v641_v63, %v461_v59  ;;  %v642_v7 = vld [vmem:[%s8351_s1 + $0x3a0] sm:$0xff]  ;;  %v463_v9 = vld [vmem:[%s8350_s0 + $0x3a8] sm:$0xff] }
  0x5e   : > { %1210 = vst.msk [vmem:[#allocation2 + $0x1a8] sm:$0xff] %vm1157_vm0, %v1119_v54  ;;  %v998_v4 = vmax.f32 %v818_v56, 0.0  ;;  %v1000_v5 = vmax.f32 %v820_v57, 0.0  ;;  %v644_v8 = vld [vmem:[%s8351_s1 + $0x3b0] sm:$0xff]  ;;  %v822_v12 = vadd.f32 %v642_v7, %v462_v1  ;;  %v465_v14 = vld [vmem:[%s8350_s0 + $0x3b8] sm:$0xff]  ;;  %v643_v15 = vld [vmem:[%s8351_s1 + $0x3a8] sm:$0xff] }
  0x5f   : > { %v1121_v10 = vpack.c.bf16 %v997_v62, %v995_v61  ;;  %v999_v11 = vmax.f32 %v819_v0, 0.0  ;;  %v824_v13 = vadd.f32 %v644_v8, %v464_v2  ;;  %v645_v16 = vld [vmem:[%s8351_s1 + $0x3b8] sm:$0xff]  ;;  %1211 = vst [vmem:[#allocation2 + $0x1b0] sm:$0xff] %v1120_v3  ;;  %v1001_v18 = vmax.f32 %v821_v6, 0.0  ;;  %v466_v21 = vld [vmem:[%s8350_s0 + $0x3c0] sm:$0xff]  ;;  %v468_v22 = vld [vmem:[%s8350_s0 + $0x3d0] sm:$0xff] }
  0x60   : > { %v1122_v17 = vpack.c.bf16 %v1000_v5, %v998_v4  ;;  %v823_v19 = vadd.f32 %v643_v15, %v463_v9  ;;  %v825_v20 = vadd.f32 %v645_v16, %v465_v14  ;;  %v646_v23 = vld [vmem:[%s8351_s1 + $0x3c0] sm:$0xff]  ;;  %v1002_v24 = vmax.f32 %v822_v12, 0.0  ;;  %v648_v26 = vld [vmem:[%s8351_s1 + $0x3d0] sm:$0xff]  ;;  %v467_v28 = vld [vmem:[%s8350_s0 + $0x3c8] sm:$0xff] }
  0x61   : > { %1212 = vst.msk [vmem:[#allocation2 + $0x1b8] sm:$0xff] %vm1157_vm0, %v1121_v10  ;;  %v1004_v25 = vmax.f32 %v824_v13, 0.0  ;;  %v826_v27 = vadd.f32 %v646_v23, %v466_v21  ;;  %v469_v29 = vld [vmem:[%s8350_s0 + $0x3d8] sm:$0xff]  ;;  %v1123_v30 = vpack.c.bf16 %v1001_v18, %v999_v11  ;;  %v828_v33 = vadd.f32 %v648_v26, %v468_v22  ;;  %v647_v34 = vld [vmem:[%s8351_s1 + $0x3c8] sm:$0xff]  ;;  %v470_v36 = vld [vmem:[%s8350_s0 + $0x3e0] sm:$0xff] }
  0x62   : > { %1213 = vst [vmem:[#allocation2 + $0x1c0] sm:$0xff] %v1122_v17  ;;  %v1003_v31 = vmax.f32 %v823_v19, 0.0  ;;  %v1005_v32 = vmax.f32 %v825_v20, 0.0  ;;  %v649_v35 = vld [vmem:[%s8351_s1 + $0x3d8] sm:$0xff]  ;;  %v827_v39 = vadd.f32 %v647_v34, %v467_v28  ;;  %v472_v41 = vld [vmem:[%s8350_s0 + $0x3f0] sm:$0xff]  ;;  %v650_v42 = vld [vmem:[%s8351_s1 + $0x3e0] sm:$0xff] }
  0x63   : > { %v1124_v37 = vpack.c.bf16 %v1004_v25, %v1002_v24  ;;  %v1006_v38 = vmax.f32 %v826_v27, 0.0  ;;  %v829_v40 = vadd.f32 %v649_v35, %v469_v29  ;;  %v652_v43 = vld [vmem:[%s8351_s1 + $0x3f0] sm:$0xff]  ;;  %1214 = vst.msk [vmem:[#allocation2 + $0x1c8] sm:$0xff] %vm1157_vm0, %v1123_v30  ;;  %v1008_v45 = vmax.f32 %v828_v33, 0.0  ;;  %v471_v48 = vld [vmem:[%s8350_s0 + $0x3e8] sm:$0xff]  ;;  %v473_v49 = vld [vmem:[%s8350_s0 + $0x3f8] sm:$0xff] }
  0x64   : > { %v1125_v44 = vpack.c.bf16 %v1005_v32, %v1003_v31  ;;  %v830_v46 = vadd.f32 %v650_v42, %v470_v36  ;;  %v832_v47 = vadd.f32 %v652_v43, %v472_v41  ;;  %v651_v50 = vld [vmem:[%s8351_s1 + $0x3e8] sm:$0xff]  ;;  %v1007_v51 = vmax.f32 %v827_v39, 0.0  ;;  %v653_v53 = vld [vmem:[%s8351_s1 + $0x3f8] sm:$0xff]  ;;  %v474_v55 = vld [vmem:[%s8350_s0 + $0x400] sm:$0xff] }
  0x65   : > { %1215 = vst [vmem:[#allocation2 + $0x1d0] sm:$0xff] %v1124_v37  ;;  %v1009_v52 = vmax.f32 %v829_v40, 0.0  ;;  %v831_v54 = vadd.f32 %v651_v50, %v471_v48  ;;  %v476_v56 = vld [vmem:[%s8350_s0 + $0x410] sm:$0xff]  ;;  %v1126_v57 = vpack.c.bf16 %v1008_v45, %v1006_v38  ;;  %v833_v60 = vadd.f32 %v653_v53, %v473_v49  ;;  %v654_v61 = vld [vmem:[%s8351_s1 + $0x400] sm:$0xff]  ;;  %v475_v63 = vld [vmem:[%s8350_s0 + $0x408] sm:$0xff] }
  0x66   : > { %1216 = vst.msk [vmem:[#allocation2 + $0x1d8] sm:$0xff] %vm1157_vm0, %v1125_v44  ;;  %v1010_v58 = vmax.f32 %v830_v46, 0.0  ;;  %v1012_v59 = vmax.f32 %v832_v47, 0.0  ;;  %v656_v62 = vld [vmem:[%s8351_s1 + $0x410] sm:$0xff]  ;;  %v834_v2 = vadd.f32 %v654_v61, %v474_v55  ;;  %v477_v4 = vld [vmem:[%s8350_s0 + $0x418] sm:$0xff]  ;;  %v655_v5 = vld [vmem:[%s8351_s1 + $0x408] sm:$0xff] }
  0x67   : > { %v1127_v0 = vpack.c.bf16 %v1009_v52, %v1007_v51  ;;  %v1011_v1 = vmax.f32 %v831_v54, 0.0  ;;  %v836_v3 = vadd.f32 %v656_v62, %v476_v56  ;;  %v657_v6 = vld [vmem:[%s8351_s1 + $0x418] sm:$0xff]  ;;  %1217 = vst [vmem:[#allocation2 + $0x1e0] sm:$0xff] %v1126_v57  ;;  %v1013_v8 = vmax.f32 %v833_v60, 0.0  ;;  %v478_v11 = vld [vmem:[%s8350_s0 + $0x420] sm:$0xff]  ;;  %v480_v12 = vld [vmem:[%s8350_s0 + $0x430] sm:$0xff] }
  0x68   : > { %v1128_v7 = vpack.c.bf16 %v1012_v59, %v1010_v58  ;;  %v835_v9 = vadd.f32 %v655_v5, %v475_v63  ;;  %v837_v10 = vadd.f32 %v657_v6, %v477_v4  ;;  %v658_v13 = vld [vmem:[%s8351_s1 + $0x420] sm:$0xff]  ;;  %v1014_v14 = vmax.f32 %v834_v2, 0.0  ;;  %v660_v16 = vld [vmem:[%s8351_s1 + $0x430] sm:$0xff]  ;;  %v479_v18 = vld [vmem:[%s8350_s0 + $0x428] sm:$0xff] }
  0x69   : > { %1218 = vst.msk [vmem:[#allocation2 + $0x1e8] sm:$0xff] %vm1157_vm0, %v1127_v0  ;;  %v1016_v15 = vmax.f32 %v836_v3, 0.0  ;;  %v838_v17 = vadd.f32 %v658_v13, %v478_v11  ;;  %v481_v19 = vld [vmem:[%s8350_s0 + $0x438] sm:$0xff]  ;;  %v1129_v20 = vpack.c.bf16 %v1013_v8, %v1011_v1  ;;  %v840_v23 = vadd.f32 %v660_v16, %v480_v12  ;;  %v659_v24 = vld [vmem:[%s8351_s1 + $0x428] sm:$0xff]  ;;  %v482_v26 = vld [vmem:[%s8350_s0 + $0x440] sm:$0xff] }
  0x6a   : > { %1219 = vst [vmem:[#allocation2 + $0x1f0] sm:$0xff] %v1128_v7  ;;  %v1015_v21 = vmax.f32 %v835_v9, 0.0  ;;  %v1017_v22 = vmax.f32 %v837_v10, 0.0  ;;  %v661_v25 = vld [vmem:[%s8351_s1 + $0x438] sm:$0xff]  ;;  %v839_v29 = vadd.f32 %v659_v24, %v479_v18  ;;  %v484_v31 = vld [vmem:[%s8350_s0 + $0x450] sm:$0xff]  ;;  %v662_v32 = vld [vmem:[%s8351_s1 + $0x440] sm:$0xff] }
  0x6b   : > { %v1130_v27 = vpack.c.bf16 %v1016_v15, %v1014_v14  ;;  %v1018_v28 = vmax.f32 %v838_v17, 0.0  ;;  %v841_v30 = vadd.f32 %v661_v25, %v481_v19  ;;  %v664_v33 = vld [vmem:[%s8351_s1 + $0x450] sm:$0xff]  ;;  %1220 = vst.msk [vmem:[#allocation2 + $0x1f8] sm:$0xff] %vm1157_vm0, %v1129_v20  ;;  %v1020_v35 = vmax.f32 %v840_v23, 0.0  ;;  %v483_v38 = vld [vmem:[%s8350_s0 + $0x448] sm:$0xff]  ;;  %v485_v39 = vld [vmem:[%s8350_s0 + $0x458] sm:$0xff] }
  0x6c   : > { %v1131_v34 = vpack.c.bf16 %v1017_v22, %v1015_v21  ;;  %v842_v36 = vadd.f32 %v662_v32, %v482_v26  ;;  %v844_v37 = vadd.f32 %v664_v33, %v484_v31  ;;  %v663_v40 = vld [vmem:[%s8351_s1 + $0x448] sm:$0xff]  ;;  %v1019_v41 = vmax.f32 %v839_v29, 0.0  ;;  %v665_v43 = vld [vmem:[%s8351_s1 + $0x458] sm:$0xff]  ;;  %v486_v45 = vld [vmem:[%s8350_s0 + $0x460] sm:$0xff] }
  0x6d   : > { %1221 = vst [vmem:[#allocation2 + $0x200] sm:$0xff] %v1130_v27  ;;  %v1021_v42 = vmax.f32 %v841_v30, 0.0  ;;  %v843_v44 = vadd.f32 %v663_v40, %v483_v38  ;;  %v488_v46 = vld [vmem:[%s8350_s0 + $0x470] sm:$0xff]  ;;  %v1132_v47 = vpack.c.bf16 %v1020_v35, %v1018_v28  ;;  %v845_v50 = vadd.f32 %v665_v43, %v485_v39  ;;  %v666_v51 = vld [vmem:[%s8351_s1 + $0x460] sm:$0xff]  ;;  %v487_v53 = vld [vmem:[%s8350_s0 + $0x468] sm:$0xff] }
  0x6e   : > { %1222 = vst.msk [vmem:[#allocation2 + $0x208] sm:$0xff] %vm1157_vm0, %v1131_v34  ;;  %v1022_v48 = vmax.f32 %v842_v36, 0.0  ;;  %v1024_v49 = vmax.f32 %v844_v37, 0.0  ;;  %v668_v52 = vld [vmem:[%s8351_s1 + $0x470] sm:$0xff]  ;;  %v846_v56 = vadd.f32 %v666_v51, %v486_v45  ;;  %v489_v58 = vld [vmem:[%s8350_s0 + $0x478] sm:$0xff]  ;;  %v667_v59 = vld [vmem:[%s8351_s1 + $0x468] sm:$0xff] }
  0x6f   : > { %v1133_v54 = vpack.c.bf16 %v1021_v42, %v1019_v41  ;;  %v1023_v55 = vmax.f32 %v843_v44, 0.0  ;;  %v848_v57 = vadd.f32 %v668_v52, %v488_v46  ;;  %v669_v60 = vld [vmem:[%s8351_s1 + $0x478] sm:$0xff]  ;;  %1223 = vst [vmem:[#allocation2 + $0x210] sm:$0xff] %v1132_v47  ;;  %v1025_v62 = vmax.f32 %v845_v50, 0.0  ;;  %v490_v1 = vld [vmem:[%s8350_s0 + $0x480] sm:$0xff]  ;;  %v492_v2 = vld [vmem:[%s8350_s0 + $0x490] sm:$0xff] }
  0x70   : > { %v1134_v61 = vpack.c.bf16 %v1024_v49, %v1022_v48  ;;  %v847_v63 = vadd.f32 %v667_v59, %v487_v53  ;;  %v849_v0 = vadd.f32 %v669_v60, %v489_v58  ;;  %v670_v3 = vld [vmem:[%s8351_s1 + $0x480] sm:$0xff]  ;;  %v1026_v4 = vmax.f32 %v846_v56, 0.0  ;;  %v672_v6 = vld [vmem:[%s8351_s1 + $0x490] sm:$0xff]  ;;  %v491_v8 = vld [vmem:[%s8350_s0 + $0x488] sm:$0xff] }
  0x71   : > { %1224 = vst.msk [vmem:[#allocation2 + $0x218] sm:$0xff] %vm1157_vm0, %v1133_v54  ;;  %v1028_v5 = vmax.f32 %v848_v57, 0.0  ;;  %v850_v7 = vadd.f32 %v670_v3, %v490_v1  ;;  %v493_v9 = vld [vmem:[%s8350_s0 + $0x498] sm:$0xff]  ;;  %v1135_v10 = vpack.c.bf16 %v1025_v62, %v1023_v55  ;;  %v852_v13 = vadd.f32 %v672_v6, %v492_v2  ;;  %v671_v14 = vld [vmem:[%s8351_s1 + $0x488] sm:$0xff]  ;;  %v494_v16 = vld [vmem:[%s8350_s0 + $0x4a0] sm:$0xff] }
  0x72   : > { %1225 = vst [vmem:[#allocation2 + $0x220] sm:$0xff] %v1134_v61  ;;  %v1027_v11 = vmax.f32 %v847_v63, 0.0  ;;  %v1029_v12 = vmax.f32 %v849_v0, 0.0  ;;  %v673_v15 = vld [vmem:[%s8351_s1 + $0x498] sm:$0xff]  ;;  %v851_v19 = vadd.f32 %v671_v14, %v491_v8  ;;  %v496_v21 = vld [vmem:[%s8350_s0 + $0x4b0] sm:$0xff]  ;;  %v674_v22 = vld [vmem:[%s8351_s1 + $0x4a0] sm:$0xff] }
  0x73   : > { %v1136_v17 = vpack.c.bf16 %v1028_v5, %v1026_v4  ;;  %v1030_v18 = vmax.f32 %v850_v7, 0.0  ;;  %v853_v20 = vadd.f32 %v673_v15, %v493_v9  ;;  %v676_v23 = vld [vmem:[%s8351_s1 + $0x4b0] sm:$0xff]  ;;  %1226 = vst.msk [vmem:[#allocation2 + $0x228] sm:$0xff] %vm1157_vm0, %v1135_v10  ;;  %v1032_v25 = vmax.f32 %v852_v13, 0.0  ;;  %v495_v28 = vld [vmem:[%s8350_s0 + $0x4a8] sm:$0xff]  ;;  %v497_v29 = vld [vmem:[%s8350_s0 + $0x4b8] sm:$0xff] }
  0x74   : > { %v1137_v24 = vpack.c.bf16 %v1029_v12, %v1027_v11  ;;  %v854_v26 = vadd.f32 %v674_v22, %v494_v16  ;;  %v856_v27 = vadd.f32 %v676_v23, %v496_v21  ;;  %v675_v30 = vld [vmem:[%s8351_s1 + $0x4a8] sm:$0xff]  ;;  %v1031_v31 = vmax.f32 %v851_v19, 0.0  ;;  %v677_v33 = vld [vmem:[%s8351_s1 + $0x4b8] sm:$0xff]  ;;  %v498_v35 = vld [vmem:[%s8350_s0 + $0x4c0] sm:$0xff] }
  0x75   : > { %1227 = vst [vmem:[#allocation2 + $0x230] sm:$0xff] %v1136_v17  ;;  %v1033_v32 = vmax.f32 %v853_v20, 0.0  ;;  %v855_v34 = vadd.f32 %v675_v30, %v495_v28  ;;  %v500_v36 = vld [vmem:[%s8350_s0 + $0x4d0] sm:$0xff]  ;;  %v1138_v37 = vpack.c.bf16 %v1032_v25, %v1030_v18  ;;  %v857_v40 = vadd.f32 %v677_v33, %v497_v29  ;;  %v678_v41 = vld [vmem:[%s8351_s1 + $0x4c0] sm:$0xff]  ;;  %v499_v43 = vld [vmem:[%s8350_s0 + $0x4c8] sm:$0xff] }
  0x76   : > { %1228 = vst.msk [vmem:[#allocation2 + $0x238] sm:$0xff] %vm1157_vm0, %v1137_v24  ;;  %v1034_v38 = vmax.f32 %v854_v26, 0.0  ;;  %v1036_v39 = vmax.f32 %v856_v27, 0.0  ;;  %v680_v42 = vld [vmem:[%s8351_s1 + $0x4d0] sm:$0xff]  ;;  %v858_v46 = vadd.f32 %v678_v41, %v498_v35  ;;  %v501_v48 = vld [vmem:[%s8350_s0 + $0x4d8] sm:$0xff]  ;;  %v679_v49 = vld [vmem:[%s8351_s1 + $0x4c8] sm:$0xff] }
  0x77   : > { %v1139_v44 = vpack.c.bf16 %v1033_v32, %v1031_v31  ;;  %v1035_v45 = vmax.f32 %v855_v34, 0.0  ;;  %v860_v47 = vadd.f32 %v680_v42, %v500_v36  ;;  %v681_v50 = vld [vmem:[%s8351_s1 + $0x4d8] sm:$0xff]  ;;  %1229 = vst [vmem:[#allocation2 + $0x240] sm:$0xff] %v1138_v37  ;;  %v1037_v52 = vmax.f32 %v857_v40, 0.0  ;;  %v502_v55 = vld [vmem:[%s8350_s0 + $0x4e0] sm:$0xff]  ;;  %v504_v56 = vld [vmem:[%s8350_s0 + $0x4f0] sm:$0xff] }
  0x78   : > { %v1140_v51 = vpack.c.bf16 %v1036_v39, %v1034_v38  ;;  %v859_v53 = vadd.f32 %v679_v49, %v499_v43  ;;  %v861_v54 = vadd.f32 %v681_v50, %v501_v48  ;;  %v682_v57 = vld [vmem:[%s8351_s1 + $0x4e0] sm:$0xff]  ;;  %v1038_v58 = vmax.f32 %v858_v46, 0.0  ;;  %v684_v60 = vld [vmem:[%s8351_s1 + $0x4f0] sm:$0xff]  ;;  %v503_v62 = vld [vmem:[%s8350_s0 + $0x4e8] sm:$0xff] }
  0x79   : > { %1230 = vst.msk [vmem:[#allocation2 + $0x248] sm:$0xff] %vm1157_vm0, %v1139_v44  ;;  %v1040_v59 = vmax.f32 %v860_v47, 0.0  ;;  %v862_v61 = vadd.f32 %v682_v57, %v502_v55  ;;  %v505_v63 = vld [vmem:[%s8350_s0 + $0x4f8] sm:$0xff]  ;;  %v1141_v0 = vpack.c.bf16 %v1037_v52, %v1035_v45  ;;  %v864_v3 = vadd.f32 %v684_v60, %v504_v56  ;;  %v683_v4 = vld [vmem:[%s8351_s1 + $0x4e8] sm:$0xff]  ;;  %v506_v6 = vld [vmem:[%s8350_s0 + $0x500] sm:$0xff] }
  0x7a   : > { %1231 = vst [vmem:[#allocation2 + $0x250] sm:$0xff] %v1140_v51  ;;  %v1039_v1 = vmax.f32 %v859_v53, 0.0  ;;  %v1041_v2 = vmax.f32 %v861_v54, 0.0  ;;  %v685_v5 = vld [vmem:[%s8351_s1 + $0x4f8] sm:$0xff]  ;;  %v863_v9 = vadd.f32 %v683_v4, %v503_v62  ;;  %v508_v11 = vld [vmem:[%s8350_s0 + $0x510] sm:$0xff]  ;;  %v686_v12 = vld [vmem:[%s8351_s1 + $0x500] sm:$0xff] }
  0x7b   : > { %v1142_v7 = vpack.c.bf16 %v1040_v59, %v1038_v58  ;;  %v1042_v8 = vmax.f32 %v862_v61, 0.0  ;;  %v865_v10 = vadd.f32 %v685_v5, %v505_v63  ;;  %v688_v13 = vld [vmem:[%s8351_s1 + $0x510] sm:$0xff]  ;;  %1232 = vst.msk [vmem:[#allocation2 + $0x258] sm:$0xff] %vm1157_vm0, %v1141_v0  ;;  %v1044_v15 = vmax.f32 %v864_v3, 0.0  ;;  %v507_v18 = vld [vmem:[%s8350_s0 + $0x508] sm:$0xff]  ;;  %v509_v19 = vld [vmem:[%s8350_s0 + $0x518] sm:$0xff] }
  0x7c   : > { %v1143_v14 = vpack.c.bf16 %v1041_v2, %v1039_v1  ;;  %v866_v16 = vadd.f32 %v686_v12, %v506_v6  ;;  %v868_v17 = vadd.f32 %v688_v13, %v508_v11  ;;  %v687_v20 = vld [vmem:[%s8351_s1 + $0x508] sm:$0xff]  ;;  %v1043_v21 = vmax.f32 %v863_v9, 0.0  ;;  %v689_v23 = vld [vmem:[%s8351_s1 + $0x518] sm:$0xff]  ;;  %v510_v25 = vld [vmem:[%s8350_s0 + $0x520] sm:$0xff] }
  0x7d   : > { %1233 = vst [vmem:[#allocation2 + $0x260] sm:$0xff] %v1142_v7  ;;  %v1045_v22 = vmax.f32 %v865_v10, 0.0  ;;  %v867_v24 = vadd.f32 %v687_v20, %v507_v18  ;;  %v512_v26 = vld [vmem:[%s8350_s0 + $0x530] sm:$0xff]  ;;  %v1144_v27 = vpack.c.bf16 %v1044_v15, %v1042_v8  ;;  %v869_v30 = vadd.f32 %v689_v23, %v509_v19  ;;  %v690_v31 = vld [vmem:[%s8351_s1 + $0x520] sm:$0xff]  ;;  %v511_v33 = vld [vmem:[%s8350_s0 + $0x528] sm:$0xff] }
  0x7e   : > { %1234 = vst.msk [vmem:[#allocation2 + $0x268] sm:$0xff] %vm1157_vm0, %v1143_v14  ;;  %v1046_v28 = vmax.f32 %v866_v16, 0.0  ;;  %v1048_v29 = vmax.f32 %v868_v17, 0.0  ;;  %v692_v32 = vld [vmem:[%s8351_s1 + $0x530] sm:$0xff]  ;;  %v870_v36 = vadd.f32 %v690_v31, %v510_v25  ;;  %v513_v38 = vld [vmem:[%s8350_s0 + $0x538] sm:$0xff]  ;;  %v691_v39 = vld [vmem:[%s8351_s1 + $0x528] sm:$0xff] }
  0x7f   : > { %v1145_v34 = vpack.c.bf16 %v1045_v22, %v1043_v21  ;;  %v1047_v35 = vmax.f32 %v867_v24, 0.0  ;;  %v872_v37 = vadd.f32 %v692_v32, %v512_v26  ;;  %v693_v40 = vld [vmem:[%s8351_s1 + $0x538] sm:$0xff]  ;;  %1235 = vst [vmem:[#allocation2 + $0x270] sm:$0xff] %v1144_v27  ;;  %v1049_v42 = vmax.f32 %v869_v30, 0.0  ;;  %v514_v45 = vld [vmem:[%s8350_s0 + $0x540] sm:$0xff]  ;;  %v516_v46 = vld [vmem:[%s8350_s0 + $0x550] sm:$0xff] }
  0x80   : > { %v1146_v41 = vpack.c.bf16 %v1048_v29, %v1046_v28  ;;  %v871_v43 = vadd.f32 %v691_v39, %v511_v33  ;;  %v873_v44 = vadd.f32 %v693_v40, %v513_v38  ;;  %v694_v47 = vld [vmem:[%s8351_s1 + $0x540] sm:$0xff]  ;;  %v1050_v48 = vmax.f32 %v870_v36, 0.0  ;;  %v696_v50 = vld [vmem:[%s8351_s1 + $0x550] sm:$0xff]  ;;  %v515_v52 = vld [vmem:[%s8350_s0 + $0x548] sm:$0xff] }
  0x81   : > { %1236 = vst.msk [vmem:[#allocation2 + $0x278] sm:$0xff] %vm1157_vm0, %v1145_v34  ;;  %v1052_v49 = vmax.f32 %v872_v37, 0.0  ;;  %v874_v51 = vadd.f32 %v694_v47, %v514_v45  ;;  %v517_v53 = vld [vmem:[%s8350_s0 + $0x558] sm:$0xff]  ;;  %v1147_v54 = vpack.c.bf16 %v1049_v42, %v1047_v35  ;;  %v876_v57 = vadd.f32 %v696_v50, %v516_v46  ;;  %v695_v58 = vld [vmem:[%s8351_s1 + $0x548] sm:$0xff]  ;;  %v518_v60 = vld [vmem:[%s8350_s0 + $0x560] sm:$0xff] }
  0x82   : > { %1237 = vst [vmem:[#allocation2 + $0x280] sm:$0xff] %v1146_v41  ;;  %v1051_v55 = vmax.f32 %v871_v43, 0.0  ;;  %v1053_v56 = vmax.f32 %v873_v44, 0.0  ;;  %v697_v59 = vld [vmem:[%s8351_s1 + $0x558] sm:$0xff]  ;;  %v875_v63 = vadd.f32 %v695_v58, %v515_v52  ;;  %v520_v1 = vld [vmem:[%s8350_s0 + $0x570] sm:$0xff]  ;;  %v698_v2 = vld [vmem:[%s8351_s1 + $0x560] sm:$0xff] }
  0x83   : > { %v1148_v61 = vpack.c.bf16 %v1052_v49, %v1050_v48  ;;  %v1054_v62 = vmax.f32 %v874_v51, 0.0  ;;  %v877_v0 = vadd.f32 %v697_v59, %v517_v53  ;;  %v700_v3 = vld [vmem:[%s8351_s1 + $0x570] sm:$0xff]  ;;  %1238 = vst.msk [vmem:[#allocation2 + $0x288] sm:$0xff] %vm1157_vm0, %v1147_v54  ;;  %v1056_v5 = vmax.f32 %v876_v57, 0.0  ;;  %v519_v8 = vld [vmem:[%s8350_s0 + $0x568] sm:$0xff]  ;;  %v521_v9 = vld [vmem:[%s8350_s0 + $0x578] sm:$0xff] }
  0x84   : > { %v1149_v4 = vpack.c.bf16 %v1053_v56, %v1051_v55  ;;  %v878_v6 = vadd.f32 %v698_v2, %v518_v60  ;;  %v880_v7 = vadd.f32 %v700_v3, %v520_v1  ;;  %v699_v10 = vld [vmem:[%s8351_s1 + $0x568] sm:$0xff]  ;;  %v1055_v11 = vmax.f32 %v875_v63, 0.0  ;;  %v701_v13 = vld [vmem:[%s8351_s1 + $0x578] sm:$0xff]  ;;  %v522_v15 = vld [vmem:[%s8350_s0 + $0x580] sm:$0xff] }
  0x85   : > { %1239 = vst [vmem:[#allocation2 + $0x290] sm:$0xff] %v1148_v61  ;;  %v1057_v12 = vmax.f32 %v877_v0, 0.0  ;;  %v879_v14 = vadd.f32 %v699_v10, %v519_v8  ;;  %v524_v16 = vld [vmem:[%s8350_s0 + $0x590] sm:$0xff]  ;;  %v1150_v17 = vpack.c.bf16 %v1056_v5, %v1054_v62  ;;  %v881_v20 = vadd.f32 %v701_v13, %v521_v9  ;;  %v702_v21 = vld [vmem:[%s8351_s1 + $0x580] sm:$0xff]  ;;  %v523_v23 = vld [vmem:[%s8350_s0 + $0x588] sm:$0xff] }
  0x86   : > { %1240 = vst.msk [vmem:[#allocation2 + $0x298] sm:$0xff] %vm1157_vm0, %v1149_v4  ;;  %v1058_v18 = vmax.f32 %v878_v6, 0.0  ;;  %v1060_v19 = vmax.f32 %v880_v7, 0.0  ;;  %v704_v22 = vld [vmem:[%s8351_s1 + $0x590] sm:$0xff]  ;;  %v882_v26 = vadd.f32 %v702_v21, %v522_v15  ;;  %v525_v28 = vld [vmem:[%s8350_s0 + $0x598] sm:$0xff]  ;;  %v703_v29 = vld [vmem:[%s8351_s1 + $0x588] sm:$0xff] }
  0x87   : > { %v1151_v24 = vpack.c.bf16 %v1057_v12, %v1055_v11  ;;  %v1059_v25 = vmax.f32 %v879_v14, 0.0  ;;  %v884_v27 = vadd.f32 %v704_v22, %v524_v16  ;;  %v705_v30 = vld [vmem:[%s8351_s1 + $0x598] sm:$0xff]  ;;  %1241 = vst [vmem:[#allocation2 + $0x2a0] sm:$0xff] %v1150_v17  ;;  %v1061_v32 = vmax.f32 %v881_v20, 0.0 }
  0x88   : > { %v1152_v31 = vpack.c.bf16 %v1060_v19, %v1058_v18  ;;  %v883_v33 = vadd.f32 %v703_v29, %v523_v23  ;;  %v885_v34 = vadd.f32 %v705_v30, %v525_v28  ;;  %v1062_v35 = vmax.f32 %v882_v26, 0.0 }
  0x89   : > { %1242 = vst.msk [vmem:[#allocation2 + $0x2a8] sm:$0xff] %vm1157_vm0, %v1151_v24  ;;  %v1064_v36 = vmax.f32 %v884_v27, 0.0  ;;  %v1153_v37 = vpack.c.bf16 %v1061_v32, %v1059_v25 }
  0x8a   : > { %1243 = vst [vmem:[#allocation2 + $0x2b0] sm:$0xff] %v1152_v31  ;;  %v1063_v38 = vmax.f32 %v883_v33, 0.0  ;;  %v1065_v39 = vmax.f32 %v885_v34, 0.0 }
  0x8b   : > { %v1154_v40 = vpack.c.bf16 %v1064_v36, %v1062_v35  ;;  %1244 = vst.msk [vmem:[#allocation2 + $0x2b8] sm:$0xff] %vm1157_vm0, %v1153_v37 }
  0x8c   : > { %v1155_v41 = vpack.c.bf16 %v1065_v39, %v1063_v38 }
  0x8d   : > { %1245 = vst [vmem:[#allocation2 + $0x2c0] sm:$0xff] %v1154_v40 }
  0x8e   : > { %1246 = vst.msk [vmem:[#allocation2 + $0x2c8] sm:$0xff] %vm1157_vm0, %v1155_v41 }
  0x8f PF: > { %v1383_v42 = vld [vmem:[#allocation2 + $0x8] sm:$0xff]  ;;  %v6679_v45 = vld [vmem:[#allocation2 + $0x100] sm:$0xff]  ;;  %v1385_v46 = vld [vmem:[#allocation2 + $0x18] sm:$0xff]  ;;  %vm2130_vm1 = vcmask 654336   ;;  %vm2983_vm2 = vcmask 556032  }
  0x90   : > { %v6676_v43 = vld [vmem:[#allocation2 + $0x108] sm:$0xff]  ;;  %2200 = vmatprep.subr.bf16.mxu1 %v1383_v42  ;;  %v6681_v47 = vld [vmem:[#allocation2 + $0x118] sm:$0xff]  ;;  %v1384_v48 = vld [vmem:[#allocation2 + $0x10] sm:$0xff] }
  0x91   : > { %2461 = vmatprep.subr.bf16.mxu0 %v6676_v43  ;;  %v6685_v49 = vld [vmem:[#allocation2 + $0x110] sm:$0xff]  ;;  %v1387_v50 = vld [vmem:[#allocation2 + $0x28] sm:$0xff]  ;;  %v1386_v52 = vld [vmem:[#allocation2 + $0x20] sm:$0xff] }
  0x92   : > { %2462 = vmatpush1.bf16.msra.mxu0 %v6679_v45  ;;  %v6687_v51 = vld [vmem:[#allocation2 + $0x128] sm:$0xff]  ;;  %v6691_v53 = vld [vmem:[#allocation2 + $0x120] sm:$0xff]  ;;  %v1389_v54 = vld [vmem:[#allocation2 + $0x38] sm:$0xff] }
  0x93   : > { %2463 = vmatprep.subr.bf16.mxu0 %v6681_v47  ;;  %v6693_v55 = vld [vmem:[#allocation2 + $0x138] sm:$0xff]  ;;  %v1388_v56 = vld [vmem:[#allocation2 + $0x30] sm:$0xff]  ;;  %v1391_v58 = vld [vmem:[#allocation2 + $0x48] sm:$0xff] }
  0x94   : > { %v6697_v57 = vld [vmem:[#allocation2 + $0x130] sm:$0xff]  ;;  %v6699_v59 = vld [vmem:[#allocation2 + $0x148] sm:$0xff]  ;;  %v1390_v60 = vld [vmem:[#allocation2 + $0x40] sm:$0xff] }
  0x95   : > { %v6703_v61 = vld [vmem:[#allocation2 + $0x140] sm:$0xff]  ;;  %v1393_v62 = vld [vmem:[#allocation2 + $0x58] sm:$0xff]  ;;  %v1392_v0 = vld [vmem:[#allocation2 + $0x50] sm:$0xff] }
  0x96   : > { %v1382_v44 = vld [vmem:[#allocation2] sm:$0xff]  ;;  %2464 = vmatpush1.bf16.msra.mxu0 %v6685_v49  ;;  %v6705_v63 = vld [vmem:[#allocation2 + $0x158] sm:$0xff]  ;;  %v6709_v1 = vld [vmem:[#allocation2 + $0x150] sm:$0xff] }
  0x97   : > { %2201 = vmatpush1.bf16.msra.mxu1 %v1382_v44  ;;  %2465 = vmatprep.subr.bf16.mxu0 %v6687_v51  ;;  %v1395_v2 = vld [vmem:[#allocation2 + $0x68] sm:$0xff]  ;;  %v1394_v4 = vld [vmem:[#allocation2 + $0x60] sm:$0xff]  ;;  %v1397_v8 = vld [vmem:[#allocation2 + $0x78] sm:$0xff] }
  0x98   : > { %2202 = vmatprep.subr.bf16.mxu1 %v1385_v46  ;;  %v6711_v3 = vld [vmem:[#allocation2 + $0x168] sm:$0xff]  ;;  %v5166_v5 = vld [vmem:[%s5544_s8 + $0x4] ss:$24 sps:$4 sm:$0xff]   ;;  %v1396_v10 = vld [vmem:[#allocation2 + $0x70] sm:$0xff] }
  0x99   : > { %v6716_v6 = vld [vmem:[#allocation2 + $0x160] sm:$0xff]  ;;  %v6719_v9 = vld [vmem:[#allocation2 + $0x178] sm:$0xff]  ;;  %2232 = vmatprep.mubr.bf16.mxu1 %v5166_v5  ;;  %v6723_v11 = vld [vmem:[#allocation2 + $0x170] sm:$0xff] }
  0x9a   : > { %2466 = vmatpush1.bf16.msra.mxu0 %v6691_v53  ;;  %v5169_v7 = vld [vmem:[%s5544_s8 + $0xc] ss:$24 sps:$4 sm:$0xff]   ;;  %v1401_v16 = vld [vmem:[#allocation2 + $0x98] sm:$0xff]  ;;  %v1400_v18 = vld [vmem:[#allocation2 + $0x90] sm:$0xff] }
  0x9b   : > { %2203 = vmatpush1.bf16.msra.mxu1 %v1384_v48  ;;  %2467 = vmatprep.subr.bf16.mxu0 %v6693_v55  ;;  %v1399_v12 = vld [vmem:[#allocation2 + $0x88] sm:$0xff]  ;;  %v1398_v14 = vld [vmem:[#allocation2 + $0x80] sm:$0xff]  ;;  %v6731_v17 = vld [vmem:[#allocation2 + $0x198] sm:$0xff] }
  0x9c   : > { %2204 = vmatprep.subr.bf16.mxu1 %v1387_v50  ;;  %2493 = vmatprep.mubr.bf16.mxu0 %v5169_v7  ;;  %v6725_v13 = vld [vmem:[#allocation2 + $0x188] sm:$0xff]  ;;  %v6728_v15 = vld [vmem:[#allocation2 + $0x180] sm:$0xff]  ;;  %v6734_v19 = vld [vmem:[#allocation2 + $0x190] sm:$0xff] }
  0x9d   : > { %v1403_v20 = vld [vmem:[#allocation2 + $0xa8] sm:$0xff]  ;;  %v1402_v22 = vld [vmem:[#allocation2 + $0xa0] sm:$0xff]  ;;  %v1405_v24 = vld [vmem:[#allocation2 + $0xb8] sm:$0xff] }
  0x9e   : > { %2468 = vmatpush1.bf16.msra.mxu0 %v6697_v57  ;;  %v6737_v21 = vld [vmem:[#allocation2 + $0x1a8] sm:$0xff]  ;;  %v6741_v23 = vld [vmem:[#allocation2 + $0x1a0] sm:$0xff]  ;;  %v6743_v25 = vld [vmem:[#allocation2 + $0x1b8] sm:$0xff] }
  0x9f   : > { %2205 = vmatpush1.bf16.msra.mxu1 %v1386_v52  ;;  %2469 = vmatprep.subr.bf16.mxu0 %v6699_v59  ;;  %v1404_v26 = vld [vmem:[#allocation2 + $0xb0] sm:$0xff]  ;;  %v1407_v28 = vld [vmem:[#allocation2 + $0xc8] sm:$0xff]  ;;  %v1406_v30 = vld [vmem:[#allocation2 + $0xc0] sm:$0xff] }
  0xa0   : > { %2206 = vmatprep.subr.bf16.mxu1 %v1389_v54  ;;  %v6747_v27 = vld [vmem:[#allocation2 + $0x1b0] sm:$0xff]  ;;  %v6749_v29 = vld [vmem:[#allocation2 + $0x1c8] sm:$0xff]  ;;  %v6753_v31 = vld [vmem:[#allocation2 + $0x1c0] sm:$0xff] }
  0xa1   : > { %v1409_v32 = vld [vmem:[#allocation2 + $0xd8] sm:$0xff]  ;;  %v1408_v34 = vld [vmem:[#allocation2 + $0xd0] sm:$0xff]  ;;  %v1411_v36 = vld [vmem:[#allocation2 + $0xe8] sm:$0xff] }
  0xa2   : > { %2470 = vmatpush1.bf16.msra.mxu0 %v6703_v61  ;;  %v6755_v33 = vld [vmem:[#allocation2 + $0x1d8] sm:$0xff]  ;;  %v6759_v35 = vld [vmem:[#allocation2 + $0x1d0] sm:$0xff]  ;;  %v6761_v37 = vld [vmem:[#allocation2 + $0x1e8] sm:$0xff] }
  0xa3   : > { %2207 = vmatpush1.bf16.msra.mxu1 %v1388_v56  ;;  %2471 = vmatprep.subr.bf16.mxu0 %v6705_v63  ;;  %v1410_v38 = vld [vmem:[#allocation2 + $0xe0] sm:$0xff]  ;;  %v1413_v40 = vld [vmem:[#allocation2 + $0xf8] sm:$0xff]  ;;  %v1412_v42 = vld [vmem:[#allocation2 + $0xf0] sm:$0xff] }
  0xa4   : > { %2208 = vmatprep.subr.bf16.mxu1 %v1391_v58  ;;  %v6764_v39 = vld [vmem:[#allocation2 + $0x1e0] sm:$0xff]  ;;  %v6767_v41 = vld [vmem:[#allocation2 + $0x1f8] sm:$0xff]  ;;  %v6771_v44 = vld [vmem:[#allocation2 + $0x1f0] sm:$0xff] }
  0xa5   : > { %v1447_v46 = vld [vmem:[#allocation2 + $0x208] sm:$0xff]  ;;  %v5164_v48 = vld [vmem:[%s5544_s8] ss:$24 sps:$4 sm:$0xff]   ;;  %v5172_v56 = vld [vmem:[%s5544_s8 + $0x3c] ss:$24 sps:$4 sm:$0xff]  }
  0xa6   : > { %2472 = vmatpush1.bf16.msra.mxu0 %v6709_v1  ;;  %v5167_v50 = vld [vmem:[%s5544_s8 + $0x8] ss:$24 sps:$4 sm:$0xff]   ;;  %v5170_v54 = vld [vmem:[%s5544_s8 + $0x34] ss:$24 sps:$4 sm:$0xff]   ;;  %v1449_v58 = vld [vmem:[#allocation2 + $0x218] sm:$0xff] }
  0xa7   : > { %2209 = vmatpush1.bf16.msra.mxu1 %v1390_v60  ;;  %2473 = vmatprep.subr.bf16.mxu0 %v6711_v3  ;;  %v1446_v52 = vld [vmem:[#allocation2 + $0x200] sm:$0xff]  ;;  %v1448_v60 = vld [vmem:[#allocation2 + $0x210] sm:$0xff]  ;;  %v1453_v7 = vld [vmem:[#allocation2 + $0x238] sm:$0xff] }
  0xa8   : > { %2210 = vmatprep.subr.bf16.mxu1 %v1393_v62  ;;  %v1451_v62 = vld [vmem:[#allocation2 + $0x228] sm:$0xff]  ;;  %v1450_v5 = vld [vmem:[#allocation2 + $0x220] sm:$0xff] }
  0xaa   : > { %2474 = vmatpush1.bf16.msra.mxu0 %v6716_v6 }
  0xab   : > { %2211 = vmatpush1.bf16.msra.mxu1 %v1392_v0  ;;  %2475 = vmatprep.subr.bf16.mxu0 %v6719_v9  ;;  %v5174_v0 = vld [vmem:[%s5544_s8 + $0x30] ss:$24 sps:$4 sm:$0xff]  }
  0xac   : > { %2212 = vmatprep.subr.bf16.mxu1 %v1395_v2  ;;  %v5175_v2 = vld [vmem:[%s5544_s8 + $0x38] ss:$24 sps:$4 sm:$0xff]  }
  0xae   : > { %2476 = vmatpush1.bf16.msra.mxu0 %v6723_v11 }
  0xaf   : > { %2213 = vmatpush1.bf16.msra.mxu1 %v1394_v4  ;;  %2477 = vmatprep.subr.bf16.mxu0 %v6725_v13  ;;  %v5176_v4 = vld [vmem:[%s5544_s8 + $0x64] ss:$24 sps:$4 sm:$0xff]  }
  0xb0   : > { %2214 = vmatprep.subr.bf16.mxu1 %v1397_v8  ;;  %v5181_v8 = vld [vmem:[%s5544_s8 + $0x68] ss:$24 sps:$4 sm:$0xff]  }
  0xb2   : > { %2478 = vmatpush1.bf16.msra.mxu0 %v6728_v15 }
  0xb3   : > { %2215 = vmatpush1.bf16.msra.mxu1 %v1396_v10  ;;  %2479 = vmatprep.subr.bf16.mxu0 %v6731_v17  ;;  %v5182_v10 = vld [vmem:[%s5544_s8 + $0x94] ss:$24 sps:$4 sm:$0xff]  }
  0xb4   : > { %2216 = vmatprep.subr.bf16.mxu1 %v1399_v12  ;;  %v1455_v12 = vld [vmem:[#allocation2 + $0x248] sm:$0xff] }
  0xb6   : > { %2480 = vmatpush1.bf16.msra.mxu0 %v6734_v19 }
  0xb7   : > { %2217 = vmatpush1.bf16.msra.mxu1 %v1398_v14  ;;  %2481 = vmatprep.subr.bf16.mxu0 %v6737_v21  ;;  %v1454_v14 = vld [vmem:[#allocation2 + $0x240] sm:$0xff] }
  0xb8   : > { %2218 = vmatprep.subr.bf16.mxu1 %v1401_v16  ;;  %v5186_v16 = vld [vmem:[%s5544_s8 + $0x90] ss:$24 sps:$4 sm:$0xff]  }
  0xba   : > { %2482 = vmatpush1.bf16.msra.mxu0 %v6741_v23 }
  0xbb   : > { %2219 = vmatpush1.bf16.msra.mxu1 %v1400_v18  ;;  %2483 = vmatprep.subr.bf16.mxu0 %v6743_v25  ;;  %v5187_v18 = vld [vmem:[%s5544_s8 + $0x98] ss:$24 sps:$4 sm:$0xff]  }
  0xbc   : > { %2220 = vmatprep.subr.bf16.mxu1 %v1403_v20  ;;  %v1459_v20 = vld [vmem:[#allocation2 + $0x268] sm:$0xff] }
  0xbe   : > { %2484 = vmatpush1.bf16.msra.mxu0 %v6747_v27 }
  0xbf   : > { %2221 = vmatpush1.bf16.msra.mxu1 %v1402_v22  ;;  %2485 = vmatprep.subr.bf16.mxu0 %v6749_v29  ;;  %v5190_v22 = vld [vmem:[%s5544_s8 + $0xcc] ss:$24 sps:$4 sm:$0xff]  }
  0xc0   : > { %2222 = vmatprep.subr.bf16.mxu1 %v1405_v24  ;;  %v1461_v24 = vld [vmem:[#allocation2 + $0x278] sm:$0xff] }
  0xc2   : > { %2486 = vmatpush1.bf16.msra.mxu0 %v6753_v31 }
  0xc3   : > { %2223 = vmatpush1.bf16.msra.mxu1 %v1404_v26  ;;  %2487 = vmatprep.subr.bf16.mxu0 %v6755_v33  ;;  %v5192_v26 = vld [vmem:[%s5544_s8 + $0xc0] ss:$24 sps:$4 sm:$0xff]  }
  0xc4   : > { %2224 = vmatprep.subr.bf16.mxu1 %v1407_v28  ;;  %v5193_v28 = vld [vmem:[%s5544_s8 + $0xc8] ss:$24 sps:$4 sm:$0xff]  }
  0xc6   : > { %2488 = vmatpush1.bf16.msra.mxu0 %v6759_v35 }
  0xc7   : > { %2225 = vmatpush1.bf16.msra.mxu1 %v1406_v30  ;;  %2489 = vmatprep.subr.bf16.mxu0 %v6761_v37  ;;  %v1463_v30 = vld [vmem:[#allocation2 + $0x288] sm:$0xff] }
  0xc8   : > { %2226 = vmatprep.subr.bf16.mxu1 %v1409_v32  ;;  %v1465_v32 = vld [vmem:[#allocation2 + $0x298] sm:$0xff] }
  0xca   : > { %2490 = vmatpush1.bf16.msra.mxu0 %v6764_v39 }
  0xcb   : > { %2227 = vmatpush1.bf16.msra.mxu1 %v1408_v34  ;;  %2491 = vmatprep.subr.bf16.mxu0 %v6767_v41  ;;  %v5198_v34 = vld [vmem:[%s5544_s8 + $0xf0] ss:$24 sps:$4 sm:$0xff]  }
  0xcc   : > { %2228 = vmatprep.subr.bf16.mxu1 %v1411_v36  ;;  %v5199_v36 = vld [vmem:[%s5544_s8 + $0xf8] ss:$24 sps:$4 sm:$0xff]  }
  0xce   : > { %2492 = vmatpush1.bf16.msra.mxu0 %v6771_v44 }
  0xcf   : > { %2229 = vmatpush1.bf16.msra.mxu1 %v1410_v38  ;;  %2722 = vmatprep.subr.bf16.mxu0 %v1447_v46  ;;  %v1467_v38 = vld [vmem:[#allocation2 + $0x2a8] sm:$0xff]  ;;  %v5208_v46 = vld [vmem:[%s5544_s8 + $0x15c] ss:$24 sps:$4 sm:$0xff]  }
  0xd0   : > { %2230 = vmatprep.subr.bf16.mxu1 %v1413_v40  ;;  %v1469_v40 = vld [vmem:[#allocation2 + $0x2b8] sm:$0xff] }
  0xd1   : > { %2494 = vmatmul.mubr.bf16.vlgmr.msra.gmra.mrb[0].mxu0 %v5167_v50  ;;  %v5214_v50 = vld [vmem:[%s5544_s8 + $0x18c] ss:$24 sps:$4 sm:$0xff]  }
  0xd2   : > { %2723 = vmatpush1.bf16.msra.mxu0 %v1446_v52  ;;  %2503 = vmatprep.mubr.bf16.mxu0 %v5172_v56  ;;  %v5226_v52 = vld [vmem:[%s5544_s8 + $0x1ec] ss:$24 sps:$4 sm:$0xff]   ;;  %v5232_v56 = vld [vmem:[%s5544_s8 + $0x21c] ss:$24 sps:$4 sm:$0xff]  }
  0xd3   : > { %2231 = vmatpush1.bf16.msra.mxu1 %v1412_v42  ;;  %2724 = vmatprep.subr.bf16.mxu0 %v1449_v58  ;;  %v1471_v42 = vld [vmem:[#allocation2 + $0x2c8] sm:$0xff] }
  0xd4   : > { %4922 = vmatprep.subr.bf16.mxu1 %v6676_v43  ;;  %v5178_v43 = vld [vmem:[%s5544_s8 + $0x6c] ss:$24 sps:$4 sm:$0xff]   ;;  %v5234_v58 = vld [vmem:[%s5544_s8 + $0x210] ss:$24 sps:$4 sm:$0xff]  }
  0xd6   : > { %2233 = vmatmul.mubr.bf16.vlgmr.msra.gmra.mrb[0].mxu1 %v5164_v48  ;;  %2725 = vmatpush1.bf16.msra.mxu0 %v1448_v60  ;;  %v1470_v48 = vld [vmem:[#allocation2 + $0x2c0] sm:$0xff]  ;;  %v5235_v60 = vld [vmem:[%s5544_s8 + $0x218] ss:$24 sps:$4 sm:$0xff]  }
  0xd7   : > { %2242 = vmatprep.mubr.bf16.mxu1 %v5170_v54  ;;  %4938 = vmatpush1.bf16.msra.mxu1 %v6679_v45  ;;  %v5180_v45 = vld [vmem:[%s5544_s8 + $0x60] ss:$24 sps:$4 sm:$0xff]  }
  0xd8   : > { %4923 = vmatprep.subr.bf16.mxu1 %v6681_v47  ;;  %2726 = vmatprep.subr.bf16.mxu0 %v1451_v62  ;;  %v1452_v47 = vld [vmem:[#allocation2 + $0x230] sm:$0xff]  ;;  %v5229_v54 = vld [vmem:[%s5544_s8 + $0x1e8] ss:$24 sps:$4 sm:$0xff]   ;;  %v5236_v62 = vld [vmem:[%s5544_s8 + $0x244] ss:$24 sps:$4 sm:$0xff]  }
  0xd9   : > { %2504 = vmatmul.mubr.bf16.gmra.mrb[4].mxu0 %v5175_v2  ;;  %v5238_v2 = vld [vmem:[%s5544_s8 + $0x10] ss:$24 sps:$4 sm:$0xff]  }
  0xda   : > { %2513 = vmatprep.mubr.bf16.mxu0 %v5178_v43  ;;  %2727 = vmatpush1.bf16.msra.mxu0 %v1450_v5  ;;  %v5242_v43 = vld [vmem:[%s5544_s8 + $0x274] ss:$24 sps:$4 sm:$0xff]   ;;  %v5244_v5 = vld [vmem:[%s5544_s8 + $0x44] ss:$24 sps:$4 sm:$0xff]  }
  0xdb   : > { %4939 = vmatpush1.bf16.msra.mxu1 %v6685_v49  ;;  %2728 = vmatprep.subr.bf16.mxu0 %v1453_v7  ;;  %v5184_v49 = vld [vmem:[%s5544_s8 + $0x9c] ss:$24 sps:$4 sm:$0xff]   ;;  %v5246_v7 = vld [vmem:[%s5544_s8 + $0x270] ss:$24 sps:$4 sm:$0xff]  }
  0xdc   : > { %4924 = vmatprep.subr.bf16.mxu1 %v6687_v51  ;;  %v1457_v51 = vld [vmem:[#allocation2 + $0x258] sm:$0xff] }
  0xde   : > { %2243 = vmatmul.mubr.bf16.gmra.mrb[4].mxu1 %v5174_v0  ;;  %2729 = vmatpush1.bf16.msra.mxu0 %v1452_v47  ;;  %v5240_v0 = vld [vmem:[%s5544_s8 + $0x14] ss:$24 sps:$4 sm:$0xff]   ;;  %v5248_v47 = vld [vmem:[%s5544_s8 + $0x2a4] ss:$24 sps:$4 sm:$0xff]  }
  0xdf   : > { %2252 = vmatprep.mubr.bf16.mxu1 %v5176_v4  ;;  %4940 = vmatpush1.bf16.msra.mxu1 %v6691_v53  ;;  %v1456_v53 = vld [vmem:[#allocation2 + $0x250] sm:$0xff]  ;;  %v5241_v4 = vld [vmem:[%s5544_s8 + $0x240] ss:$24 sps:$4 sm:$0xff]  }
  0xe0   : > { %4925 = vmatprep.subr.bf16.mxu1 %v6693_v55  ;;  %2730 = vmatprep.subr.bf16.mxu0 %v1455_v12  ;;  %v5188_v55 = vld [vmem:[%s5544_s8 + $0xc4] ss:$24 sps:$4 sm:$0xff]   ;;  %v5253_v12 = vld [vmem:[%s5544_s8 + $0x70] ss:$24 sps:$4 sm:$0xff]  }
  0xe1   : > { %2514 = vmatmul.mubr.bf16.gmra.mrb[8].mxu0 %v5181_v8  ;;  %v5250_v8 = vld [vmem:[%s5544_s8 + $0x74] ss:$24 sps:$4 sm:$0xff]  }
  0xe2   : > { %2523 = vmatprep.mubr.bf16.mxu0 %v5184_v49  ;;  %2731 = vmatpush1.bf16.msra.mxu0 %v1454_v14  ;;  %v5254_v49 = vld [vmem:[%s5544_s8 + $0x2d4] ss:$24 sps:$4 sm:$0xff]   ;;  %v5256_v14 = vld [vmem:[%s5544_s8 + $0xa4] ss:$24 sps:$4 sm:$0xff]  }
  0xe3   : > { %4941 = vmatpush1.bf16.msra.mxu1 %v6697_v57  ;;  %2732 = vmatprep.subr.bf16.mxu0 %v1457_v51  ;;  %v1458_v57 = vld [vmem:[#allocation2 + $0x260] sm:$0xff]  ;;  %v5258_v51 = vld [vmem:[%s5544_s8 + $0x2d0] ss:$24 sps:$4 sm:$0xff]  }
  0xe4   : > { %4926 = vmatprep.subr.bf16.mxu1 %v6699_v59  ;;  %v1460_v59 = vld [vmem:[#allocation2 + $0x270] sm:$0xff] }
  0xe6   : > { %2253 = vmatmul.mubr.bf16.gmra.mrb[8].mxu1 %v5180_v45  ;;  %2733 = vmatpush1.bf16.msra.mxu0 %v1456_v53  ;;  %v5247_v45 = vld [vmem:[%s5544_s8 + $0x40] ss:$24 sps:$4 sm:$0xff]  }
  0xe7   : > { %2262 = vmatprep.mubr.bf16.mxu1 %v5182_v10  ;;  %4942 = vmatpush1.bf16.msra.mxu1 %v6703_v61  ;;  %v5194_v61 = vld [vmem:[%s5544_s8 + $0xf4] ss:$24 sps:$4 sm:$0xff]   ;;  %v5252_v10 = vld [vmem:[%s5544_s8 + $0x2a0] ss:$24 sps:$4 sm:$0xff]  }
  0xe8   : > { %4927 = vmatprep.subr.bf16.mxu1 %v6705_v63  ;;  %2734 = vmatprep.subr.bf16.mxu0 %v1459_v20  ;;  %v5196_v63 = vld [vmem:[%s5544_s8 + $0xfc] ss:$24 sps:$4 sm:$0xff]   ;;  %v5259_v53 = vld [vmem:[%s5544_s8 + $0xa0] ss:$24 sps:$4 sm:$0xff]  }
  0xe9   : > { %2524 = vmatmul.mubr.bf16.gmra.mrb[12].mxu0 %v5187_v18  ;;  %v5262_v18 = vld [vmem:[%s5544_s8 + $0xd4] ss:$24 sps:$4 sm:$0xff]   ;;  %v5264_v20 = vld [vmem:[%s5544_s8 + $0x300] ss:$24 sps:$4 sm:$0xff]  }
  0xea   : > { %2533 = vmatprep.mubr.bf16.mxu0 %v5190_v22  ;;  %2735 = vmatpush1.bf16.msra.mxu0 %v1458_v57  ;;  %v5266_v22 = vld [vmem:[%s5544_s8 + $0x334] ss:$24 sps:$4 sm:$0xff]   ;;  %v5268_v57 = vld [vmem:[%s5544_s8 + $0x104] ss:$24 sps:$4 sm:$0xff]  }
  0xeb   : > { %4943 = vmatpush1.bf16.msra.mxu1 %v6709_v1  ;;  %2736 = vmatprep.subr.bf16.mxu0 %v1461_v24  ;;  %v1462_v1 = vld [vmem:[#allocation2 + $0x280] sm:$0xff]  ;;  %v5270_v24 = vld [vmem:[%s5544_s8 + $0x330] ss:$24 sps:$4 sm:$0xff]  }
  0xec   : > { %4928 = vmatprep.subr.bf16.mxu1 %v6711_v3  ;;  %v1464_v3 = vld [vmem:[#allocation2 + $0x290] sm:$0xff] }
  0xee   : > { %2263 = vmatmul.mubr.bf16.gmra.mrb[12].mxu1 %v5186_v16  ;;  %2737 = vmatpush1.bf16.msra.mxu0 %v1460_v59  ;;  %v5260_v16 = vld [vmem:[%s5544_s8 + $0x304] ss:$24 sps:$4 sm:$0xff]   ;;  %v5271_v59 = vld [vmem:[%s5544_s8 + $0x100] ss:$24 sps:$4 sm:$0xff]  }
  0xef   : > { %2272 = vmatprep.mubr.bf16.mxu1 %v5188_v55  ;;  %4944 = vmatpush1.bf16.msra.mxu1 %v6716_v6  ;;  %v5200_v6 = vld [vmem:[%s5544_s8 + $0x124] ss:$24 sps:$4 sm:$0xff]   ;;  %v5265_v55 = vld [vmem:[%s5544_s8 + $0xd0] ss:$24 sps:$4 sm:$0xff]  }
  0xf0   : > { %4929 = vmatprep.subr.bf16.mxu1 %v6719_v9  ;;  %2738 = vmatprep.subr.bf16.mxu0 %v1463_v30  ;;  %v5202_v9 = vld [vmem:[%s5544_s8 + $0x12c] ss:$24 sps:$4 sm:$0xff]   ;;  %v5276_v30 = vld [vmem:[%s5544_s8 + $0x360] ss:$24 sps:$4 sm:$0xff]  }
  0xf1   : > { %2534 = vmatmul.mubr.bf16.gmra.mrb[16].mxu0 %v5193_v28  ;;  %v5274_v28 = vld [vmem:[%s5544_s8 + $0x134] ss:$24 sps:$4 sm:$0xff]  }
  0xf2   : > { %2543 = vmatprep.mubr.bf16.mxu0 %v5196_v63  ;;  %2739 = vmatpush1.bf16.msra.mxu0 %v1462_v1  ;;  %v5278_v63 = vld [vmem:[%s5544_s8 + $0x394] ss:$24 sps:$4 sm:$0xff]   ;;  %v5280_v1 = vld [vmem:[%s5544_s8 + $0x164] ss:$24 sps:$4 sm:$0xff]  }
  0xf3   : > { %4945 = vmatpush1.bf16.msra.mxu1 %v6723_v11  ;;  %2740 = vmatprep.subr.bf16.mxu0 %v1465_v32  ;;  %v1466_v11 = vld [vmem:[#allocation2 + $0x2a0] sm:$0xff]  ;;  %v5282_v32 = vld [vmem:[%s5544_s8 + $0x390] ss:$24 sps:$4 sm:$0xff]  }
  0xf4   : > { %4930 = vmatprep.subr.bf16.mxu1 %v6725_v13  ;;  %v1468_v13 = vld [vmem:[#allocation2 + $0x2b0] sm:$0xff] }
  0xf6   : > { %2273 = vmatmul.mubr.bf16.gmra.mrb[16].mxu1 %v5192_v26  ;;  %2741 = vmatpush1.bf16.msra.mxu0 %v1464_v3  ;;  %v5272_v26 = vld [vmem:[%s5544_s8 + $0x364] ss:$24 sps:$4 sm:$0xff]   ;;  %v5283_v3 = vld [vmem:[%s5544_s8 + $0x160] ss:$24 sps:$4 sm:$0xff]  }
  0xf7   : > { %2282 = vmatprep.mubr.bf16.mxu1 %v5194_v61  ;;  %4946 = vmatpush1.bf16.msra.mxu1 %v6728_v15  ;;  %v5204_v15 = vld [vmem:[%s5544_s8 + $0x120] ss:$24 sps:$4 sm:$0xff]   ;;  %v5277_v61 = vld [vmem:[%s5544_s8 + $0x130] ss:$24 sps:$4 sm:$0xff]  }
  0xf8   : > { %4931 = vmatprep.subr.bf16.mxu1 %v6731_v17  ;;  %2742 = vmatprep.subr.bf16.mxu0 %v1467_v38  ;;  %v5205_v17 = vld [vmem:[%s5544_s8 + $0x128] ss:$24 sps:$4 sm:$0xff]  }
  0xf9   : > { %2544 = vmatmul.mubr.bf16.gmra.mrb[20].mxu0 %v5199_v36  ;;  %v5286_v36 = vld [vmem:[%s5544_s8 + $0x194] ss:$24 sps:$4 sm:$0xff]   ;;  %v5288_v38 = vld [vmem:[%s5544_s8 + $0x3c0] ss:$24 sps:$4 sm:$0xff]  }
  0xfa   : > { %2553 = vmatprep.mubr.bf16.mxu0 %v5202_v9  ;;  %2743 = vmatpush1.bf16.msra.mxu0 %v1466_v11  ;;  %v5290_v9 = vld [vmem:[%s5544_s8 + $0x3f4] ss:$24 sps:$4 sm:$0xff]   ;;  %v5292_v11 = vld [vmem:[%s5544_s8 + $0x1c4] ss:$24 sps:$4 sm:$0xff]  }
  0xfb   : > { %4947 = vmatpush1.bf16.msra.mxu1 %v6734_v19  ;;  %2744 = vmatprep.subr.bf16.mxu0 %v1469_v40  ;;  %v5206_v19 = vld [vmem:[%s5544_s8 + $0x154] ss:$24 sps:$4 sm:$0xff]   ;;  %v1379_v40 = vld [vmem:[%s5544_s8 + $0x420] sm:$0xff] }
  0xfc   : > { %4932 = vmatprep.subr.bf16.mxu1 %v6737_v21  ;;  %v5210_v21 = vld [vmem:[%s5544_s8 + $0x150] ss:$24 sps:$4 sm:$0xff]  }
  0xfe   : > { %2283 = vmatmul.mubr.bf16.gmra.mrb[20].mxu1 %v5198_v34  ;;  %2745 = vmatpush1.bf16.msra.mxu0 %v1468_v13  ;;  %v5284_v34 = vld [vmem:[%s5544_s8 + $0x3c4] ss:$24 sps:$4 sm:$0xff]   ;;  %v5294_v13 = vld [vmem:[%s5544_s8 + $0x3f0] ss:$24 sps:$4 sm:$0xff]  }
  0xff   : > { %2292 = vmatprep.mubr.bf16.mxu1 %v5200_v6  ;;  %4948 = vmatpush1.bf16.msra.mxu1 %v6741_v23  ;;  %v5211_v23 = vld [vmem:[%s5544_s8 + $0x158] ss:$24 sps:$4 sm:$0xff]  }
 0x100   : > { %4933 = vmatprep.subr.bf16.mxu1 %v6743_v25  ;;  %2746 = vmatprep.subr.bf16.mxu0 %v1471_v42  ;;  %v5212_v25 = vld [vmem:[%s5544_s8 + $0x184] ss:$24 sps:$4 sm:$0xff]   ;;  %v5289_v6 = vld [vmem:[%s5544_s8 + $0x190] ss:$24 sps:$4 sm:$0xff]   ;;  %v5297_v42 = vld [vmem:[%s5544_s8 + $0x1f4] ss:$24 sps:$4 sm:$0xff]  }
 0x101   : > { %2554 = vmatmul.mubr.bf16.gmra.mrb[24].mxu0 %v5205_v17  ;;  %v4891_v17 = vcombine.high %v1379_v40, %v1379_v40 }
 0x102   : > { %2563 = vmatprep.mubr.bf16.mxu0 %v5208_v46  ;;  %2747 = vmatpush1.bf16.msra.mxu0 %v1470_v48  ;;  %v5300_v46 = vld [vmem:[%s5544_s8 + $0x1f0] ss:$24 sps:$4 sm:$0xff]   ;;  %v5303_v48 = vld [vmem:[%s5544_s8 + $0x24c] ss:$24 sps:$4 sm:$0xff]  }
 0x103   : > { %4949 = vmatpush1.bf16.msra.mxu1 %v6747_v27  ;;  %v5216_v27 = vld [vmem:[%s5544_s8 + $0x180] ss:$24 sps:$4 sm:$0xff]  }
 0x104   : > { %4934 = vmatprep.subr.bf16.mxu1 %v6749_v29  ;;  %v5217_v29 = vld [vmem:[%s5544_s8 + $0x188] ss:$24 sps:$4 sm:$0xff]  }
 0x106   : > { %2293 = vmatmul.mubr.bf16.gmra.mrb[24].mxu1 %v5204_v15  ;;  %v5295_v15 = vld [vmem:[%s5544_s8 + $0x1c0] ss:$24 sps:$4 sm:$0xff]  }
 0x107   : > { %2302 = vmatprep.mubr.bf16.mxu1 %v5206_v19  ;;  %4950 = vmatpush1.bf16.msra.mxu1 %v6753_v31  ;;  %v5218_v31 = vld [vmem:[%s5544_s8 + $0x1b4] ss:$24 sps:$4 sm:$0xff]   ;;  %v4890_v19 = vcombine.low %v1379_v40, %v1379_v40 }
 0x108   : > { %4935 = vmatprep.subr.bf16.mxu1 %v6755_v33  ;;  %v5220_v33 = vld [vmem:[%s5544_s8 + $0x1bc] ss:$24 sps:$4 sm:$0xff]  }
 0x109   : > { %2564 = vmatmul.mubr.bf16.gmra.mrb[28].mxu0 %v5211_v23  ;;  %v5301_v23 = vld [vmem:[%s5544_s8 + $0x248] ss:$24 sps:$4 sm:$0xff]  }
 0x10a   : > { %2573 = vmatprep.mubr.bf16.mxu0 %v5214_v50  ;;  %v5307_v50 = vld [vmem:[%s5544_s8 + $0x27c] ss:$24 sps:$4 sm:$0xff]  }
 0x10b   : > { %4951 = vmatpush1.bf16.msra.mxu1 %v6759_v35  ;;  %v5222_v35 = vld [vmem:[%s5544_s8 + $0x1b0] ss:$24 sps:$4 sm:$0xff]  }
 0x10c   : > { %4936 = vmatprep.subr.bf16.mxu1 %v6761_v37  ;;  %v5223_v37 = vld [vmem:[%s5544_s8 + $0x1b8] ss:$24 sps:$4 sm:$0xff]  }
 0x10e   : > { %2303 = vmatmul.mubr.bf16.gmra.mrb[28].mxu1 %v5210_v21  ;;  %v5304_v21 = vld [vmem:[%s5544_s8 + $0x224] ss:$24 sps:$4 sm:$0xff]  }
 0x10f   : > { %2312 = vmatprep.mubr.bf16.mxu1 %v5212_v25  ;;  %4952 = vmatpush1.bf16.msra.mxu1 %v6764_v39  ;;  %v5224_v39 = vld [vmem:[%s5544_s8 + $0x1e4] ss:$24 sps:$4 sm:$0xff]   ;;  %v5306_v25 = vld [vmem:[%s5544_s8 + $0x220] ss:$24 sps:$4 sm:$0xff]  }
 0x110   : > { %4937 = vmatprep.subr.bf16.mxu1 %v6767_v41  ;;  %v5228_v41 = vld [vmem:[%s5544_s8 + $0x1e0] ss:$24 sps:$4 sm:$0xff]  }
 0x111   : > { %2574 = vmatmul.mubr.bf16.gmra.mrb[32].mxu0 %v5217_v29  ;;  %v5311_v29 = vld [vmem:[%s5544_s8 + $0x278] ss:$24 sps:$4 sm:$0xff]  }
 0x112   : > { %2583 = vmatprep.mubr.bf16.mxu0 %v5220_v33  ;;  %v5313_v33 = vld [vmem:[%s5544_s8 + $0x2ac] ss:$24 sps:$4 sm:$0xff]  }
 0x113   : > { %4953 = vmatpush1.bf16.msra.mxu1 %v6771_v44  ;;  %v5230_v44 = vld [vmem:[%s5544_s8 + $0x214] ss:$24 sps:$4 sm:$0xff]  }
 0x116   : > { %2313 = vmatmul.mubr.bf16.gmra.mrb[32].mxu1 %v5216_v27  ;;  %v5309_v27 = vld [vmem:[%s5544_s8 + $0x254] ss:$24 sps:$4 sm:$0xff]  }
 0x117   : > { %2322 = vmatprep.mubr.bf16.mxu1 %v5218_v31  ;;  %v5312_v31 = vld [vmem:[%s5544_s8 + $0x250] ss:$24 sps:$4 sm:$0xff]  }
 0x119   : > { %2584 = vmatmul.mubr.bf16.gmra.mrb[36].mxu0 %v5223_v37  ;;  %v5317_v37 = vld [vmem:[%s5544_s8 + $0x2a8] ss:$24 sps:$4 sm:$0xff]  }
 0x11a   : > { %2593 = vmatprep.mubr.bf16.mxu0 %v5226_v52  ;;  %v5319_v52 = vld [vmem:[%s5544_s8 + $0x2dc] ss:$24 sps:$4 sm:$0xff]  }
 0x11e   : > { %2323 = vmatmul.mubr.bf16.gmra.mrb[36].mxu1 %v5222_v35  ;;  %v5315_v35 = vld [vmem:[%s5544_s8 + $0x284] ss:$24 sps:$4 sm:$0xff]  }
 0x11f   : > { %2332 = vmatprep.mubr.bf16.mxu1 %v5224_v39  ;;  %v5318_v39 = vld [vmem:[%s5544_s8 + $0x280] ss:$24 sps:$4 sm:$0xff]  }
 0x121   : > { %2594 = vmatmul.mubr.bf16.gmra.mrb[40].mxu0 %v5229_v54  ;;  %v5323_v54 = vld [vmem:[%s5544_s8 + $0x2d8] ss:$24 sps:$4 sm:$0xff]  }
 0x122   : > { %2603 = vmatprep.mubr.bf16.mxu0 %v5232_v56  ;;  %v5325_v56 = vld [vmem:[%s5544_s8 + $0x30c] ss:$24 sps:$4 sm:$0xff]  }
 0x126   : > { %2333 = vmatmul.mubr.bf16.gmra.mrb[40].mxu1 %v5228_v41  ;;  %v5321_v41 = vld [vmem:[%s5544_s8 + $0x2b4] ss:$24 sps:$4 sm:$0xff]  }
 0x127   : > { %2342 = vmatprep.mubr.bf16.mxu1 %v5230_v44  ;;  %v5324_v44 = vld [vmem:[%s5544_s8 + $0x2b0] ss:$24 sps:$4 sm:$0xff]  }
 0x129   : > { %2604 = vmatmul.mubr.bf16.gmra.mrb[44].mxu0 %v5235_v60 }
 0x12a   : > { %4896 = vmatprep.mubr.msk.bf16.mxu0 %vm2130_vm1, %v5240_v0  ;;  %v5330_v0 = vld [vmem:[%s5544_s8 + $0x2e0] ss:$24 sps:$4 sm:$0xff]  }
 0x12e   : > { %2343 = vmatmul.mubr.bf16.gmra.mrb[44].mxu1 %v5234_v58  ;;  %v5327_v58 = vld [vmem:[%s5544_s8 + $0x2e4] ss:$24 sps:$4 sm:$0xff]  }
 0x12f   : > { %2352 = vmatprep.mubr.bf16.mxu1 %v5236_v62  ;;  %v5329_v62 = vld [vmem:[%s5544_s8 + $0x308] ss:$24 sps:$4 sm:$0xff]  }
 0x131   : > { %2755 = vmatmul.mubr.bf16.vlgmr.msra.gmra.mrb[0].mxu0 %v5238_v2 }
 0x132   : > { %4897 = vmatprep.mubr.msk.bf16.mxu0 %vm2130_vm1, %v5244_v5  ;;  %v5333_v5 = vld [vmem:[%s5544_s8 + $0x314] ss:$24 sps:$4 sm:$0xff]  }
 0x136   : > { %2353 = vmatmul.mubr.bf16.gmra.mrb[48].mxu1 %v5241_v4 }
 0x137   : > { %2362 = vmatprep.mubr.bf16.mxu1 %v5242_v43  ;;  %v5331_v43 = vld [vmem:[%s5544_s8 + $0x33c] ss:$24 sps:$4 sm:$0xff]  }
 0x139   : > { %2765 = vmatmul.mubr.bf16.gmra.mrb[4].mxu0 %v5247_v45 }
 0x13a   : > { %4898 = vmatprep.mubr.msk.bf16.mxu0 %vm2130_vm1, %v5250_v8  ;;  %v5336_v8 = vld [vmem:[%s5544_s8 + $0x310] ss:$24 sps:$4 sm:$0xff]  }
 0x13e   : > { %2363 = vmatmul.mubr.bf16.gmra.mrb[52].mxu1 %v5246_v7 }
 0x13f   : > { %2372 = vmatprep.mubr.bf16.mxu1 %v5248_v47  ;;  %v5335_v47 = vld [vmem:[%s5544_s8 + $0x338] ss:$24 sps:$4 sm:$0xff]  }
 0x141   : > { %2775 = vmatmul.mubr.bf16.gmra.mrb[8].mxu0 %v5253_v12 }
 0x142   : > { %4899 = vmatprep.mubr.msk.bf16.mxu0 %vm2130_vm1, %v5256_v14  ;;  %v5339_v14 = vld [vmem:[%s5544_s8 + $0x344] ss:$24 sps:$4 sm:$0xff]  }
 0x146   : > { %2373 = vmatmul.mubr.bf16.gmra.mrb[56].mxu1 %v5252_v10 }
 0x147   : > { %2382 = vmatprep.mubr.bf16.mxu1 %v5254_v49  ;;  %v5337_v49 = vld [vmem:[%s5544_s8 + $0x36c] ss:$24 sps:$4 sm:$0xff]  }
 0x149   : > { %2785 = vmatmul.mubr.bf16.gmra.mrb[12].mxu0 %v5259_v53 }
 0x14a   : > { %4900 = vmatprep.mubr.msk.bf16.mxu0 %vm2130_vm1, %v5262_v18  ;;  %v5342_v18 = vld [vmem:[%s5544_s8 + $0x340] ss:$24 sps:$4 sm:$0xff]  }
 0x14e   : > { %2383 = vmatmul.mubr.bf16.gmra.mrb[60].mxu1 %v5258_v51 }
 0x14f   : > { %2392 = vmatprep.mubr.bf16.mxu1 %v5260_v16  ;;  %v5341_v16 = vld [vmem:[%s5544_s8 + $0x368] ss:$24 sps:$4 sm:$0xff]  }
 0x151   : > { %2795 = vmatmul.mubr.bf16.gmra.mrb[16].mxu0 %v5265_v55 }
 0x152   : > { %4901 = vmatprep.mubr.msk.bf16.mxu0 %vm2130_vm1, %v5268_v57  ;;  %v5345_v57 = vld [vmem:[%s5544_s8 + $0x374] ss:$24 sps:$4 sm:$0xff]  }
 0x156   : > { %2393 = vmatmul.mubr.bf16.gmra.mrb[64].mxu1 %v5264_v20 }
 0x157   : > { %2402 = vmatprep.mubr.bf16.mxu1 %v5266_v22  ;;  %v5343_v22 = vld [vmem:[%s5544_s8 + $0x39c] ss:$24 sps:$4 sm:$0xff]  }
 0x159   : > { %2805 = vmatmul.mubr.bf16.gmra.mrb[20].mxu0 %v5271_v59 }
 0x15a   : > { %4902 = vmatprep.mubr.msk.bf16.mxu0 %vm2130_vm1, %v5274_v28  ;;  %v5348_v28 = vld [vmem:[%s5544_s8 + $0x370] ss:$24 sps:$4 sm:$0xff]  }
 0x15e   : > { %2403 = vmatmul.mubr.bf16.gmra.mrb[68].mxu1 %v5270_v24 }
 0x15f   : > { %2412 = vmatprep.mubr.bf16.mxu1 %v5272_v26  ;;  %v5347_v26 = vld [vmem:[%s5544_s8 + $0x398] ss:$24 sps:$4 sm:$0xff]  }
 0x161   : > { %2815 = vmatmul.mubr.bf16.gmra.mrb[24].mxu0 %v5277_v61 }
 0x162   : > { %4903 = vmatprep.mubr.msk.bf16.mxu0 %vm2130_vm1, %v5280_v1  ;;  %v5351_v1 = vld [vmem:[%s5544_s8 + $0x3a4] ss:$24 sps:$4 sm:$0xff]  }
 0x166   : > { %2413 = vmatmul.mubr.bf16.gmra.mrb[72].mxu1 %v5276_v30 }
 0x167   : > { %2422 = vmatprep.mubr.bf16.mxu1 %v5278_v63  ;;  %v5349_v63 = vld [vmem:[%s5544_s8 + $0x3cc] ss:$24 sps:$4 sm:$0xff]  }
 0x169   : > { %2825 = vmatmul.mubr.bf16.gmra.mrb[28].mxu0 %v5283_v3 }
 0x16a   : > { %4904 = vmatprep.mubr.msk.bf16.mxu0 %vm2130_vm1, %v5286_v36  ;;  %v5354_v36 = vld [vmem:[%s5544_s8 + $0x3a0] ss:$24 sps:$4 sm:$0xff]  }
 0x16e   : > { %2423 = vmatmul.mubr.bf16.gmra.mrb[76].mxu1 %v5282_v32 }
 0x16f   : > { %2432 = vmatprep.mubr.bf16.mxu1 %v5284_v34  ;;  %v5353_v34 = vld [vmem:[%s5544_s8 + $0x3c8] ss:$24 sps:$4 sm:$0xff]  }
 0x171   : > { %2835 = vmatmul.mubr.bf16.gmra.mrb[32].mxu0 %v5289_v6 }
 0x172   : > { %4905 = vmatprep.mubr.msk.bf16.mxu0 %vm2130_vm1, %v5292_v11  ;;  %v5357_v11 = vld [vmem:[%s5544_s8 + $0x3d4] ss:$24 sps:$4 sm:$0xff]  }
 0x176   : > { %2433 = vmatmul.mubr.bf16.gmra.mrb[80].mxu1 %v5288_v38 }
 0x177   : > { %2442 = vmatprep.mubr.bf16.mxu1 %v5290_v9  ;;  %v5355_v9 = vld [vmem:[%s5544_s8 + $0x3fc] ss:$24 sps:$4 sm:$0xff]  }
 0x179   : > { %2845 = vmatmul.mubr.bf16.gmra.mrb[36].mxu0 %v5295_v15 }
 0x17a   : > { %4906 = vmatprep.mubr.msk.bf16.mxu0 %vm2130_vm1, %v5297_v42  ;;  %v5360_v42 = vld [vmem:[%s5544_s8 + $0x3d0] ss:$24 sps:$4 sm:$0xff]  }
 0x17e   : > { %2443 = vmatmul.mubr.bf16.gmra.mrb[84].mxu1 %v5294_v13  ;;  %v1380_v13 = vld [vmem:[%s5544_s8 + $0x428] sm:$0xff] }
 0x17f   : > { %2452 = vmatprep.mubr.bf16.mxu1 %v4891_v17  ;;  %v5359_v17 = vld [vmem:[%s5544_s8 + $0x3f8] ss:$24 sps:$4 sm:$0xff]  }
 0x181   : > { %2855 = vmatmul.mubr.bf16.gmra.mrb[40].mxu0 %v5300_v46 }
 0x182   : > { %4907 = vmatprep.mubr.msk.bf16.mxu0 %vm2130_vm1, %v5304_v21  ;;  %v5362_v21 = vld [vmem:[%s5544_s8 + $0x404] ss:$24 sps:$4 sm:$0xff]  }
 0x186   : > { %2453 = vmatmul.mubr.bf16.gmra.mrb[88].mxu1 %v4890_v19 }
 0x187   : > { %2613 = vmatprep.mubr.bf16.mxu1 %v5303_v48  ;;  %v4893_v48 = vcombine.high %v1380_v13, %v1380_v13 }
 0x189   : > { %2865 = vmatmul.mubr.bf16.gmra.mrb[44].mxu0 %v5306_v25  ;;  %v1381_v25 = vld [vmem:[%s5544_s8 + $0x430] sm:$0xff] }
 0x18a   : > { %4908 = vmatprep.mubr.msk.bf16.mxu0 %vm2130_vm1, %v5309_v27  ;;  %v4892_v27 = vcombine.low %v1380_v13, %v1380_v13 }
 0x18e   : > { %2614 = vmatmul.mubr.bf16.vlgmr.msra.gmra.mrb[48].mxu1 %v5301_v23 }
 0x18f   : > { %2623 = vmatprep.mubr.bf16.mxu1 %v5307_v50 }
 0x191   : > { %2875 = vmatmul.mubr.bf16.gmra.mrb[48].mxu0 %v5312_v31 }
 0x192   : > { %4909 = vmatprep.mubr.msk.bf16.mxu0 %vm2130_vm1, %v5315_v35  ;;  %v4895_v35 = vcombine.high %v1381_v25, %v1381_v25 }
 0x196   : > { %2624 = vmatmul.mubr.bf16.gmra.mrb[52].mxu1 %v5311_v29  ;;  %v5365_v29 = vld [vmem:[%s5544_s8 + $0x400] ss:$24 sps:$4 sm:$0xff]  }
 0x197   : > { %2633 = vmatprep.mubr.bf16.mxu1 %v5313_v33 }
 0x199   : > { %2885 = vmatmul.mubr.bf16.gmra.mrb[52].mxu0 %v5318_v39 }
 0x19a   : > { %4910 = vmatprep.mubr.msk.bf16.mxu0 %vm2130_vm1, %v5321_v41 }
 0x19e   : > { %2634 = vmatmul.mubr.bf16.gmra.mrb[56].mxu1 %v5317_v37 }
 0x19f   : > { %2643 = vmatprep.mubr.bf16.mxu1 %v5319_v52  ;;  %v4894_v52 = vcombine.low %v1381_v25, %v1381_v25 }
 0x1a1   : > { %2895 = vmatmul.mubr.bf16.gmra.mrb[56].mxu0 %v5324_v44 }
 0x1a2   : > { %4911 = vmatprep.mubr.msk.bf16.mxu0 %vm2130_vm1, %v5327_v58 }
 0x1a6   : > { %2644 = vmatmul.mubr.bf16.gmra.mrb[60].mxu1 %v5323_v54 }
 0x1a7   : > { %2653 = vmatprep.mubr.bf16.mxu1 %v5325_v56 }
 0x1a9   : > { %v6929_v60 = vpop.f32.mrb[0].mxu1  ;;  %2905 = vmatmul.mubr.bf16.gmra.mrb[60].mxu0 %v5330_v0 }
 0x1aa   : > { %v6933_v2 = vpop.f32.mrb[1].mxu1  ;;  %4912 = vmatprep.mubr.msk.bf16.mxu0 %vm2130_vm1, %v5333_v5 }
 0x1ab   : > { %v6935_v4 = vpop.f32.mrb[2].mxu1 }
 0x1ac   : > { %v6939_v7 = vpop.f32.mrb[3].mxu1 }
 0x1ae   : > { %2654 = vmatmul.mubr.bf16.gmra.mrb[64].mxu1 %v5329_v62 }
 0x1af   : > { %2663 = vmatprep.mubr.bf16.mxu1 %v5331_v43 }
 0x1b1   : > { %v6942_v45 = vpop.f32.mrb[4].mxu1  ;;  %2915 = vmatmul.mubr.bf16.gmra.mrb[64].mxu0 %v5336_v8 }
 0x1b2   : > { %v6946_v10 = vpop.f32.mrb[5].mxu1  ;;  %4913 = vmatprep.mubr.msk.bf16.mxu0 %vm2130_vm1, %v5339_v14 }
 0x1b3   : > { %v6948_v12 = vpop.f32.mrb[6].mxu1 }
 0x1b4   : > { %v6952_v51 = vpop.f32.mrb[7].mxu1 }
 0x1b6   : > { %2664 = vmatmul.mubr.bf16.gmra.mrb[68].mxu1 %v5335_v47 }
 0x1b7   : > { %2673 = vmatprep.mubr.bf16.mxu1 %v5337_v49 }
 0x1b9   : > { %v6955_v53 = vpop.f32.mrb[8].mxu1  ;;  %2925 = vmatmul.mubr.bf16.gmra.mrb[68].mxu0 %v5342_v18 }
 0x1ba   : > { %v6959_v20 = vpop.f32.mrb[9].mxu1  ;;  %4914 = vmatprep.mubr.msk.bf16.mxu0 %vm2130_vm1, %v5345_v57 }
 0x1bb   : > { %v6961_v55 = vpop.f32.mrb[10].mxu1 }
 0x1bc   : > { %v6965_v24 = vpop.f32.mrb[11].mxu1 }
 0x1be   : > { %2674 = vmatmul.mubr.bf16.gmra.mrb[72].mxu1 %v5341_v16 }
 0x1bf   : > { %2683 = vmatprep.mubr.bf16.mxu1 %v5343_v22 }
 0x1c1   : > { %v6968_v59 = vpop.f32.mrb[12].mxu1  ;;  %2935 = vmatmul.mubr.bf16.gmra.mrb[72].mxu0 %v5348_v28 }
 0x1c2   : > { %v6972_v30 = vpop.f32.mrb[13].mxu1  ;;  %4915 = vmatprep.mubr.msk.bf16.mxu0 %vm2130_vm1, %v5351_v1 }
 0x1c3   : > { %v6974_v61 = vpop.f32.mrb[14].mxu1 }
 0x1c4   : > { %v6978_v32 = vpop.f32.mrb[15].mxu1 }
 0x1c6   : > { %2684 = vmatmul.mubr.bf16.gmra.mrb[76].mxu1 %v5347_v26 }
 0x1c7   : > { %2693 = vmatprep.mubr.bf16.mxu1 %v5349_v63 }
 0x1c9   : > { %v6981_v3 = vpop.f32.mrb[16].mxu1  ;;  %2945 = vmatmul.mubr.bf16.gmra.mrb[76].mxu0 %v5354_v36 }
 0x1ca   : > { %v6985_v38 = vpop.f32.mrb[17].mxu1  ;;  %4916 = vmatprep.mubr.msk.bf16.mxu0 %vm2130_vm1, %v5357_v11 }
 0x1cb   : > { %v6987_v6 = vpop.f32.mrb[18].mxu1 }
 0x1cc   : > { %v6991_v40 = vpop.f32.mrb[19].mxu1 }
 0x1ce   : > { %2694 = vmatmul.mubr.bf16.gmra.mrb[80].mxu1 %v5353_v34 }
 0x1cf   : > { %2703 = vmatprep.mubr.bf16.mxu1 %v5355_v9 }
 0x1d1   : > { %v6995_v15 = vpop.f32.mrb[20].mxu1  ;;  %2955 = vmatmul.mubr.bf16.gmra.mrb[80].mxu0 %v5360_v42 }
 0x1d2   : > { %v6999_v19 = vpop.f32.mrb[21].mxu1  ;;  %4917 = vmatprep.mubr.msk.bf16.mxu0 %vm2130_vm1, %v5362_v21 }
 0x1d3   : > { %v7001_v46 = vpop.f32.mrb[22].mxu1 }
 0x1d4   : > { %v7004_v23 = vpop.f32.mrb[23].mxu1 }
 0x1d6   : > { %2704 = vmatmul.mubr.bf16.gmra.mrb[84].mxu1 %v5359_v17 }
 0x1d7   : > { %2713 = vmatprep.mubr.bf16.mxu1 %v4893_v48 }
 0x1d9   : > { %v7008_v50 = vpop.f32.mrb[24].mxu1  ;;  %2965 = vmatmul.mubr.bf16.gmra.mrb[84].mxu0 %v5365_v29 }
 0x1da   : > { %v7011_v31 = vpop.f32.mrb[25].mxu1  ;;  %4918 = vmatprep.mubr.msk.bf16.mxu0 %vm2130_vm1, %v4895_v35 }
 0x1db   : > { %v7013_v33 = vpop.f32.mrb[26].mxu1 }
 0x1dc   : > { %v7015_v37 = vpop.f32.mrb[27].mxu1 }
 0x1de   : > { %2714 = vmatmul.mubr.bf16.gmra.mrb[88].mxu1 %v4892_v27 }
 0x1e1   : > { %v7018_v39 = vpop.f32.mrb[28].mxu1  ;;  %2975 = vmatmul.mubr.bf16.gmra.mrb[88].mxu0 %v4894_v52 }
 0x1e2   : > { %v7020_v41 = vpop.f32.mrb[29].mxu1 }
 0x1e3   : > { %v7022_v54 = vpop.f32.mrb[30].mxu1 }
 0x1e4   : > { %v7024_v44 = vpop.f32.mrb[31].mxu1 }
 0x1e9   : > { %v7026_v56 = vpop.f32.mrb[32].mxu1 }
 0x1ea   : > { %v7028_v58 = vpop.f32.mrb[33].mxu1 }
 0x1eb   : > { %v7030_v62 = vpop.f32.mrb[34].mxu1 }
 0x1ec   : > { %v7032_v0 = vpop.f32.mrb[35].mxu1 }
 0x1f1   : > { %v7034_v43 = vpop.f32.mrb[36].mxu1 }
 0x1f2   : > { %v7036_v5 = vpop.f32.mrb[37].mxu1 }
 0x1f3   : > { %v7038_v47 = vpop.f32.mrb[38].mxu1 }
 0x1f4   : > { %v7040_v8 = vpop.f32.mrb[39].mxu1 }
 0x1f9   : > { %v7042_v49 = vpop.f32.mrb[40].mxu1 }
 0x1fa   : > { %v7044_v14 = vpop.f32.mrb[41].mxu1 }
 0x1fb   : > { %v7046_v16 = vpop.f32.mrb[42].mxu1 }
 0x1fc   : > { %v7048_v18 = vpop.f32.mrb[43].mxu1 }
 0x201   : > { %v7050_v22 = vpop.f32.mrb[44].mxu1 }
 0x202   : > { %v7052_v57 = vpop.f32.mrb[45].mxu1 }
 0x203   : > { %v7054_v26 = vpop.f32.mrb[46].mxu1 }
 0x204   : > { %v7056_v28 = vpop.f32.mrb[47].mxu1  ;;  %v2756_v63 = vpop.f32.mrb[0].mxu0 }
 0x205   : > { %v7059_v1 = vadd.f32 %v2756_v63, %v6929_v60  ;;  %v2758_v34 = vpop.f32.mrb[1].mxu0 }
 0x206   : > { %v7062_v36 = vadd.f32 %v2758_v34, %v6933_v2  ;;  %v2760_v9 = vpop.f32.mrb[2].mxu0 }
 0x207   : > { %8495 = vst [vmem:[#allocation3_spill] sm:$0xff] %v7059_v1  ;;  %v7065_v11 = vadd.f32 %v2760_v9, %v6935_v4  ;;  %v2762_v13 = vpop.f32.mrb[3].mxu0 }
 0x208   : > { %8496 = vst [vmem:[#allocation4_spill] sm:$0xff] %v7062_v36  ;;  %v7068_v17 = vadd.f32 %v2762_v13, %v6939_v7  ;;  %v2984_v42 = vsel %vm2983_vm2, %v7062_v36, 0.0 }
 0x209   : > { %8497 = vst [vmem:[#allocation5_spill] sm:$0xff] %v7065_v11  ;;  %v2985_v48 = vadd.f32 %v7059_v1, %v2984_v42 }
 0x20a   : > { %8498 = vst [vmem:[#allocation6_spill] sm:$0xff] %v7068_v17  ;;  %v2988_v60 = vsel %vm2983_vm2, %v7068_v17, 0.0 }
 0x20b   : > { %2986 = vadd.xlane.f32.xlu0 %v2985_v48  ;;  %v2989_v4 = vadd.f32 %v7065_v11, %v2988_v60 }
 0x20c   : > { %v2766_v21 = vpop.f32.mrb[4].mxu0 }
 0x20d   : > { %v7076_v2 = vadd.f32 %v2766_v21, %v6942_v45  ;;  %v2768_v25 = vpop.f32.mrb[5].mxu0 }
 0x20e   : > { %v7080_v27 = vadd.f32 %v2768_v25, %v6946_v10  ;;  %v2770_v7 = vpop.f32.mrb[6].mxu0 }
 0x20f   : > { %8499 = vst [vmem:[#allocation7_spill] sm:$0xff] %v7076_v2  ;;  %v7083_v29 = vadd.f32 %v2770_v7, %v6948_v12  ;;  %v2772_v35 = vpop.f32.mrb[7].mxu0  ;;  %2990 = vadd.xlane.f32.xlu0 %v2989_v4 }
 0x210   : > { %8500 = vst [vmem:[#allocation8_spill] sm:$0xff] %v7080_v27  ;;  %v7086_v52 = vadd.f32 %v2772_v35, %v6952_v51  ;;  %v2992_v63 = vsel %vm2983_vm2, %v7080_v27, 0.0 }
 0x211   : > { %8501 = vst [vmem:[#allocation9_spill] sm:$0xff] %v7083_v29  ;;  %v2993_v45 = vadd.f32 %v7076_v2, %v2992_v63 }
 0x212   : > { %8502 = vst [vmem:[#allocation10_spill] sm:$0xff] %v7086_v52  ;;  %v2996_v34 = vsel %vm2983_vm2, %v7086_v52, 0.0 }
 0x213   : > { %2994 = vadd.xlane.f32.xlu1 %v2993_v45  ;;  %v2997_v13 = vadd.f32 %v7083_v29, %v2996_v34 }
 0x214   : > { %v2776_v10 = vpop.f32.mrb[8].mxu0 }
 0x215   : > { %v7094_v9 = vadd.f32 %v2776_v10, %v6955_v53  ;;  %v2778_v12 = vpop.f32.mrb[9].mxu0 }
 0x216   : > { %v7098_v42 = vadd.f32 %v2778_v12, %v6959_v20  ;;  %v2780_v51 = vpop.f32.mrb[10].mxu0 }
 0x217   : > { %8503 = vst [vmem:[#allocation11_spill] sm:$0xff] %v7094_v9  ;;  %v7101_v48 = vadd.f32 %v2780_v51, %v6961_v55  ;;  %v2782_v60 = vpop.f32.mrb[11].mxu0  ;;  %2998 = vadd.xlane.f32.xlu1 %v2997_v13 }
 0x218   : > { %8504 = vst [vmem:[#allocation12_spill] sm:$0xff] %v7098_v42  ;;  %v7104_v21 = vadd.f32 %v2782_v60, %v6965_v24  ;;  %v3000_v25 = vsel %vm2983_vm2, %v7098_v42, 0.0 }
 0x219   : > { %8505 = vst [vmem:[#allocation13_spill] sm:$0xff] %v7101_v48  ;;  %v3001_v53 = vadd.f32 %v7094_v9, %v3000_v25 }
 0x21a   : > { %8506 = vst [vmem:[#allocation14_spill] sm:$0xff] %v7104_v21  ;;  %v3004_v4 = vsel %vm2983_vm2, %v7104_v21, 0.0 }
 0x21b   : > { %3002 = vadd.xlane.f32.xlu0 %v3001_v53  ;;  %v3005_v20 = vadd.f32 %v7101_v48, %v3004_v4 }
 0x21c   : > { %v2786_v7 = vpop.f32.mrb[12].mxu0 }
 0x21d   : > { %v7113_v55 = vadd.f32 %v2786_v7, %v6968_v59  ;;  %v2788_v35 = vpop.f32.mrb[13].mxu0  ;;  %3006 = vadd.xlane.f32.xlu1 %v3005_v20 }
 0x21e   : > { %v7116_v24 = vadd.f32 %v2788_v35, %v6972_v30  ;;  %v2790_v63 = vpop.f32.mrb[14].mxu0 }
 0x21f   : > { %8507 = vst [vmem:[#allocation15_spill] sm:$0xff] %v7113_v55  ;;  %v7119_v45 = vadd.f32 %v2790_v63, %v6974_v61  ;;  %v2792_v34 = vpop.f32.mrb[15].mxu0 }
 0x220   : > { %8508 = vst [vmem:[#allocation16_spill] sm:$0xff] %v7116_v24  ;;  %v7122_v10 = vadd.f32 %v2792_v34, %v6978_v32  ;;  %v3008_v12 = vsel %vm2983_vm2, %v7116_v24, 0.0 }
 0x221   : > { %8509 = vst [vmem:[#allocation17_spill] sm:$0xff] %v7119_v45  ;;  %v3009_v13 = vadd.f32 %v7113_v55, %v3008_v12 }
 0x222   : > { %8510 = vst [vmem:[#allocation18_spill] sm:$0xff] %v7122_v10  ;;  %v3012_v59 = vsel %vm2983_vm2, %v7122_v10, 0.0 }
 0x223   : > { %3010 = vadd.xlane.f32.xlu0 %v3009_v13  ;;  %v3013_v30 = vadd.f32 %v7119_v45, %v3012_v59 }
 0x224   : > { %v2796_v51 = vpop.f32.mrb[16].mxu0 }
 0x225   : > { %v7131_v60 = vadd.f32 %v2796_v51, %v6981_v3  ;;  %v2798_v61 = vpop.f32.mrb[17].mxu0  ;;  %3014 = vadd.xlane.f32.xlu1 %v3013_v30 }
 0x226   : > { %v7134_v32 = vadd.f32 %v2798_v61, %v6985_v38  ;;  %v2800_v25 = vpop.f32.mrb[18].mxu0 }
 0x227   : > { %8511 = vst [vmem:[#allocation19_spill] sm:$0xff] %v7131_v60  ;;  %v7137_v53 = vadd.f32 %v2800_v25, %v6987_v6  ;;  %v2802_v4 = vpop.f32.mrb[19].mxu0 }
 0x228   : > { %8512 = vst [vmem:[#allocation20_spill] sm:$0xff] %v7134_v32  ;;  %v7140_v20 = vadd.f32 %v2802_v4, %v6991_v40  ;;  %v3016_v7 = vsel %vm2983_vm2, %v7134_v32, 0.0 }
 0x229   : > { %8513 = vst [vmem:[#allocation21_spill] sm:$0xff] %v7137_v53  ;;  %v3017_v35 = vadd.f32 %v7131_v60, %v3016_v7 }
 0x22a   : > { %8514 = vst [vmem:[#allocation22_spill] sm:$0xff] %v7140_v20  ;;  %v3020_v3 = vsel %vm2983_vm2, %v7140_v20, 0.0 }
 0x22b   : > { %3018 = vadd.xlane.f32.xlu0 %v3017_v35  ;;  %v3021_v38 = vadd.f32 %v7137_v53, %v3020_v3 }
 0x22c   : > { %v2806_v63 = vpop.f32.mrb[20].mxu0 }
 0x22d   : > { %v7149_v34 = vadd.f32 %v2806_v63, %v6995_v15  ;;  %v2808_v6 = vpop.f32.mrb[21].mxu0  ;;  %3022 = vadd.xlane.f32.xlu1 %v3021_v38 }
 0x22e   : > { %v7152_v40 = vadd.f32 %v2808_v6, %v6999_v19  ;;  %v2810_v12 = vpop.f32.mrb[22].mxu0 }
 0x22f   : > { %8515 = vst [vmem:[#allocation23_spill] sm:$0xff] %v7149_v34  ;;  %v7155_v13 = vadd.f32 %v2810_v12, %v7001_v46  ;;  %v2812_v59 = vpop.f32.mrb[23].mxu0 }
 0x230   : > { %8516 = vst [vmem:[#allocation24_spill] sm:$0xff] %v7152_v40  ;;  %v7158_v30 = vadd.f32 %v2812_v59, %v7004_v23  ;;  %v3024_v51 = vsel %vm2983_vm2, %v7152_v40, 0.0 }
 0x231   : > { %8517 = vst [vmem:[#allocation25_spill] sm:$0xff] %v7155_v13  ;;  %v3025_v61 = vadd.f32 %v7149_v34, %v3024_v51 }
 0x232   : > { %8518 = vst [vmem:[#allocation26_spill] sm:$0xff] %v7158_v30  ;;  %v3028_v15 = vsel %vm2983_vm2, %v7158_v30, 0.0 }
 0x233   : > { %3026 = vadd.xlane.f32.xlu0 %v3025_v61  ;;  %v3029_v19 = vadd.f32 %v7155_v13, %v3028_v15 }
 0x234   : > { %v2816_v25 = vpop.f32.mrb[24].mxu0 }
 0x235   : > { %v7167_v4 = vadd.f32 %v2816_v25, %v7008_v50  ;;  %v2818_v46 = vpop.f32.mrb[25].mxu0  ;;  %3030 = vadd.xlane.f32.xlu1 %v3029_v19 }
 0x236   : > { %v7170_v23 = vadd.f32 %v2818_v46, %v7011_v31  ;;  %v2820_v7 = vpop.f32.mrb[26].mxu0 }
 0x237   : > { %8519 = vst [vmem:[#allocation27_spill] sm:$0xff] %v7167_v4  ;;  %v7173_v35 = vadd.f32 %v2820_v7, %v7013_v33  ;;  %v2822_v3 = vpop.f32.mrb[27].mxu0 }
 0x238   : > { %8520 = vst [vmem:[#allocation28_spill] sm:$0xff] %v7170_v23  ;;  %v7176_v38 = vadd.f32 %v2822_v3, %v7015_v37  ;;  %v3032_v63 = vsel %vm2983_vm2, %v7170_v23, 0.0 }
 0x239   : > { %8521 = vst [vmem:[#allocation29_spill] sm:$0xff] %v7173_v35  ;;  %v3033_v6 = vadd.f32 %v7167_v4, %v3032_v63 }
 0x23a   : > { %8522 = vst [vmem:[#allocation30_spill] sm:$0xff] %v7176_v38  ;;  %v3036_v50 = vsel %vm2983_vm2, %v7176_v38, 0.0 }
 0x23b   : > { %3034 = vadd.xlane.f32.xlu0 %v3033_v6  ;;  %v3037_v31 = vadd.f32 %v7173_v35, %v3036_v50 }
 0x23c   : > { %v2826_v12 = vpop.f32.mrb[28].mxu0 }
 0x23d   : > { %v7185_v59 = vadd.f32 %v2826_v12, %v7018_v39  ;;  %v2828_v33 = vpop.f32.mrb[29].mxu0  ;;  %3038 = vadd.xlane.f32.xlu1 %v3037_v31 }
 0x23e   : > { %v7188_v37 = vadd.f32 %v2828_v33, %v7020_v41  ;;  %v2830_v51 = vpop.f32.mrb[30].mxu0 }
 0x23f   : > { %8523 = vst [vmem:[#allocation31_spill] sm:$0xff] %v7185_v59  ;;  %v7191_v61 = vadd.f32 %v2830_v51, %v7022_v54  ;;  %v2832_v15 = vpop.f32.mrb[31].mxu0 }
 0x240   : > { %8524 = vst [vmem:[#allocation32_spill] sm:$0xff] %v7188_v37  ;;  %v7194_v19 = vadd.f32 %v2832_v15, %v7024_v44  ;;  %v3040_v25 = vsel %vm2983_vm2, %v7188_v37, 0.0 }
 0x241   : > { %8525 = vst [vmem:[#allocation33_spill] sm:$0xff] %v7191_v61  ;;  %v3041_v46 = vadd.f32 %v7185_v59, %v3040_v25 }
 0x242   : > { %8526 = vst [vmem:[#allocation34_spill] sm:$0xff] %v7194_v19  ;;  %v3044_v39 = vsel %vm2983_vm2, %v7194_v19, 0.0 }
 0x243   : > { %3042 = vadd.xlane.f32.xlu0 %v3041_v46  ;;  %v3045_v41 = vadd.f32 %v7191_v61, %v3044_v39 }
 0x244   : > { %v2836_v7 = vpop.f32.mrb[32].mxu0 }
 0x245   : > { %v7203_v3 = vadd.f32 %v2836_v7, %v7026_v56  ;;  %v2838_v54 = vpop.f32.mrb[33].mxu0  ;;  %3046 = vadd.xlane.f32.xlu1 %v3045_v41 }
 0x246   : > { %v7206_v44 = vadd.f32 %v2838_v54, %v7028_v58  ;;  %v2840_v63 = vpop.f32.mrb[34].mxu0 }
 0x247   : > { %8527 = vst [vmem:[#allocation35_spill] sm:$0xff] %v7203_v3  ;;  %v7209_v6 = vadd.f32 %v2840_v63, %v7030_v62  ;;  %v2842_v50 = vpop.f32.mrb[35].mxu0 }
 0x248   : > { %8528 = vst [vmem:[#allocation36_spill] sm:$0xff] %v7206_v44  ;;  %v7212_v31 = vadd.f32 %v2842_v50, %v7032_v0  ;;  %v3048_v12 = vsel %vm2983_vm2, %v7206_v44, 0.0 }
 0x249   : > { %8529 = vst [vmem:[#allocation37_spill] sm:$0xff] %v7209_v6  ;;  %v3049_v33 = vadd.f32 %v7203_v3, %v3048_v12 }
 0x24a   : > { %8530 = vst [vmem:[#allocation38_spill] sm:$0xff] %v7212_v31  ;;  %v3052_v56 = vsel %vm2983_vm2, %v7212_v31, 0.0 }
 0x24b   : > { %3050 = vadd.xlane.f32.xlu0 %v3049_v33  ;;  %v3053_v58 = vadd.f32 %v7209_v6, %v3052_v56 }
 0x24c   : > { %v2846_v51 = vpop.f32.mrb[36].mxu0 }
 0x24d   : > { %v7221_v15 = vadd.f32 %v2846_v51, %v7034_v43  ;;  %v2848_v62 = vpop.f32.mrb[37].mxu0  ;;  %3054 = vadd.xlane.f32.xlu1 %v3053_v58 }
 0x24e   : > { %v7224_v0 = vadd.f32 %v2848_v62, %v7036_v5  ;;  %v2850_v25 = vpop.f32.mrb[38].mxu0 }
 0x24f   : > { %8531 = vst [vmem:[#allocation39_spill] sm:$0xff] %v7221_v15  ;;  %v7227_v46 = vadd.f32 %v2850_v25, %v7038_v47  ;;  %v2852_v39 = vpop.f32.mrb[39].mxu0 }
 0x250   : > { %8532 = vst [vmem:[#allocation40_spill] sm:$0xff] %v7224_v0  ;;  %v7230_v41 = vadd.f32 %v2852_v39, %v7040_v8  ;;  %v3056_v7 = vsel %vm2983_vm2, %v7224_v0, 0.0 }
 0x251   : > { %8533 = vst [vmem:[#allocation41_spill] sm:$0xff] %v7227_v46  ;;  %v3057_v54 = vadd.f32 %v7221_v15, %v3056_v7 }
 0x252   : > { %8534 = vst [vmem:[#allocation42_spill] sm:$0xff] %v7230_v41  ;;  %v3060_v43 = vsel %vm2983_vm2, %v7230_v41, 0.0 }
 0x253   : > { %3058 = vadd.xlane.f32.xlu0 %v3057_v54  ;;  %v3061_v5 = vadd.f32 %v7227_v46, %v3060_v43 }
 0x254   : > { %v2856_v63 = vpop.f32.mrb[40].mxu0 }
 0x255   : > { %v7239_v50 = vadd.f32 %v2856_v63, %v7042_v49  ;;  %v2858_v47 = vpop.f32.mrb[41].mxu0  ;;  %3062 = vadd.xlane.f32.xlu1 %v3061_v5 }
 0x256   : > { %v7242_v8 = vadd.f32 %v2858_v47, %v7044_v14  ;;  %v2860_v12 = vpop.f32.mrb[42].mxu0 }
 0x257   : > { %8535 = vst [vmem:[#allocation43_spill] sm:$0xff] %v7239_v50  ;;  %v7245_v33 = vadd.f32 %v2860_v12, %v7046_v16  ;;  %v2862_v56 = vpop.f32.mrb[43].mxu0 }
 0x258   : > { %8536 = vst [vmem:[#allocation44_spill] sm:$0xff] %v7242_v8  ;;  %v7248_v58 = vadd.f32 %v2862_v56, %v7048_v18  ;;  %v3064_v51 = vsel %vm2983_vm2, %v7242_v8, 0.0 }
 0x259   : > { %8537 = vst [vmem:[#allocation45_spill] sm:$0xff] %v7245_v33  ;;  %v3065_v62 = vadd.f32 %v7239_v50, %v3064_v51 }
 0x25a   : > { %8538 = vst [vmem:[#allocation46_spill] sm:$0xff] %v7248_v58  ;;  %v3068_v49 = vsel %vm2983_vm2, %v7248_v58, 0.0 }
 0x25b   : > { %3066 = vadd.xlane.f32.xlu0 %v3065_v62  ;;  %v3069_v14 = vadd.f32 %v7245_v33, %v3068_v49 }
 0x25c   : > { %v2866_v39 = vpop.f32.mrb[44].mxu0 }
 0x25d   : > { %v7257_v16 = vadd.f32 %v2866_v39, %v7050_v22  ;;  %v2868_v7 = vpop.f32.mrb[45].mxu0  ;;  %3070 = vadd.xlane.f32.xlu1 %v3069_v14 }
 0x25e   : > { %v7260_v54 = vadd.f32 %v2868_v7, %v7052_v57  ;;  %v2870_v5 = vpop.f32.mrb[46].mxu0 }
 0x25f   : > { %8539 = vst [vmem:[#allocation47_spill] sm:$0xff] %v7257_v16  ;;  %v7263_v63 = vadd.f32 %v2870_v5, %v7054_v26  ;;  %v2872_v12 = vpop.f32.mrb[47].mxu0 }
 0x260   : > { %8540 = vst [vmem:[#allocation48_spill] sm:$0xff] %v7260_v54  ;;  %v7266_v56 = vadd.f32 %v2872_v12, %v7056_v28  ;;  %v3072_v22 = vsel %vm2983_vm2, %v7260_v54, 0.0 }
 0x261   : > { %v2615_v25 = vpop.f32.mrb[48].mxu1  ;;  %8541 = vst [vmem:[#allocation49_spill] sm:$0xff] %v7263_v63  ;;  %v3073_v51 = vadd.f32 %v7257_v16, %v3072_v22 }
 0x262   : > { %v2617_v18 = vpop.f32.mrb[49].mxu1  ;;  %8542 = vst [vmem:[#allocation50_spill] sm:$0xff] %v7266_v56  ;;  %v3076_v62 = vsel %vm2983_vm2, %v7266_v56, 0.0 }
 0x263   : > { %v2619_v43 = vpop.f32.mrb[50].mxu1  ;;  %3074 = vadd.xlane.f32.xlu0 %v3073_v51  ;;  %v3077_v57 = vadd.f32 %v7263_v63, %v3076_v62 }
 0x264   : > { %v2621_v47 = vpop.f32.mrb[51].mxu1  ;;  %v2876_v14 = vpop.f32.mrb[48].mxu0 }
 0x265   : > { %v7274_v26 = vadd.f32 %v2876_v14, %v2615_v25  ;;  %v2878_v39 = vpop.f32.mrb[49].mxu0  ;;  %3078 = vadd.xlane.f32.xlu1 %v3077_v57 }
 0x266   : > { %v7276_v28 = vadd.f32 %v2878_v39, %v2617_v18  ;;  %v2880_v12 = vpop.f32.mrb[50].mxu0 }
 0x267   : > { %8543 = vst [vmem:[#allocation51_spill] sm:$0xff] %v7274_v26  ;;  %v7278_v54 = vadd.f32 %v2880_v12, %v2619_v43  ;;  %v2882_v16 = vpop.f32.mrb[51].mxu0 }
 0x268   : > { %8544 = vst [vmem:[#allocation52_spill] sm:$0xff] %v7276_v28  ;;  %v7280_v58 = vadd.f32 %v2882_v16, %v2621_v47  ;;  %v3080_v51 = vsel %vm2983_vm2, %v7276_v28, 0.0 }
 0x269   : > { %v2625_v49 = vpop.f32.mrb[52].mxu1  ;;  %8545 = vst [vmem:[#allocation53_spill] sm:$0xff] %v7278_v54  ;;  %v3081_v62 = vadd.f32 %v7274_v26, %v3080_v51 }
 0x26a   : > { %v2627_v7 = vpop.f32.mrb[53].mxu1  ;;  %8546 = vst [vmem:[#allocation54_spill] sm:$0xff] %v7280_v58  ;;  %v3084_v25 = vsel %vm2983_vm2, %v7280_v58, 0.0 }
 0x26b   : > { %v2629_v5 = vpop.f32.mrb[54].mxu1  ;;  %3082 = vadd.xlane.f32.xlu0 %v3081_v62  ;;  %v3085_v18 = vadd.f32 %v7278_v54, %v3084_v25 }
 0x26c   : > { %v2631_v22 = vpop.f32.mrb[55].mxu1  ;;  %v2886_v14 = vpop.f32.mrb[52].mxu0 }
 0x26d   : > { %v7288_v39 = vadd.f32 %v2886_v14, %v2625_v49  ;;  %v2888_v43 = vpop.f32.mrb[53].mxu0  ;;  %3086 = vadd.xlane.f32.xlu1 %v3085_v18 }
 0x26e   : > { %v7290_v16 = vadd.f32 %v2888_v43, %v2627_v7  ;;  %v2890_v56 = vpop.f32.mrb[54].mxu0 }
 0x26f   : > { %8547 = vst [vmem:[#allocation55_spill] sm:$0xff] %v7288_v39  ;;  %v7292_v28 = vadd.f32 %v2890_v56, %v2629_v5  ;;  %v2892_v26 = vpop.f32.mrb[55].mxu0 }
 0x270   : > { %8548 = vst [vmem:[#allocation56_spill] sm:$0xff] %v7290_v16  ;;  %v7294_v63 = vadd.f32 %v2892_v26, %v2631_v22  ;;  %v3088_v62 = vsel %vm2983_vm2, %v7290_v16, 0.0 }
 0x271   : > { %v2635_v57 = vpop.f32.mrb[56].mxu1  ;;  %8549 = vst [vmem:[#allocation57_spill] sm:$0xff] %v7292_v28  ;;  %v3089_v25 = vadd.f32 %v7288_v39, %v3088_v62 }
 0x272   : > { %v2637_v12 = vpop.f32.mrb[57].mxu1  ;;  %8550 = vst [vmem:[#allocation58_spill] sm:$0xff] %v7294_v63  ;;  %v3092_v49 = vsel %vm2983_vm2, %v7294_v63, 0.0 }
 0x273   : > { %v2639_v47 = vpop.f32.mrb[58].mxu1  ;;  %3090 = vadd.xlane.f32.xlu0 %v3089_v25  ;;  %v3093_v7 = vadd.f32 %v7292_v28, %v3092_v49 }
 0x274   : > { %v2641_v51 = vpop.f32.mrb[59].mxu1  ;;  %v2896_v14 = vpop.f32.mrb[56].mxu0 }
 0x275   : > { %v7302_v43 = vadd.f32 %v2896_v14, %v2635_v57  ;;  %v2898_v56 = vpop.f32.mrb[57].mxu0  ;;  %3094 = vadd.xlane.f32.xlu1 %v3093_v7 }
 0x276   : > { %v7304_v26 = vadd.f32 %v2898_v56, %v2637_v12  ;;  %v2900_v58 = vpop.f32.mrb[58].mxu0 }
 0x277   : > { %8551 = vst [vmem:[#allocation59_spill] sm:$0xff] %v7302_v43  ;;  %v7306_v16 = vadd.f32 %v2900_v58, %v2639_v47  ;;  %v2902_v39 = vpop.f32.mrb[59].mxu0 }
 0x278   : > { %8552 = vst [vmem:[#allocation60_spill] sm:$0xff] %v7304_v26  ;;  %v7308_v54 = vadd.f32 %v2902_v39, %v2641_v51  ;;  %v3096_v25 = vsel %vm2983_vm2, %v7304_v26, 0.0 }
 0x279   : > { %v2645_v18 = vpop.f32.mrb[60].mxu1  ;;  %8553 = vst [vmem:[#allocation61_spill] sm:$0xff] %v7306_v16  ;;  %v3097_v49 = vadd.f32 %v7302_v43, %v3096_v25 }
 0x27a   : > { %v2647_v5 = vpop.f32.mrb[61].mxu1  ;;  %8554 = vst [vmem:[#allocation62_spill] sm:$0xff] %v7308_v54  ;;  %v3100_v57 = vsel %vm2983_vm2, %v7308_v54, 0.0 }
 0x27b   : > { %v2649_v22 = vpop.f32.mrb[62].mxu1  ;;  %3098 = vadd.xlane.f32.xlu0 %v3097_v49  ;;  %v3101_v12 = vadd.f32 %v7306_v16, %v3100_v57 }
 0x27c   : > { %v2651_v62 = vpop.f32.mrb[63].mxu1  ;;  %v2906_v14 = vpop.f32.mrb[60].mxu0 }
 0x27d   : > { %v7316_v56 = vadd.f32 %v2906_v14, %v2645_v18  ;;  %v2908_v58 = vpop.f32.mrb[61].mxu0  ;;  %3102 = vadd.xlane.f32.xlu1 %v3101_v12 }
 0x27e   : > { %v7318_v39 = vadd.f32 %v2908_v58, %v2647_v5  ;;  %v2910_v63 = vpop.f32.mrb[62].mxu0 }
 0x27f   : > { %8555 = vst [vmem:[#allocation63_spill] sm:$0xff] %v7316_v56  ;;  %v7320_v26 = vadd.f32 %v2910_v63, %v2649_v22  ;;  %v2912_v43 = vpop.f32.mrb[63].mxu0 }
 0x280   : > { %8556 = vst [vmem:[#allocation64_spill] sm:$0xff] %v7318_v39  ;;  %v7322_v28 = vadd.f32 %v2912_v43, %v2651_v62  ;;  %v3104_v49 = vsel %vm2983_vm2, %v7318_v39, 0.0 }
 0x281   : > { %v2655_v7 = vpop.f32.mrb[64].mxu1  ;;  %8557 = vst [vmem:[#allocation65_spill] sm:$0xff] %v7320_v26  ;;  %v3105_v57 = vadd.f32 %v7316_v56, %v3104_v49 }
 0x282   : > { %v2657_v47 = vpop.f32.mrb[65].mxu1  ;;  %8558 = vst [vmem:[#allocation66_spill] sm:$0xff] %v7322_v28  ;;  %v3108_v18 = vsel %vm2983_vm2, %v7322_v28, 0.0 }
 0x283   : > { %v2659_v51 = vpop.f32.mrb[66].mxu1  ;;  %3106 = vadd.xlane.f32.xlu0 %v3105_v57  ;;  %v3109_v5 = vadd.f32 %v7320_v26, %v3108_v18 }
 0x284   : > { %v2661_v25 = vpop.f32.mrb[67].mxu1  ;;  %v2916_v14 = vpop.f32.mrb[64].mxu0 }
 0x285   : > { %v7330_v58 = vadd.f32 %v2916_v14, %v2655_v7  ;;  %v2918_v63 = vpop.f32.mrb[65].mxu0  ;;  %3110 = vadd.xlane.f32.xlu1 %v3109_v5 }
 0x286   : > { %v7332_v43 = vadd.f32 %v2918_v63, %v2657_v47  ;;  %v2920_v54 = vpop.f32.mrb[66].mxu0 }
 0x287   : > { %8559 = vst [vmem:[#allocation67_spill] sm:$0xff] %v7330_v58  ;;  %v7334_v39 = vadd.f32 %v2920_v54, %v2659_v51  ;;  %v2922_v56 = vpop.f32.mrb[67].mxu0 }
 0x288   : > { %8560 = vst [vmem:[#allocation68_spill] sm:$0xff] %v7332_v43  ;;  %v7336_v16 = vadd.f32 %v2922_v56, %v2661_v25  ;;  %v3112_v57 = vsel %vm2983_vm2, %v7332_v43, 0.0 }
 0x289   : > { %v2665_v12 = vpop.f32.mrb[68].mxu1  ;;  %8561 = vst [vmem:[#allocation69_spill] sm:$0xff] %v7334_v39  ;;  %v3113_v18 = vadd.f32 %v7330_v58, %v3112_v57 }
 0x28a   : > { %v2667_v22 = vpop.f32.mrb[69].mxu1  ;;  %8562 = vst [vmem:[#allocation70_spill] sm:$0xff] %v7336_v16  ;;  %v3116_v7 = vsel %vm2983_vm2, %v7336_v16, 0.0 }
 0x28b   : > { %v2669_v62 = vpop.f32.mrb[70].mxu1  ;;  %3114 = vadd.xlane.f32.xlu0 %v3113_v18  ;;  %v3117_v47 = vadd.f32 %v7334_v39, %v3116_v7 }
 0x28c   : > { %v2671_v49 = vpop.f32.mrb[71].mxu1  ;;  %v2926_v14 = vpop.f32.mrb[68].mxu0 }
 0x28d   : > { %v7344_v63 = vadd.f32 %v2926_v14, %v2665_v12  ;;  %v2928_v54 = vpop.f32.mrb[69].mxu0  ;;  %3118 = vadd.xlane.f32.xlu1 %v3117_v47 }
 0x28e   : > { %v7346_v56 = vadd.f32 %v2928_v54, %v2667_v22  ;;  %v2930_v28 = vpop.f32.mrb[70].mxu0 }
 0x28f   : > { %8563 = vst [vmem:[#allocation71_spill] sm:$0xff] %v7344_v63  ;;  %v7348_v43 = vadd.f32 %v2930_v28, %v2669_v62  ;;  %v2932_v58 = vpop.f32.mrb[71].mxu0 }
 0x290   : > { %8564 = vst [vmem:[#allocation72_spill] sm:$0xff] %v7346_v56  ;;  %v7350_v26 = vadd.f32 %v2932_v58, %v2671_v49  ;;  %v3120_v18 = vsel %vm2983_vm2, %v7346_v56, 0.0 }
 0x291   : > { %v2675_v5 = vpop.f32.mrb[72].mxu1  ;;  %8565 = vst [vmem:[#allocation73_spill] sm:$0xff] %v7348_v43  ;;  %v3121_v7 = vadd.f32 %v7344_v63, %v3120_v18 }
 0x292   : > { %v2677_v51 = vpop.f32.mrb[73].mxu1  ;;  %8566 = vst [vmem:[#allocation74_spill] sm:$0xff] %v7350_v26  ;;  %v3124_v12 = vsel %vm2983_vm2, %v7350_v26, 0.0 }
 0x293   : > { %v2679_v25 = vpop.f32.mrb[74].mxu1  ;;  %3122 = vadd.xlane.f32.xlu0 %v3121_v7  ;;  %v3125_v22 = vadd.f32 %v7348_v43, %v3124_v12 }
 0x294   : > { %v2681_v57 = vpop.f32.mrb[75].mxu1  ;;  %v2936_v14 = vpop.f32.mrb[72].mxu0 }
 0x295   : > { %v7358_v54 = vadd.f32 %v2936_v14, %v2675_v5  ;;  %v2938_v28 = vpop.f32.mrb[73].mxu0  ;;  %3126 = vadd.xlane.f32.xlu1 %v3125_v22 }
 0x296   : > { %v7360_v58 = vadd.f32 %v2938_v28, %v2677_v51  ;;  %v2940_v16 = vpop.f32.mrb[74].mxu0 }
 0x297   : > { %8567 = vst [vmem:[#allocation75_spill] sm:$0xff] %v7358_v54  ;;  %v7362_v56 = vadd.f32 %v2940_v16, %v2679_v25  ;;  %v2942_v63 = vpop.f32.mrb[75].mxu0 }
 0x298   : > { %8568 = vst [vmem:[#allocation76_spill] sm:$0xff] %v7360_v58  ;;  %v7364_v39 = vadd.f32 %v2942_v63, %v2681_v57  ;;  %v2987_v7 = vpop.xlane.xlu0 %2986  ;;  %v3128_v12 = vsel %vm2983_vm2, %v7360_v58, 0.0 }
 0x299   : > { %v2685_v47 = vpop.f32.mrb[76].mxu1  ;;  %8569 = vst [vmem:[#allocation77_spill] sm:$0xff] %v7362_v56  ;;  %v7368_v26 = vmul.f32 0.0051020407, %v2987_v7  ;;  %v3129_v5 = vadd.f32 %v7358_v54, %v3128_v12 }
 0x29a   : > { %v2687_v62 = vpop.f32.mrb[77].mxu1  ;;  %8570 = vst [vmem:[#allocation78_spill] sm:$0xff] %v7364_v39  ;;  %v3132_v51 = vsel %vm2983_vm2, %v7364_v39, 0.0 }
 0x29b   : > { %v2689_v49 = vpop.f32.mrb[78].mxu1  ;;  %8571 = vst [vmem:[#allocation79_spill] sm:$0xff] %v7368_v26  ;;  %3130 = vadd.xlane.f32.xlu0 %v3129_v5  ;;  %v3133_v22 = vadd.f32 %v7362_v56, %v3132_v51  ;;  %v3210_v16 = vsub.f32 %v7059_v1, %v7368_v26  ;;  %v3211_v63 = vsub.f32 %v7062_v36, %v7368_v26 }
 0x29c   : > { %v2691_v18 = vpop.f32.mrb[79].mxu1  ;;  %v2946_v25 = vpop.f32.mrb[76].mxu0 }
 0x29d   : > { %v2991_v57 = vpop.xlane.xlu0 %2990  ;;  %v7378_v14 = vadd.f32 %v2946_v25, %v2685_v47  ;;  %v2948_v12 = vpop.f32.mrb[77].mxu0  ;;  %3134 = vadd.xlane.f32.xlu1 %v3133_v22  ;;  %v3300_v58 = vmul.f32 %v3210_v16, %v3210_v16  ;;  %v3301_v39 = vmul.f32 %v3211_v63, %v3211_v63 }
 0x29e   : > { %v7380_v28 = vmul.f32 0.0051020407, %v2991_v57  ;;  %v7382_v5 = vadd.f32 %v2948_v12, %v2687_v62  ;;  %v2950_v56 = vpop.f32.mrb[78].mxu0 }
 0x29f   : > { %8572 = vst [vmem:[#allocation80_spill] sm:$0xff] %v7378_v14  ;;  %v7384_v1 = vadd.f32 %v2950_v56, %v2689_v49  ;;  %v2952_v43 = vpop.f32.mrb[79].mxu0  ;;  %v3390_v36 = vsel %vm2983_vm2, %v3301_v39, 0.0 }
 0x2a0   : > { %8573 = vst [vmem:[#allocation81_spill] sm:$0xff] %v7380_v28  ;;  %8574 = vst [vmem:[#allocation82_spill] sm:$0xff] %v7382_v5  ;;  %v3212_v47 = vsub.f32 %v7065_v11, %v7380_v28  ;;  %v3213_v25 = vsub.f32 %v7068_v17, %v7380_v28  ;;  %v7391_v22 = vadd.f32 %v2952_v43, %v2691_v18  ;;  %v2995_v16 = vpop.xlane.xlu1 %2994  ;;  %v3136_v63 = vsel %vm2983_vm2, %v7382_v5, 0.0 }
 0x2a1   : > { %v2695_v7 = vpop.f32.mrb[80].mxu1  ;;  %8575 = vst [vmem:[#allocation83_spill] sm:$0xff] %v7384_v1  ;;  %v3391_v62 = vadd.f32 %v3390_v36, %v3300_v58  ;;  %v7395_v12 = vmul.f32 0.0051020407, %v2995_v16  ;;  %v3137_v56 = vadd.f32 %v7378_v14, %v3136_v63 }
 0x2a2   : > { %v2697_v51 = vpop.f32.mrb[81].mxu1  ;;  %8576 = vst [vmem:[#allocation84_spill] sm:$0xff] %v7391_v22  ;;  %v3302_v49 = vmul.f32 %v3212_v47, %v3212_v47  ;;  %v3303_v39 = vmul.f32 %v3213_v25, %v3213_v25  ;;  %v3140_v11 = vsel %vm2983_vm2, %v7391_v22, 0.0 }
 0x2a3   : > { %v2699_v54 = vpop.f32.mrb[82].mxu1  ;;  %8577 = vst [vmem:[#allocation85_spill] sm:$0xff] %v7395_v12  ;;  %3392 = vadd.xlane.f32.xlu1 %v3391_v62  ;;  %3138 = vadd.xlane.f32.xlu0 %v3137_v56  ;;  %v3141_v17 = vadd.f32 %v7384_v1, %v3140_v11  ;;  %v3214_v36 = vsub.f32 %v7076_v2, %v7395_v12 }
 0x2a4   : > { %v2701_v57 = vpop.f32.mrb[83].mxu1  ;;  %v3394_v43 = vsel %vm2983_vm2, %v3303_v39, 0.0  ;;  %v3215_v58 = vsub.f32 %v7080_v27, %v7395_v12  ;;  %v2956_v18 = vpop.f32.mrb[80].mxu0 }
 0x2a5   : > { %v2999_v16 = vpop.xlane.xlu1 %2998  ;;  %v3395_v63 = vadd.f32 %v3394_v43, %v3302_v49  ;;  %v7406_v47 = vadd.f32 %v2956_v18, %v2695_v7  ;;  %v2958_v26 = vpop.f32.mrb[81].mxu0  ;;  %v3304_v56 = vmul.f32 %v3214_v36, %v3214_v36 }
 0x2a6   : > { %v7408_v25 = vmul.f32 0.0051020407, %v2999_v16  ;;  %v3305_v28 = vmul.f32 %v3215_v58, %v3215_v58  ;;  %v7410_v22 = vadd.f32 %v2958_v26, %v2697_v51  ;;  %v2960_v39 = vpop.f32.mrb[82].mxu0 }
 0x2a7   : > { %8578 = vst [vmem:[#allocation86_spill] sm:$0xff] %v7406_v47  ;;  %3142 = vadd.xlane.f32.xlu1 %v3141_v17  ;;  %v7412_v2 = vadd.f32 %v2960_v39, %v2699_v54  ;;  %v2962_v27 = vpop.f32.mrb[83].mxu0  ;;  %3396 = vadd.xlane.f32.xlu0 %v3395_v63 }
 0x2a8   : > { %8579 = vst [vmem:[#allocation87_spill] sm:$0xff] %v7410_v22  ;;  %v3398_v49 = vsel %vm2983_vm2, %v3305_v28, 0.0  ;;  %v3216_v7 = vsub.f32 %v7083_v29, %v7408_v25  ;;  %v3217_v43 = vsub.f32 %v7086_v52, %v7408_v25  ;;  %v7419_v36 = vadd.f32 %v2962_v27, %v2701_v57  ;;  %v3003_v26 = vpop.xlane.xlu0 %3002 }
 0x2a9   : > { %v2705_v62 = vpop.f32.mrb[84].mxu1  ;;  %8580 = vst [vmem:[#allocation88_spill] sm:$0xff] %v7412_v2  ;;  %v3399_v51 = vadd.f32 %v3398_v49, %v3304_v56  ;;  %v3144_v17 = vsel %vm2983_vm2, %v7410_v22, 0.0  ;;  %v7423_v54 = vmul.f32 0.0051020407, %v3003_v26 }
 0x2aa   : > { %v2707_v11 = vpop.f32.mrb[85].mxu1  ;;  %8581 = vst [vmem:[#allocation89_spill] sm:$0xff] %v7419_v36  ;;  %v3145_v18 = vadd.f32 %v7406_v47, %v3144_v17  ;;  %v3306_v16 = vmul.f32 %v3216_v7, %v3216_v7  ;;  %v3307_v28 = vmul.f32 %v3217_v43, %v3217_v43  ;;  %v3007_v63 = vpop.xlane.xlu1 %3006  ;;  %v3148_v39 = vsel %vm2983_vm2, %v7419_v36, 0.0 }
 0x2ab   : > { %v2709_v1 = vpop.f32.mrb[86].mxu1  ;;  %8582 = vst [vmem:[#allocation90_spill] sm:$0xff] %v7423_v54  ;;  %3400 = vadd.xlane.f32.xlu1 %v3399_v51  ;;  %v7428_v52 = vmul.f32 0.0051020407, %v3007_v63  ;;  %v3149_v27 = vadd.f32 %v7412_v2, %v3148_v39  ;;  %v3218_v56 = vsub.f32 %v7094_v9, %v7423_v54  ;;  %v3219_v7 = vsub.f32 %v7098_v42, %v7423_v54 }
 0x2ac   : > { %v2711_v58 = vpop.f32.mrb[87].mxu1  ;;  %3146 = vadd.xlane.f32.xlu0 %v3145_v18  ;;  %v3402_v57 = vsel %vm2983_vm2, %v3307_v28, 0.0  ;;  %v2966_v26 = vpop.f32.mrb[84].mxu0 }
 0x2ad   : > { %v3403_v17 = vadd.f32 %v3402_v57, %v3306_v16  ;;  %v7436_v43 = vadd.f32 %v2966_v26, %v2705_v62  ;;  %v2968_v29 = vpop.f32.mrb[85].mxu0  ;;  %v3308_v63 = vmul.f32 %v3218_v56, %v3218_v56  ;;  %v3220_v18 = vsub.f32 %v7101_v48, %v7428_v52 }
 0x2ae   : > { %v3221_v28 = vsub.f32 %v7104_v21, %v7428_v52  ;;  %v7442_v39 = vadd.f32 %v2968_v29, %v2707_v11  ;;  %v2970_v9 = vpop.f32.mrb[86].mxu0  ;;  %v3309_v16 = vmul.f32 %v3219_v7, %v3219_v7 }
 0x2af   : > { %8583 = vst [vmem:[#allocation91_spill] sm:$0xff] %v7436_v43  ;;  %3150 = vadd.xlane.f32.xlu1 %v3149_v27  ;;  %v7444_v57 = vadd.f32 %v2970_v9, %v2709_v1  ;;  %v2972_v42 = vpop.f32.mrb[87].mxu0  ;;  %v3310_v29 = vmul.f32 %v3220_v18, %v3220_v18 }
 0x2b0   : > { %8584 = vst [vmem:[#allocation92_spill] sm:$0xff] %v7442_v39  ;;  %3404 = vadd.xlane.f32.xlu0 %v3403_v17  ;;  %v3311_v26 = vmul.f32 %v3221_v28, %v3221_v28  ;;  %v7446_v54 = vadd.f32 %v2972_v42, %v2711_v58  ;;  %v3011_v56 = vpop.xlane.xlu0 %3010  ;;  %v3406_v48 = vsel %vm2983_vm2, %v3309_v16, 0.0  ;;  %v3152_v21 = vsel %vm2983_vm2, %v7442_v39, 0.0 }
 0x2b1   : > { %v2715_v49 = vpop.f32.mrb[88].mxu1  ;;  %8585 = vst [vmem:[#allocation93_spill] sm:$0xff] %v7444_v57  ;;  %v7451_v11 = vmul.f32 0.0051020407, %v3011_v56  ;;  %v3407_v27 = vadd.f32 %v3406_v48, %v3308_v63 }
 0x2b2   : > { %v2717_v51 = vpop.f32.mrb[89].mxu1  ;;  %8586 = vst [vmem:[#allocation94_spill] sm:$0xff] %v7446_v54  ;;  %v3410_v1 = vsel %vm2983_vm2, %v3311_v26, 0.0  ;;  %v3015_v9 = vpop.xlane.xlu1 %3014  ;;  %v3156_v17 = vsel %vm2983_vm2, %v7446_v54, 0.0 }
 0x2b3   : > { %v2719_v12 = vpop.f32.mrb[90].mxu1  ;;  %v7457_v42 = vmul.f32 0.0051020407, %v3015_v9  ;;  %3408 = vadd.xlane.f32.xlu1 %v3407_v27  ;;  %v3157_v58 = vadd.f32 %v7444_v57, %v3156_v17  ;;  %v3222_v7 = vsub.f32 %v7113_v55, %v7451_v11  ;;  %v3223_v48 = vsub.f32 %v7116_v24, %v7451_v11 }
 0x2b4   : > { %v2720_v62 = vpop.f32.mrb[91].mxu1  ;;  %v3153_v12 = vadd.f32 %v7436_v43, %v3152_v21  ;;  %v2976_v63 = vpop.f32.mrb[88].mxu0  ;;  %v3411_v21 = vadd.f32 %v3410_v1, %v3310_v29 }
 0x2b5   : > { %v7464_v18 = vadd.f32 %v2976_v63, %v2715_v49  ;;  %v2978_v28 = vpop.f32.mrb[89].mxu0  ;;  %v3312_v16 = vmul.f32 %v3222_v7, %v3222_v7  ;;  %v3313_v62 = vmul.f32 %v3223_v48, %v3223_v48  ;;  %v3224_v26 = vsub.f32 %v7119_v45, %v7457_v42 }
 0x2b6   : > { %3154 = vadd.xlane.f32.xlu0 %v3153_v12  ;;  %v7468_v56 = vadd.f32 %v2978_v28, %v2717_v51  ;;  %v3225_v27 = vsub.f32 %v7122_v10, %v7457_v42  ;;  %v2980_v12 = vpop.f32.mrb[90].mxu0 }
 0x2b7   : > { %8587 = vst [vmem:[#allocation95_spill] sm:$0xff] %v7464_v18  ;;  %3158 = vadd.xlane.f32.xlu1 %v3157_v58  ;;  %v3414_v9 = vsel %vm2983_vm2, %v3313_v62, 0.0  ;;  %v2981_v17 = vpop.f32.mrb[91].mxu0  ;;  %v3314_v7 = vmul.f32 %v3224_v26, %v3224_v26 }
 0x2b8   : > { %8588 = vst [vmem:[#allocation96_spill] sm:$0xff] %v7468_v56  ;;  %v3019_v29 = vpop.xlane.xlu0 %3018  ;;  %v3415_v49 = vadd.f32 %v3414_v9, %v3312_v16  ;;  %v3160_v1 = vsel %vm2983_vm2, %v7468_v56, 0.0  ;;  %v3315_v48 = vmul.f32 %v3225_v27, %v3225_v27 }
 0x2b9   : > { %v7475_v63 = vmul.f32 0.0051020407, %v3019_v29  ;;  %v3161_v51 = vadd.f32 %v7464_v18, %v3160_v1 }
 0x2ba   : > { %3412 = vadd.xlane.f32.xlu0 %v3411_v21  ;;  %v3023_v28 = vpop.xlane.xlu1 %3022  ;;  %v3418_v10 = vsel %vm2983_vm2, %v3315_v48, 0.0 }
 0x2bb   : > { %v7479_v12 = vmul.f32 0.0051020407, %v3023_v28  ;;  %3416 = vadd.xlane.f32.xlu1 %v3415_v49  ;;  %v3226_v58 = vsub.f32 %v7131_v60, %v7475_v63  ;;  %v3227_v21 = vsub.f32 %v7134_v32, %v7475_v63  ;;  %v3419_v16 = vadd.f32 %v3418_v10, %v3314_v7 }
 0x2bd   : > { %v3316_v62 = vmul.f32 %v3226_v58, %v3226_v58  ;;  %v3317_v26 = vmul.f32 %v3227_v21, %v3227_v21  ;;  %v3228_v27 = vsub.f32 %v7137_v53, %v7479_v12  ;;  %v3229_v9 = vsub.f32 %v7140_v20, %v7479_v12 }
 0x2be   : > { %3162 = vadd.xlane.f32.xlu0 %v3161_v51 }
 0x2bf   : > { %v3422_v17 = vsel %vm2983_vm2, %v3317_v26, 0.0  ;;  %v3318_v29 = vmul.f32 %v3228_v27, %v3228_v27  ;;  %v3319_v49 = vmul.f32 %v3229_v9, %v3229_v9 }
 0x2c0   : > { %v3027_v1 = vpop.xlane.xlu0 %3026  ;;  %v3423_v48 = vadd.f32 %v3422_v17, %v3316_v62 }
 0x2c1   : > { %v7490_v51 = vmul.f32 0.0051020407, %v3027_v1  ;;  %v3426_v28 = vsel %vm2983_vm2, %v3319_v49, 0.0 }
 0x2c2   : > { %3420 = vadd.xlane.f32.xlu0 %v3419_v16  ;;  %v3031_v10 = vpop.xlane.xlu1 %3030  ;;  %3424 = vadd.xlane.f32.xlu1 %v3423_v48  ;;  %v3427_v7 = vadd.f32 %v3426_v28, %v3318_v29 }
 0x2c3   : > { %v7493_v58 = vmul.f32 0.0051020407, %v3031_v10  ;;  %v3230_v21 = vsub.f32 %v7149_v34, %v7490_v51  ;;  %v3231_v16 = vsub.f32 %v7152_v40, %v7490_v51 }
 0x2c5   : > { %v3320_v26 = vmul.f32 %v3230_v21, %v3230_v21  ;;  %v3321_v27 = vmul.f32 %v3231_v16, %v3231_v16  ;;  %v3232_v62 = vsub.f32 %v7155_v13, %v7493_v58  ;;  %v3233_v9 = vsub.f32 %v7158_v30, %v7493_v58 }
 0x2c6   : > { %3428 = vadd.xlane.f32.xlu0 %v3427_v7 }
 0x2c7   : > { %v3430_v17 = vsel %vm2983_vm2, %v3321_v27, 0.0  ;;  %v3322_v29 = vmul.f32 %v3232_v62, %v3232_v62  ;;  %v3323_v49 = vmul.f32 %v3233_v9, %v3233_v9 }
 0x2c8   : > { %v3035_v1 = vpop.xlane.xlu0 %3034  ;;  %v3431_v48 = vadd.f32 %v3430_v17, %v3320_v26 }
 0x2c9   : > { %v7504_v28 = vmul.f32 0.0051020407, %v3035_v1  ;;  %v3434_v10 = vsel %vm2983_vm2, %v3323_v49, 0.0 }
 0x2ca   : > { %v3039_v40 = vpop.xlane.xlu1 %3038  ;;  %3432 = vadd.xlane.f32.xlu1 %v3431_v48  ;;  %v3435_v7 = vadd.f32 %v3434_v10, %v3322_v29 }
 0x2cb   : > { %v7507_v21 = vmul.f32 0.0051020407, %v3039_v40  ;;  %v3234_v16 = vsub.f32 %v7167_v4, %v7504_v28  ;;  %v3235_v30 = vsub.f32 %v7170_v23, %v7504_v28 }
 0x2cc   : > { %3436 = vadd.xlane.f32.xlu0 %v3435_v7 }
 0x2cd   : > { %v3324_v27 = vmul.f32 %v3234_v16, %v3234_v16  ;;  %v3325_v62 = vmul.f32 %v3235_v30, %v3235_v30  ;;  %v3236_v26 = vsub.f32 %v7173_v35, %v7507_v21  ;;  %v3237_v9 = vsub.f32 %v7176_v38, %v7507_v21 }
 0x2cf   : > { %v3438_v17 = vsel %vm2983_vm2, %v3325_v62, 0.0  ;;  %v3326_v29 = vmul.f32 %v3236_v26, %v3236_v26  ;;  %v3327_v40 = vmul.f32 %v3237_v9, %v3237_v9  ;;  %v5482_v62 = vmov 0  }
 0x2d0   : > { %v3043_v49 = vpop.xlane.xlu0 %3042  ;;  %v3439_v1 = vadd.f32 %v3438_v17, %v3324_v27  ;;  %5163 = vset.pattern.permute.xlu1 %v5482_v62  ;;  %5162 = vset.pattern.permute.xlu0 %v5482_v62 }
 0x2d1   : > { %v7518_v48 = vmul.f32 0.0051020407, %v3043_v49  ;;  %v3442_v10 = vsel %vm2983_vm2, %v3327_v40, 0.0 }
 0x2d2   : > { %v3047_v23 = vpop.xlane.xlu1 %3046  ;;  %3440 = vadd.xlane.f32.xlu1 %v3439_v1  ;;  %v3443_v7 = vadd.f32 %v3442_v10, %v3326_v29 }
 0x2d3   : > { %v7521_v30 = vmul.f32 0.0051020407, %v3047_v23  ;;  %v3238_v16 = vsub.f32 %v7185_v59, %v7518_v48  ;;  %v3239_v38 = vsub.f32 %v7188_v37, %v7518_v48 }
 0x2d4   : > { %3444 = vadd.xlane.f32.xlu0 %v3443_v7 }
 0x2d5   : > { %v3328_v27 = vmul.f32 %v3238_v16, %v3238_v16  ;;  %v3329_v26 = vmul.f32 %v3239_v38, %v3239_v38  ;;  %v3240_v9 = vsub.f32 %v7191_v61, %v7521_v30  ;;  %v3241_v17 = vsub.f32 %v7194_v19, %v7521_v30 }
 0x2d7   : > { %v3446_v23 = vsel %vm2983_vm2, %v3329_v26, 0.0  ;;  %v3330_v29 = vmul.f32 %v3240_v9, %v3240_v9  ;;  %v3331_v40 = vmul.f32 %v3241_v17, %v3241_v17 }
 0x2d8   : > { %v3051_v49 = vpop.xlane.xlu0 %3050  ;;  %v3447_v1 = vadd.f32 %v3446_v23, %v3328_v27 }
 0x2d9   : > { %v7532_v10 = vmul.f32 0.0051020407, %v3051_v49  ;;  %v3450_v37 = vsel %vm2983_vm2, %v3331_v40, 0.0 }
 0x2da   : > { %v3055_v62 = vpop.xlane.xlu1 %3054  ;;  %3448 = vadd.xlane.f32.xlu1 %v3447_v1  ;;  %v3451_v7 = vadd.f32 %v3450_v37, %v3330_v29 }
 0x2db   : > { %v7535_v38 = vmul.f32 0.0051020407, %v3055_v62  ;;  %v3242_v16 = vsub.f32 %v7203_v3, %v7532_v10  ;;  %v3243_v19 = vsub.f32 %v7206_v44, %v7532_v10 }
 0x2dc   : > { %3452 = vadd.xlane.f32.xlu0 %v3451_v7 }
 0x2dd   : > { %v3332_v26 = vmul.f32 %v3242_v16, %v3242_v16  ;;  %v3333_v9 = vmul.f32 %v3243_v19, %v3243_v19  ;;  %v3244_v27 = vsub.f32 %v7209_v6, %v7535_v38  ;;  %v3245_v17 = vsub.f32 %v7212_v31, %v7535_v38 }
 0x2df   : > { %v3454_v23 = vsel %vm2983_vm2, %v3333_v9, 0.0  ;;  %v3334_v37 = vmul.f32 %v3244_v27, %v3244_v27  ;;  %v3335_v29 = vmul.f32 %v3245_v17, %v3245_v17 }
 0x2e0   : > { %v3059_v40 = vpop.xlane.xlu0 %3058  ;;  %v3455_v49 = vadd.f32 %v3454_v23, %v3332_v26 }
 0x2e1   : > { %v7546_v1 = vmul.f32 0.0051020407, %v3059_v40  ;;  %v3458_v62 = vsel %vm2983_vm2, %v3335_v29, 0.0 }
 0x2e2   : > { %v3063_v44 = vpop.xlane.xlu1 %3062  ;;  %3456 = vadd.xlane.f32.xlu1 %v3455_v49  ;;  %v3459_v7 = vadd.f32 %v3458_v62, %v3334_v37 }
 0x2e3   : > { %v7549_v19 = vmul.f32 0.0051020407, %v3063_v44  ;;  %v3246_v16 = vsub.f32 %v7221_v15, %v7546_v1  ;;  %v3247_v31 = vsub.f32 %v7224_v0, %v7546_v1 }
 0x2e4   : > { %3460 = vadd.xlane.f32.xlu0 %v3459_v7 }
 0x2e5   : > { %v3336_v9 = vmul.f32 %v3246_v16, %v3246_v16  ;;  %v3337_v27 = vmul.f32 %v3247_v31, %v3247_v31  ;;  %v3248_v26 = vsub.f32 %v7227_v46, %v7549_v19  ;;  %v3249_v17 = vsub.f32 %v7230_v41, %v7549_v19 }
 0x2e7   : > { %v3462_v23 = vsel %vm2983_vm2, %v3337_v27, 0.0  ;;  %v3338_v37 = vmul.f32 %v3248_v26, %v3248_v26  ;;  %v3339_v44 = vmul.f32 %v3249_v17, %v3249_v17  ;;  %v8589_v17 = vld [vmem:[#allocation46_spill] sm:$0xff] }
 0x2e8   : > { %v3067_v29 = vpop.xlane.xlu0 %3066  ;;  %v3463_v40 = vadd.f32 %v3462_v23, %v3336_v9 }
 0x2e9   : > { %v7560_v49 = vmul.f32 0.0051020407, %v3067_v29  ;;  %v3466_v62 = vsel %vm2983_vm2, %v3339_v44, 0.0 }
 0x2ea   : > { %v3071_v0 = vpop.xlane.xlu1 %3070  ;;  %3464 = vadd.xlane.f32.xlu1 %v3463_v40  ;;  %v3467_v7 = vadd.f32 %v3466_v62, %v3338_v37 }
 0x2eb   : > { %v7563_v31 = vmul.f32 0.0051020407, %v3071_v0  ;;  %v3250_v16 = vsub.f32 %v7239_v50, %v7560_v49  ;;  %v3251_v41 = vsub.f32 %v7242_v8, %v7560_v49 }
 0x2ec   : > { %3468 = vadd.xlane.f32.xlu0 %v3467_v7 }
 0x2ed   : > { %v3340_v27 = vmul.f32 %v3250_v16, %v3250_v16  ;;  %v3341_v26 = vmul.f32 %v3251_v41, %v3251_v41  ;;  %v3252_v9 = vsub.f32 %v7245_v33, %v7563_v31  ;;  %v3253_v23 = vsub.f32 %v8589_v17, %v7563_v31  ;;  %v8590_v16 = vld [vmem:[#allocation47_spill] sm:$0xff]  ;;  %v8591_v17 = vld [vmem:[#allocation48_spill] sm:$0xff] }
 0x2ef   : > { %v3470_v44 = vsel %vm2983_vm2, %v3341_v26, 0.0  ;;  %v3342_v37 = vmul.f32 %v3252_v9, %v3252_v9  ;;  %v3343_v0 = vmul.f32 %v3253_v23, %v3253_v23 }
 0x2f0   : > { %v3075_v29 = vpop.xlane.xlu0 %3074  ;;  %v3471_v40 = vadd.f32 %v3470_v44, %v3340_v27  ;;  %v8592_v27 = vld [vmem:[#allocation49_spill] sm:$0xff]  ;;  %v8593_v44 = vld [vmem:[#allocation50_spill] sm:$0xff] }
 0x2f1   : > { %v7574_v62 = vmul.f32 0.0051020407, %v3075_v29  ;;  %v3474_v50 = vsel %vm2983_vm2, %v3343_v0, 0.0 }
 0x2f2   : > { %v3079_v8 = vpop.xlane.xlu1 %3078  ;;  %3472 = vadd.xlane.f32.xlu1 %v3471_v40  ;;  %v3475_v7 = vadd.f32 %v3474_v50, %v3342_v37 }
 0x2f3   : > { %v7577_v41 = vmul.f32 0.0051020407, %v3079_v8  ;;  %v3254_v33 = vsub.f32 %v8590_v16, %v7574_v62  ;;  %v3255_v46 = vsub.f32 %v8591_v17, %v7574_v62 }
 0x2f4   : > { %3476 = vadd.xlane.f32.xlu0 %v3475_v7  ;;  %v8594_v7 = vld [vmem:[#allocation51_spill] sm:$0xff] }
 0x2f5   : > { %v3344_v26 = vmul.f32 %v3254_v33, %v3254_v33  ;;  %v3345_v9 = vmul.f32 %v3255_v46, %v3255_v46  ;;  %v3256_v23 = vsub.f32 %v8592_v27, %v7577_v41  ;;  %v3257_v0 = vsub.f32 %v8593_v44, %v7577_v41  ;;  %v8595_v44 = vld [vmem:[#allocation52_spill] sm:$0xff] }
 0x2f7   : > { %v3478_v29 = vsel %vm2983_vm2, %v3345_v9, 0.0  ;;  %v3346_v50 = vmul.f32 %v3256_v23, %v3256_v23  ;;  %v3347_v8 = vmul.f32 %v3257_v0, %v3257_v0 }
 0x2f8   : > { %v3083_v37 = vpop.xlane.xlu0 %3082  ;;  %v3479_v40 = vadd.f32 %v3478_v29, %v3344_v26  ;;  %v8596_v26 = vld [vmem:[#allocation53_spill] sm:$0xff]  ;;  %v8597_v29 = vld [vmem:[#allocation54_spill] sm:$0xff] }
 0x2f9   : > { %v7588_v15 = vmul.f32 0.0051020407, %v3083_v37  ;;  %v3482_v16 = vsel %vm2983_vm2, %v3347_v8, 0.0 }
 0x2fa   : > { %v3087_v17 = vpop.xlane.xlu1 %3086  ;;  %3480 = vadd.xlane.f32.xlu1 %v3479_v40  ;;  %v3483_v33 = vadd.f32 %v3482_v16, %v3346_v50 }
 0x2fb   : > { %v7591_v46 = vmul.f32 0.0051020407, %v3087_v17  ;;  %v3258_v27 = vsub.f32 %v8594_v7, %v7588_v15  ;;  %v3259_v6 = vsub.f32 %v8595_v44, %v7588_v15 }
 0x2fc   : > { %3484 = vadd.xlane.f32.xlu0 %v3483_v33  ;;  %v8598_v33 = vld [vmem:[#allocation55_spill] sm:$0xff] }
 0x2fd   : > { %v3348_v9 = vmul.f32 %v3258_v27, %v3258_v27  ;;  %v3349_v23 = vmul.f32 %v3259_v6, %v3259_v6  ;;  %v3260_v0 = vsub.f32 %v8596_v26, %v7591_v46  ;;  %v3261_v8 = vsub.f32 %v8597_v29, %v7591_v46  ;;  %v8599_v29 = vld [vmem:[#allocation56_spill] sm:$0xff] }
 0x2ff   : > { %v3486_v37 = vsel %vm2983_vm2, %v3349_v23, 0.0  ;;  %v3350_v16 = vmul.f32 %v3260_v0, %v3260_v0  ;;  %v3351_v17 = vmul.f32 %v3261_v8, %v3261_v8 }
 0x300   : > { %v3091_v50 = vpop.xlane.xlu0 %3090  ;;  %v3487_v40 = vadd.f32 %v3486_v37, %v3348_v9  ;;  %v8600_v9 = vld [vmem:[#allocation57_spill] sm:$0xff]  ;;  %v8601_v37 = vld [vmem:[#allocation58_spill] sm:$0xff] }
 0x301   : > { %v7602_v3 = vmul.f32 0.0051020407, %v3091_v50  ;;  %v3490_v7 = vsel %vm2983_vm2, %v3351_v17, 0.0 }
 0x302   : > { %v3095_v44 = vpop.xlane.xlu1 %3094  ;;  %3488 = vadd.xlane.f32.xlu1 %v3487_v40  ;;  %v3491_v27 = vadd.f32 %v3490_v7, %v3350_v16 }
 0x303   : > { %v7605_v6 = vmul.f32 0.0051020407, %v3095_v44  ;;  %v3262_v26 = vsub.f32 %v8598_v33, %v7602_v3  ;;  %v3263_v61 = vsub.f32 %v8599_v29, %v7602_v3 }
 0x304   : > { %3492 = vadd.xlane.f32.xlu0 %v3491_v27  ;;  %v8602_v27 = vld [vmem:[#allocation59_spill] sm:$0xff] }
 0x305   : > { %v3352_v23 = vmul.f32 %v3262_v26, %v3262_v26  ;;  %v3353_v0 = vmul.f32 %v3263_v61, %v3263_v61  ;;  %v3264_v8 = vsub.f32 %v8600_v9, %v7605_v6  ;;  %v3265_v17 = vsub.f32 %v8601_v37, %v7605_v6  ;;  %v8603_v37 = vld [vmem:[#allocation60_spill] sm:$0xff] }
 0x307   : > { %v3494_v50 = vsel %vm2983_vm2, %v3353_v0, 0.0  ;;  %v3354_v7 = vmul.f32 %v3264_v8, %v3264_v8  ;;  %v3355_v44 = vmul.f32 %v3265_v17, %v3265_v17 }
 0x308   : > { %v3099_v16 = vpop.xlane.xlu0 %3098  ;;  %v3495_v40 = vadd.f32 %v3494_v50, %v3352_v23  ;;  %v8604_v23 = vld [vmem:[#allocation61_spill] sm:$0xff]  ;;  %v8605_v50 = vld [vmem:[#allocation62_spill] sm:$0xff] }
 0x309   : > { %v7616_v59 = vmul.f32 0.0051020407, %v3099_v16  ;;  %v3498_v33 = vsel %vm2983_vm2, %v3355_v44, 0.0 }
 0x30a   : > { %v3103_v29 = vpop.xlane.xlu1 %3102  ;;  %3496 = vadd.xlane.f32.xlu1 %v3495_v40  ;;  %v3499_v26 = vadd.f32 %v3498_v33, %v3354_v7 }
 0x30b   : > { %v7619_v61 = vmul.f32 0.0051020407, %v3103_v29  ;;  %v3266_v9 = vsub.f32 %v8602_v27, %v7616_v59  ;;  %v3267_v35 = vsub.f32 %v8603_v37, %v7616_v59 }
 0x30c   : > { %3500 = vadd.xlane.f32.xlu0 %v3499_v26  ;;  %v8606_v26 = vld [vmem:[#allocation63_spill] sm:$0xff] }
 0x30d   : > { %v3356_v0 = vmul.f32 %v3266_v9, %v3266_v9  ;;  %v3357_v8 = vmul.f32 %v3267_v35, %v3267_v35  ;;  %v3268_v17 = vsub.f32 %v8604_v23, %v7619_v61  ;;  %v3269_v44 = vsub.f32 %v8605_v50, %v7619_v61  ;;  %v8607_v50 = vld [vmem:[#allocation64_spill] sm:$0xff] }
 0x30f   : > { %v3502_v16 = vsel %vm2983_vm2, %v3357_v8, 0.0  ;;  %v3358_v33 = vmul.f32 %v3268_v17, %v3268_v17  ;;  %v3359_v29 = vmul.f32 %v3269_v44, %v3269_v44 }
 0x310   : > { %v3107_v7 = vpop.xlane.xlu0 %3106  ;;  %v3503_v40 = vadd.f32 %v3502_v16, %v3356_v0  ;;  %v8608_v0 = vld [vmem:[#allocation65_spill] sm:$0xff]  ;;  %v8609_v16 = vld [vmem:[#allocation66_spill] sm:$0xff] }
 0x311   : > { %v7630_v4 = vmul.f32 0.0051020407, %v3107_v7  ;;  %v3506_v27 = vsel %vm2983_vm2, %v3359_v29, 0.0 }
 0x312   : > { %v3111_v37 = vpop.xlane.xlu1 %3110  ;;  %3504 = vadd.xlane.f32.xlu1 %v3503_v40  ;;  %v3507_v9 = vadd.f32 %v3506_v27, %v3358_v33 }
 0x313   : > { %v7633_v35 = vmul.f32 0.0051020407, %v3111_v37  ;;  %v3270_v23 = vsub.f32 %v8606_v26, %v7630_v4  ;;  %v3271_v13 = vsub.f32 %v8607_v50, %v7630_v4 }
 0x314   : > { %3508 = vadd.xlane.f32.xlu0 %v3507_v9  ;;  %v8611_v9 = vld [vmem:[#allocation67_spill] sm:$0xff] }
 0x315   : > { %v3360_v8 = vmul.f32 %v3270_v23, %v3270_v23  ;;  %v3361_v17 = vmul.f32 %v3271_v13, %v3271_v13  ;;  %v3272_v44 = vsub.f32 %v8608_v0, %v7633_v35  ;;  %v3273_v29 = vsub.f32 %v8609_v16, %v7633_v35  ;;  %v8612_v16 = vld [vmem:[#allocation68_spill] sm:$0xff] }
 0x317   : > { %v3510_v7 = vsel %vm2983_vm2, %v3361_v17, 0.0  ;;  %v3362_v27 = vmul.f32 %v3272_v44, %v3272_v44  ;;  %v3363_v37 = vmul.f32 %v3273_v29, %v3273_v29 }
 0x318   : > { %v3115_v33 = vpop.xlane.xlu0 %3114  ;;  %v3511_v40 = vadd.f32 %v3510_v7, %v3360_v8  ;;  %v8613_v8 = vld [vmem:[#allocation69_spill] sm:$0xff]  ;;  %v8614_v7 = vld [vmem:[#allocation70_spill] sm:$0xff] }
 0x319   : > { %v7644_v34 = vmul.f32 0.0051020407, %v3115_v33  ;;  %v3514_v26 = vsel %vm2983_vm2, %v3363_v37, 0.0 }
 0x31a   : > { %v3119_v50 = vpop.xlane.xlu1 %3118  ;;  %3512 = vadd.xlane.f32.xlu1 %v3511_v40  ;;  %v3515_v23 = vadd.f32 %v3514_v26, %v3362_v27 }
 0x31b   : > { %v7647_v13 = vmul.f32 0.0051020407, %v3119_v50  ;;  %v3274_v0 = vsub.f32 %v8611_v9, %v7644_v34  ;;  %v3275_v20 = vsub.f32 %v8612_v16, %v7644_v34 }
 0x31c   : > { %3516 = vadd.xlane.f32.xlu0 %v3515_v23  ;;  %v8616_v23 = vld [vmem:[#allocation71_spill] sm:$0xff] }
 0x31d   : > { %8610 = vst [vmem:[#allocation97_spill] sm:$0xff] %v7647_v13  ;;  %v3364_v17 = vmul.f32 %v3274_v0, %v3274_v0  ;;  %v3365_v44 = vmul.f32 %v3275_v20, %v3275_v20  ;;  %v3276_v29 = vsub.f32 %v8613_v8, %v7647_v13  ;;  %v3277_v37 = vsub.f32 %v8614_v7, %v7647_v13  ;;  %v8617_v7 = vld [vmem:[#allocation72_spill] sm:$0xff] }
 0x31f   : > { %v3518_v33 = vsel %vm2983_vm2, %v3365_v44, 0.0  ;;  %v3366_v26 = vmul.f32 %v3276_v29, %v3276_v29  ;;  %v3367_v50 = vmul.f32 %v3277_v37, %v3277_v37 }
 0x320   : > { %v3123_v27 = vpop.xlane.xlu0 %3122  ;;  %v3519_v40 = vadd.f32 %v3518_v33, %v3364_v17  ;;  %v8618_v17 = vld [vmem:[#allocation73_spill] sm:$0xff]  ;;  %v8619_v33 = vld [vmem:[#allocation74_spill] sm:$0xff] }
 0x321   : > { %v7658_v53 = vmul.f32 0.0051020407, %v3123_v27  ;;  %v3522_v9 = vsel %vm2983_vm2, %v3367_v50, 0.0 }
 0x322   : > { %v3127_v16 = vpop.xlane.xlu1 %3126  ;;  %3520 = vadd.xlane.f32.xlu1 %v3519_v40  ;;  %v3523_v0 = vadd.f32 %v3522_v9, %v3366_v26 }
 0x323   : > { %v7661_v20 = vmul.f32 0.0051020407, %v3127_v16  ;;  %v3278_v8 = vsub.f32 %v8616_v23, %v7658_v53  ;;  %v3279_v32 = vsub.f32 %v8617_v7, %v7658_v53 }
 0x324   : > { %3524 = vadd.xlane.f32.xlu0 %v3523_v0  ;;  %v8621_v0 = vld [vmem:[#allocation75_spill] sm:$0xff] }
 0x325   : > { %8615 = vst [vmem:[#allocation98_spill] sm:$0xff] %v7661_v20  ;;  %v3368_v44 = vmul.f32 %v3278_v8, %v3278_v8  ;;  %v3369_v29 = vmul.f32 %v3279_v32, %v3279_v32  ;;  %v3280_v37 = vsub.f32 %v8618_v17, %v7661_v20  ;;  %v3281_v50 = vsub.f32 %v8619_v33, %v7661_v20  ;;  %v8622_v33 = vld [vmem:[#allocation76_spill] sm:$0xff] }
 0x327   : > { %v3526_v27 = vsel %vm2983_vm2, %v3369_v29, 0.0  ;;  %v3370_v9 = vmul.f32 %v3280_v37, %v3280_v37  ;;  %v3371_v16 = vmul.f32 %v3281_v50, %v3281_v50 }
 0x328   : > { %v3131_v26 = vpop.xlane.xlu0 %3130  ;;  %v3527_v40 = vadd.f32 %v3526_v27, %v3368_v44  ;;  %v8623_v44 = vld [vmem:[#allocation77_spill] sm:$0xff]  ;;  %v8624_v27 = vld [vmem:[#allocation78_spill] sm:$0xff] }
 0x329   : > { %v7672_v60 = vmul.f32 0.0051020407, %v3131_v26  ;;  %v3530_v23 = vsel %vm2983_vm2, %v3371_v16, 0.0 }
 0x32a   : > { %v3135_v7 = vpop.xlane.xlu1 %3134  ;;  %3528 = vadd.xlane.f32.xlu1 %v3527_v40  ;;  %v3531_v8 = vadd.f32 %v3530_v23, %v3370_v9 }
 0x32b   : > { %v7675_v32 = vmul.f32 0.0051020407, %v3135_v7  ;;  %v3282_v17 = vsub.f32 %v8621_v0, %v7672_v60  ;;  %v3283_v45 = vsub.f32 %v8622_v33, %v7672_v60 }
 0x32c   : > { %3532 = vadd.xlane.f32.xlu0 %v3531_v8 }
 0x32d   : > { %8620 = vst [vmem:[#allocation99_spill] sm:$0xff] %v7675_v32  ;;  %v3372_v29 = vmul.f32 %v3282_v17, %v3282_v17  ;;  %v3373_v37 = vmul.f32 %v3283_v45, %v3283_v45  ;;  %v3284_v50 = vsub.f32 %v8623_v44, %v7675_v32  ;;  %v3285_v16 = vsub.f32 %v8624_v27, %v7675_v32 }
 0x32f   : > { %v3534_v23 = vsel %vm2983_vm2, %v3373_v37, 0.0  ;;  %v3374_v7 = vmul.f32 %v3284_v50, %v3284_v50  ;;  %v3375_v9 = vmul.f32 %v3285_v16, %v3285_v16 }
 0x330   : > { %v3393_v26 = vpop.xlane.xlu1 %3392  ;;  %v3139_v40 = vpop.xlane.xlu0 %3138  ;;  %v3535_v24 = vadd.f32 %v3534_v23, %v3372_v29  ;;  %v8627_v29 = vld [vmem:[#allocation83_spill] sm:$0xff] }
 0x331   : > { %v7686_v0 = vmul.f32 0.0051020407, %v3139_v40  ;;  %v3538_v33 = vsel %vm2983_vm2, %v3375_v9, 0.0  ;;  %v8628_v9 = vld [vmem:[#allocation84_spill] sm:$0xff] }
 0x332   : > { %3536 = vadd.xlane.f32.xlu1 %v3535_v24  ;;  %v3539_v17 = vadd.f32 %v3538_v33, %v3374_v7 }
 0x333   : > { %8625 = vst [vmem:[#allocation100_spill] sm:$0xff] %v7686_v0  ;;  %v3286_v8 = vsub.f32 %v7378_v14, %v7686_v0  ;;  %v3287_v27 = vsub.f32 %v7382_v5, %v7686_v0  ;;  %v3717_v0 = vld [vmem:[%s5534_s27 + $0x60] sm:$0xff] }
 0x334   : > { %v3143_v45 = vpop.xlane.xlu1 %3142  ;;  %v3397_v37 = vpop.xlane.xlu0 %3396  ;;  %3540 = vadd.xlane.f32.xlu0 %v3539_v17 }
 0x335   : > { %v7693_v44 = vmul.f32 0.0051020407, %v3143_v45  ;;  %v3376_v50 = vmul.f32 %v3286_v8, %v3286_v8  ;;  %v3377_v16 = vmul.f32 %v3287_v27, %v3287_v27  ;;  %v3571_v7 = vmul.f32 0.0051020407, %v3397_v37 }
 0x337   : > { %8626 = vst [vmem:[#allocation101_spill] sm:$0xff] %v7693_v44  ;;  %v3288_v23 = vsub.f32 %v8627_v29, %v7693_v44  ;;  %v3289_v24 = vsub.f32 %v8628_v9, %v7693_v44  ;;  %v3542_v33 = vsel %vm2983_vm2, %v3377_v16, 0.0  ;;  %v3570_v9 = vmul.f32 0.0051020407, %v3393_v26 }
 0x338   : > { %v3543_v14 = vadd.f32 %v3542_v33, %v3376_v50  ;;  %v3616_v16 = vadd.f32 1e-05, %v3571_v7 }
 0x339   : > { %v3147_v40 = vpop.xlane.xlu0 %3146  ;;  %v3378_v55 = vmul.f32 %v3288_v23, %v3288_v23  ;;  %v3379_v32 = vmul.f32 %v3289_v24, %v3289_v24  ;;  %v3615_v24 = vadd.f32 1e-05, %v3570_v9 }
 0x33a   : > { %v7700_v5 = vmul.f32 0.0051020407, %v3147_v40  ;;  %3544 = vadd.xlane.f32.xlu1 %v3543_v14  ;;  %5368 = vrsqrt.f32 %v3616_v16 }
 0x33b   : > { %v3546_v17 = vsel %vm2983_vm2, %v3379_v32, 0.0  ;;  %5370 = vrsqrt.f32 %v3615_v24 }
 0x33c   : > { %8629 = vst [vmem:[#allocation102_spill] sm:$0xff] %v7700_v5  ;;  %v3547_v45 = vadd.f32 %v3546_v17, %v3378_v55  ;;  %v3290_v27 = vsub.f32 %v7406_v47, %v7700_v5  ;;  %v3291_v8 = vsub.f32 %v7410_v22, %v7700_v5  ;;  %v3401_v55 = vpop.xlane.xlu1 %3400  ;;  %v3706_v17 = vld [vmem:[%s5534_s27 + $0x8] sm:$0xff] }
 0x33d   : > { %v3572_v32 = vmul.f32 0.0051020407, %v3401_v55  ;;  %v3405_v55 = vpop.xlane.xlu0 %3404 }
 0x33e   : > { %3548 = vadd.xlane.f32.xlu0 %v3547_v45  ;;  %v3380_v37 = vmul.f32 %v3290_v27, %v3290_v27  ;;  %v3381_v50 = vmul.f32 %v3291_v8, %v3291_v8  ;;  %v3705_v45 = vld [vmem:[%s5534_s27] sm:$0xff] }
 0x33f   : > { %v3617_v33 = vadd.f32 1e-05, %v3572_v32  ;;  %v8630_v8 = vld [vmem:[#allocation81_spill] sm:$0xff] }
 0x340   : > { %v3550_v23 = vsel %vm2983_vm2, %v3381_v50, 0.0  ;;  %v3796_v50 = vld [vmem:[%s5539_s30 + $0x8] sm:$0xff]  ;;  %v3151_v24 = vpop.xlane.xlu1 %3150 }
 0x341   : > { %v3551_v14 = vadd.f32 %v3550_v23, %v3380_v37  ;;  %5372 = vrsqrt.f32 %v3617_v33  ;;  %v3707_v37 = vld [vmem:[%s5534_s27 + $0x10] sm:$0xff] }
 0x343   : > { %3552 = vadd.xlane.f32.xlu1 %v3551_v14  ;;  %v7716_v14 = vmul.f32 0.0051020407, %v3151_v24 }
 0x344   : > { %v5369_v40 = vpop.eup %5368 }
 0x345   : > { %v3751_v26 = vmul.f32 %v5369_v40, %v3706_v17  ;;  %v5371_v7 = vpop.eup %5370  ;;  %8631 = vst [vmem:[#allocation81_spill] sm:$0xff] %v7716_v14  ;;  %v3293_v32 = vsub.f32 %v7419_v36, %v7716_v14  ;;  %v3292_v33 = vsub.f32 %v7412_v2, %v7716_v14  ;;  %v3155_v17 = vpop.xlane.xlu0 %3154  ;;  %v3708_v2 = vld [vmem:[%s5534_s27 + $0x18] sm:$0xff] }
 0x346   : > { %v3750_v27 = vmul.f32 %v5371_v7, %v3705_v45  ;;  %v7723_v7 = vmul.f32 0.0051020407, %v3155_v17 }
 0x347   : > { %v3841_v22 = vmul.f32 %v3751_v26, %v8630_v8  ;;  %v3383_v40 = vmul.f32 %v3293_v32, %v3293_v32 }
 0x348   : > { %8632 = vst [vmem:[#allocation103_spill] sm:$0xff] %v7723_v7  ;;  %v3295_v8 = vsub.f32 %v7442_v39, %v7723_v7 }
 0x349   : > { %v3886_v9 = vsub.f32 %v3796_v50, %v3841_v22  ;;  %v3382_v22 = vmul.f32 %v3292_v33, %v3292_v33  ;;  %v3573_v50 = vmul.f32 0.0051020407, %v3405_v55 }
 0x34b   : > { %v5373_v16 = vpop.eup %5372 }
 0x34c   : > { %v7713_v23 = vmul.f32 %v5373_v16, %v3707_v37  ;;  %v3385_v16 = vmul.f32 %v3295_v8, %v3295_v8  ;;  %v3618_v37 = vadd.f32 1e-05, %v3573_v50 }
 0x34e   : > { %v3558_v32 = vsel %vm2983_vm2, %v3385_v16, 0.0  ;;  %5374 = vrsqrt.f32 %v3618_v37  ;;  %v3798_v37 = vld [vmem:[%s5539_s30 + $0x18] sm:$0xff] }
 0x354   : > { %3937 = vperm.xlu1 %5163, %v3751_v26   ;;  %3932 = vperm.xlu0 %5162, %v3750_v27   ;;  %v3554_v26 = vsel %vm2983_vm2, %v3383_v40, 0.0  ;;  %v3409_v40 = vpop.xlane.xlu1 %3408 }
 0x355   : > { %v3555_v45 = vadd.f32 %v3554_v26, %v3382_v22  ;;  %v3574_v17 = vmul.f32 0.0051020407, %v3409_v40  ;;  %v8633_v22 = vld [vmem:[#allocation79_spill] sm:$0xff] }
 0x356   : > { %v3840_v26 = vmul.f32 %v3750_v27, %v8633_v22  ;;  %v3709_v27 = vld [vmem:[%s5534_s27 + $0x20] sm:$0xff] }
 0x357   : > { %v3619_v39 = vadd.f32 1e-05, %v3574_v17 }
 0x358   : > { %4252 = vperm.xlu1 %5163, %v3886_v9   ;;  %v3294_v9 = vsub.f32 %v7436_v43, %v7723_v7  ;;  %v3159_v55 = vpop.xlane.xlu1 %3158  ;;  %v5375_v43 = vpop.eup %5374  ;;  %v8636_v7 = vld [vmem:[#allocation85_spill] sm:$0xff] }
 0x359   : > { %5376 = vrsqrt.f32 %v3619_v39  ;;  %v3753_v8 = vmul.f32 %v5375_v43, %v3708_v2  ;;  %v7736_v40 = vmul.f32 0.0051020407, %v3159_v55  ;;  %v3413_v43 = vpop.xlane.xlu0 %3412 }
 0x35a   : > { %v3384_v24 = vmul.f32 %v3294_v9, %v3294_v9 }
 0x35b   : > { %v3843_v9 = vmul.f32 %v3753_v8, %v7408_v25  ;;  %8634 = vst [vmem:[#allocation79_spill] sm:$0xff] %v7736_v40  ;;  %v3296_v25 = vsub.f32 %v7444_v57, %v7736_v40 }
 0x35c   : > { %3942 = vperm.xlu1 %5163, %v7713_v23   ;;  %v3559_v33 = vadd.f32 %v3558_v32, %v3384_v24  ;;  %v3417_v50 = vpop.xlane.xlu1 %3416 }
 0x35d   : > { %v3888_v24 = vsub.f32 %v3798_v37, %v3843_v9  ;;  %v3163_v55 = vpop.xlane.xlu0 %3162 }
 0x35e   : > { %v7751_v47 = vmul.f32 0.0051020407, %v3163_v55 }
 0x360   : > { %v3425_v16 = vpop.xlane.xlu1 %3424  ;;  %8635 = vst [vmem:[#allocation104_spill] sm:$0xff] %v7751_v47 }
 0x363   : > { %v5377_v32 = vpop.eup %5376 }
 0x364   : > { %v3754_v17 = vmul.f32 %v5377_v32, %v3709_v27  ;;  %v3421_v27 = vpop.xlane.xlu0 %3420 }
 0x373   : > { %3556 = vadd.xlane.f32.xlu0 %v3555_v45  ;;  %v3795_v45 = vld [vmem:[%s5539_s30] sm:$0xff] }
 0x374   : > { %v3885_v36 = vsub.f32 %v3795_v45, %v3840_v26  ;;  %v3386_v45 = vmul.f32 %v3296_v25, %v3296_v25  ;;  %v3299_v25 = vsub.f32 %v7468_v56, %v7751_v47 }
 0x376   : > { %v3389_v55 = vmul.f32 %v3299_v25, %v3299_v25 }
 0x380   : > { %3560 = vadd.xlane.f32.xlu1 %v3559_v33  ;;  %v3433_v33 = vpop.xlane.xlu1 %3432 }
 0x384   : > { %v3441_v22 = vpop.xlane.xlu1 %3440 }
 0x388   : > { %v7740_v2 = vpop.xlane.xlu1 %3448 }
 0x389   : > { %4247 = vperm.xlu0 %5162, %v3885_v36   ;;  %v3297_v36 = vsub.f32 %v7446_v54, %v7736_v40  ;;  %v3575_v40 = vmul.f32 0.0051020407, %v3413_v43  ;;  %v3566_v43 = vsel %vm2983_vm2, %v3389_v55, 0.0  ;;  %v3799_v55 = vld [vmem:[%s5539_s30 + $0x20] sm:$0xff] }
 0x38b   : > { %v3387_v39 = vmul.f32 %v3297_v36, %v3297_v36  ;;  %v3578_v36 = vmul.f32 0.0051020407, %v3425_v16  ;;  %v3580_v16 = vmul.f32 0.0051020407, %v3433_v33 }
 0x38c   : > { %v7744_v26 = vpop.xlane.xlu1 %3456 }
 0x38d   : > { %v3625_v25 = vadd.f32 1e-05, %v3580_v16 }
 0x390   : > { %v7747_v9 = vpop.xlane.xlu1 %3464 }
 0x391   : > { %3947 = vperm.xlu1 %5163, %v3753_v8   ;;  %v3562_v8 = vsel %vm2983_vm2, %v3387_v39, 0.0  ;;  %v3429_v39 = vpop.xlane.xlu0 %3428 }
 0x392   : > { %v3563_v37 = vadd.f32 %v3562_v8, %v3386_v45  ;;  %v3623_v45 = vadd.f32 1e-05, %v3578_v36  ;;  %v3579_v8 = vmul.f32 0.0051020407, %v3429_v39  ;;  %v3797_v36 = vld [vmem:[%s5539_s30 + $0x10] sm:$0xff] }
 0x393   : > { %v3711_v39 = vld [vmem:[%s5534_s27 + $0x30] sm:$0xff] }
 0x394   : > { %v7749_v32 = vpop.xlane.xlu1 %3472 }
 0x395   : > { %4262 = vperm.xlu1 %5163, %v3888_v24   ;;  %v3576_v24 = vmul.f32 0.0051020407, %v3417_v50  ;;  %v3298_v50 = vsub.f32 %v7464_v18, %v7751_v47  ;;  %v3437_v56 = vpop.xlane.xlu0 %3436  ;;  %v3842_v18 = vmul.f32 %v7713_v23, %v8636_v7  ;;  %v3577_v23 = vmul.f32 0.0051020407, %v3421_v27 }
 0x397   : > { %v3621_v54 = vadd.f32 1e-05, %v3576_v24  ;;  %v3620_v24 = vadd.f32 1e-05, %v3575_v40  ;;  %v3388_v14 = vmul.f32 %v3298_v50, %v3298_v50  ;;  %v3581_v40 = vmul.f32 0.0051020407, %v3437_v56 }
 0x398   : > { %v7753_v29 = vpop.xlane.xlu1 %3480  ;;  %v3887_v33 = vsub.f32 %v3797_v36, %v3842_v18  ;;  %v8637_v50 = vld [vmem:[#allocation90_spill] sm:$0xff] }
 0x399   : > { %3952 = vperm.xlu1 %5163, %v3754_v17   ;;  %5378 = vrsqrt.f32 %v3621_v54  ;;  %v3624_v54 = vadd.f32 1e-05, %v3579_v8  ;;  %v3844_v5 = vmul.f32 %v3754_v17, %v8637_v50  ;;  %v3626_v7 = vadd.f32 1e-05, %v3581_v40  ;;  %v3801_v17 = vld [vmem:[%s5539_s30 + $0x30] sm:$0xff] }
 0x39a   : > { %5380 = vrsqrt.f32 %v3623_v45  ;;  %v3567_v45 = vadd.f32 %v3566_v43, %v3388_v14  ;;  %v3622_v43 = vadd.f32 1e-05, %v3577_v23  ;;  %v3584_v50 = vmul.f32 0.0051020407, %v7740_v2 }
 0x39b   : > { %5382 = vrsqrt.f32 %v3620_v24  ;;  %v3582_v24 = vmul.f32 0.0051020407, %v3441_v22  ;;  %v3889_v56 = vsub.f32 %v3799_v55, %v3844_v5 }
 0x39c   : > { %v7757_v57 = vpop.xlane.xlu1 %3488  ;;  %5384 = vrsqrt.f32 %v3624_v54  ;;  %v3445_v54 = vpop.xlane.xlu0 %3444 }
 0x39d   : > { %5386 = vrsqrt.f32 %v3625_v25  ;;  %v3627_v27 = vadd.f32 1e-05, %v3582_v24  ;;  %v3583_v36 = vmul.f32 0.0051020407, %v3445_v54 }
 0x39e   : > { %5388 = vrsqrt.f32 %v3626_v7 }
 0x39f   : > { %5390 = vrsqrt.f32 %v3622_v43 }
 0x3a0   : > { %5392 = vrsqrt.f32 %v3627_v27  ;;  %v3453_v55 = vpop.xlane.xlu0 %3452 }
 0x3a3   : > { %v5379_v47 = vpop.eup %5378 }
 0x3a4   : > { %v7773_v20 = vmul.f32 %v5379_v47, %v3711_v39  ;;  %v5381_v14 = vpop.eup %5380  ;;  %v3713_v47 = vld [vmem:[%s5534_s27 + $0x40] sm:$0xff] }
 0x3a5   : > { %v5383_v39 = vpop.eup %5382  ;;  %v7784_v40 = vmul.f32 %v5381_v14, %v3713_v47  ;;  %v3715_v14 = vld [vmem:[%s5534_s27 + $0x50] sm:$0xff]  ;;  %v3585_v47 = vmul.f32 0.0051020407, %v3453_v55 }
 0x3a6   : > { %v3846_v18 = vmul.f32 %v7773_v20, %v7451_v11  ;;  %v5385_v5 = vpop.eup %5384  ;;  %v3628_v11 = vadd.f32 1e-05, %v3583_v36 }
 0x3a7   : > { %v3848_v54 = vmul.f32 %v7784_v40, %v7475_v63  ;;  %v3716_v63 = vld [vmem:[%s5534_s27 + $0x58] sm:$0xff] }
 0x3a8   : > { %3564 = vadd.xlane.f32.xlu0 %v3563_v37  ;;  %v7761_v37 = vpop.xlane.xlu1 %3496  ;;  %v3891_v22 = vsub.f32 %v3801_v17, %v3846_v18  ;;  %v3803_v18 = vld [vmem:[%s5539_s30 + $0x40] sm:$0xff]  ;;  %5394 = vrsqrt.f32 %v3628_v11  ;;  %v3629_v17 = vadd.f32 1e-05, %v3584_v50  ;;  %v3461_v11 = vpop.xlane.xlu0 %3460 }
 0x3a9   : > { %v3893_v43 = vsub.f32 %v3803_v18, %v3848_v54  ;;  %v3805_v18 = vld [vmem:[%s5539_s30 + $0x50] sm:$0xff] }
 0x3aa   : > { %5396 = vrsqrt.f32 %v3629_v17 }
 0x3ac   : > { %v7763_v44 = vpop.xlane.xlu1 %3504  ;;  %v3469_v17 = vpop.xlane.xlu0 %3468 }
 0x3b0   : > { %v7770_v8 = vpop.xlane.xlu1 %3512 }
 0x3b4   : > { %v7776_v16 = vpop.xlane.xlu1 %3520 }
 0x3b8   : > { %v7782_v25 = vpop.xlane.xlu1 %3528 }
 0x3bd   : > { %3568 = vadd.xlane.f32.xlu1 %v3567_v45  ;;  %v3714_v45 = vld [vmem:[%s5534_s27 + $0x48] sm:$0xff] }
 0x3be   : > { %4257 = vperm.xlu0 %5162, %v3887_v33   ;;  %v3710_v33 = vld [vmem:[%s5534_s27 + $0x28] sm:$0xff]  ;;  %v7791_v7 = vmul.f32 %v5385_v5, %v3714_v45  ;;  %v3586_v5 = vmul.f32 0.0051020407, %v7744_v26  ;;  %v3630_v45 = vadd.f32 1e-05, %v3585_v47 }
 0x3bf   : > { %v7789_v23 = vpop.xlane.xlu1 %3536  ;;  %v3755_v24 = vmul.f32 %v5383_v39, %v3710_v33 }
 0x3c0   : > { %v3631_v26 = vadd.f32 1e-05, %v3586_v5  ;;  %5398 = vrsqrt.f32 %v3630_v45  ;;  %v3588_v5 = vmul.f32 0.0051020407, %v7747_v9  ;;  %v8638_v45 = vld [vmem:[#allocation5_spill] sm:$0xff]  ;;  %v3802_v9 = vld [vmem:[%s5539_s30 + $0x38] sm:$0xff] }
 0x3c1   : > { %v3845_v27 = vmul.f32 %v3755_v24, %v7428_v52 }
 0x3c2   : > { %4267 = vperm.xlu0 %5162, %v3889_v56   ;;  %v5387_v56 = vpop.eup %5386  ;;  %5400 = vrsqrt.f32 %v3631_v26 }
 0x3c3   : > { %v7801_v36 = vmul.f32 %v5387_v56, %v3715_v14  ;;  %v5389_v39 = vpop.eup %5388  ;;  %v3712_v14 = vld [vmem:[%s5534_s27 + $0x38] sm:$0xff] }
 0x3c4   : > { %v5391_v33 = vpop.eup %5390  ;;  %v7808_v52 = vmul.f32 %v5389_v39, %v3716_v63  ;;  %v3718_v63 = vld [vmem:[%s5534_s27 + $0x68] sm:$0xff] }
 0x3c5   : > { %v3850_v54 = vmul.f32 %v7801_v36, %v7490_v51  ;;  %v5393_v56 = vpop.eup %5392 }
 0x3c6   : > { %4277 = vperm.xlu0 %5162, %v3891_v22   ;;  %v3800_v22 = vld [vmem:[%s5539_s30 + $0x28] sm:$0xff]  ;;  %v7816_v39 = vmul.f32 %v5393_v56, %v3717_v0 }
 0x3c7   : > { %v7798_v2 = vpop.xlane.xlu1 %3544  ;;  %v3890_v55 = vsub.f32 %v3800_v22, %v3845_v27  ;;  %v3757_v27 = vmul.f32 %v5391_v33, %v3712_v14  ;;  %v5395_v22 = vpop.eup %5394 }
 0x3c8   : > { %v7823_v33 = vmul.f32 %v5395_v22, %v3718_v63 }
 0x3c9   : > { %v3847_v56 = vmul.f32 %v3757_v27, %v7457_v42 }
 0x3ca   : > { %3977 = vperm.xlu0 %5162, %v7791_v7  }
 0x3cb   : > { %v3892_v22 = vsub.f32 %v3802_v9, %v3847_v56 }
 0x3ce   : > { %3957 = vperm.xlu1 %5163, %v3755_v24   ;;  %4287 = vperm.xlu0 %5162, %v3893_v43   ;;  %v3587_v24 = vmul.f32 0.0051020407, %v3461_v11  ;;  %v3895_v43 = vsub.f32 %v3805_v18, %v3850_v54  ;;  %v3477_v54 = vpop.xlane.xlu0 %3476  ;;  %v5397_v18 = vpop.eup %5396 }
 0x3cf   : > { %v5399_v63 = vpop.eup %5398 }
 0x3d0   : > { %v7806_v50 = vpop.xlane.xlu1 %3552  ;;  %v3632_v51 = vadd.f32 1e-05, %v3587_v24  ;;  %v3807_v24 = vld [vmem:[%s5539_s30 + $0x60] sm:$0xff] }
 0x3d2   : > { %4272 = vperm.xlu1 %5163, %v3890_v55   ;;  %3987 = vperm.xlu0 %5162, %v7808_v52   ;;  %v8639_v55 = vld [vmem:[#allocation6_spill] sm:$0xff]  ;;  %5402 = vrsqrt.f32 %v3632_v51  ;;  %v3485_v42 = vpop.xlane.xlu0 %3484  ;;  %v3590_v51 = vmul.f32 0.0051020407, %v7749_v32 }
 0x3d4   : > { %v3938_v47 = vpop.permute.xlu1 %3937  ;;  %v3635_v32 = vadd.f32 1e-05, %v3590_v51  ;;  %v3723_v51 = vld [vmem:[%s5534_s27 + $0x90] sm:$0xff] }
 0x3d5   : > { %v4157_v11 = vmul.f32 %v8638_v45, %v3938_v47  ;;  %v4158_v13 = vmul.f32 %v8639_v55, %v3938_v47  ;;  %v3633_v47 = vadd.f32 1e-05, %v3588_v5  ;;  %v3589_v45 = vmul.f32 0.0051020407, %v3469_v17  ;;  %v5401_v17 = vpop.eup %5400 }
 0x3d6   : > { %3962 = vperm.xlu1 %5163, %v7773_v20   ;;  %4297 = vperm.xlu0 %5162, %v3895_v43   ;;  %v3852_v20 = vmul.f32 %v7816_v39, %v7504_v28  ;;  %v3719_v43 = vld [vmem:[%s5534_s27 + $0x70] sm:$0xff]  ;;  %v3493_v5 = vpop.xlane.xlu0 %3492 }
 0x3d7   : > { %5404 = vrsqrt.f32 %v3633_v47  ;;  %v3592_v47 = vmul.f32 0.0051020407, %v7753_v29 }
 0x3d8   : > { %v4253_v0 = vpop.permute.xlu1 %4252  ;;  %v3897_v28 = vsub.f32 %v3807_v24, %v3852_v20  ;;  %v3804_v20 = vld [vmem:[%s5539_s30 + $0x48] sm:$0xff] }
 0x3d9   : > { %v4472_v14 = vadd.f32 %v4253_v0, %v4157_v11  ;;  %v4473_v26 = vadd.f32 %v4253_v0, %v4158_v13  ;;  %v7835_v13 = vmul.f32 %v5397_v18, %v3719_v43  ;;  %v3720_v11 = vld [vmem:[%s5534_s27 + $0x78] sm:$0xff]  ;;  %v3849_v0 = vmul.f32 %v7791_v7, %v7479_v12  ;;  %v3809_v18 = vld [vmem:[%s5539_s30 + $0x70] sm:$0xff]  ;;  %v3722_v7 = vld [vmem:[%s5534_s27 + $0x88] sm:$0xff] }
 0x3da   : > { %3967 = vperm.xlu1 %5163, %v3757_v27   ;;  %3997 = vperm.xlu0 %5162, %v7823_v33   ;;  %v3634_v27 = vadd.f32 1e-05, %v3589_v45  ;;  %v7839_v55 = vmul.f32 %v5399_v63, %v3720_v11  ;;  %v7850_v9 = vpop.xlane.xlu0 %3500  ;;  %v3806_v11 = vld [vmem:[%s5539_s30 + $0x58] sm:$0xff]  ;;  %v3637_v29 = vadd.f32 1e-05, %v3592_v47 }
 0x3db   : > { %4562 = vst [vmem:[%s5549_s12 + $0x10] sm:$0xff] %v4472_v14  ;;  %4563 = vst.msk [vmem:[%s5549_s12 + $0x18] sm:$0xff] %vm2983_vm2, %v4473_v26  ;;  %v3854_v56 = vmul.f32 %v7835_v13, %v7518_v48  ;;  %v3721_v14 = vld [vmem:[%s5534_s27 + $0x80] sm:$0xff]  ;;  %v3591_v26 = vmul.f32 0.0051020407, %v3477_v54  ;;  %v3894_v24 = vsub.f32 %v3804_v20, %v3849_v0  ;;  %v3724_v20 = vld [vmem:[%s5534_s27 + $0x98] sm:$0xff] }
 0x3dc   : > { %5406 = vrsqrt.f32 %v3634_v27  ;;  %v7852_v12 = vmul.f32 %v5401_v17, %v3721_v14  ;;  %v5403_v48 = vpop.eup %5402  ;;  %v3811_v27 = vld [vmem:[%s5539_s30 + $0x80] sm:$0xff]  ;;  %v3593_v17 = vmul.f32 0.0051020407, %v3485_v42 }
 0x3dd   : > { %v3899_v43 = vsub.f32 %v3809_v18, %v3854_v56  ;;  %5408 = vrsqrt.f32 %v3635_v32  ;;  %v7858_v54 = vmul.f32 %v5403_v48, %v3722_v7  ;;  %v3594_v18 = vmul.f32 0.0051020407, %v7757_v57  ;;  %v3813_v48 = vld [vmem:[%s5539_s30 + $0x90] sm:$0xff]  ;;  %v3725_v7 = vld [vmem:[%s5534_s27 + $0xa0] sm:$0xff] }
 0x3de   : > { %4282 = vperm.xlu1 %5163, %v3892_v22   ;;  %4307 = vperm.xlu0 %5162, %v3897_v28   ;;  %v7856_v45 = vpop.xlane.xlu0 %3508  ;;  %v3851_v22 = vmul.f32 %v7808_v52, %v7493_v58  ;;  %v3856_v28 = vmul.f32 %v7852_v12, %v7532_v10  ;;  %v3853_v32 = vmul.f32 %v7823_v33, %v7507_v21 }
 0x3df   : > { %v3639_v57 = vadd.f32 1e-05, %v3594_v18  ;;  %v3728_v18 = vld [vmem:[%s5534_s27 + $0xb8] sm:$0xff] }
 0x3e0   : > { %v3896_v56 = vsub.f32 %v3806_v11, %v3851_v22  ;;  %v3901_v58 = vsub.f32 %v3811_v27, %v3856_v28  ;;  %v3726_v28 = vld [vmem:[%s5534_s27 + $0xa8] sm:$0xff]  ;;  %v3855_v27 = vmul.f32 %v7839_v55, %v7521_v30 }
 0x3e1   : > { %v5405_v63 = vpop.eup %5404 }
 0x3e2   : > { %3972 = vperm.xlu1 %5163, %v7784_v40   ;;  %4007 = vperm.xlu0 %5162, %v7839_v55   ;;  %v3636_v40 = vadd.f32 1e-05, %v3591_v26  ;;  %v7869_v0 = vpop.xlane.xlu0 %3516  ;;  %v7871_v52 = vmul.f32 %v5405_v63, %v3723_v51  ;;  %v3596_v63 = vmul.f32 0.0051020407, %v7761_v37 }
 0x3e4   : > { %5410 = vrsqrt.f32 %v3636_v40  ;;  %v3858_v26 = vmul.f32 %v7871_v52, %v7546_v1  ;;  %v3595_v40 = vmul.f32 0.0051020407, %v3493_v5  ;;  %v3641_v37 = vadd.f32 1e-05, %v3596_v63  ;;  %v8640_v63 = vld [vmem:[#allocation3_spill] sm:$0xff] }
 0x3e5   : > { %5412 = vrsqrt.f32 %v3637_v29 }
 0x3e6   : > { %4292 = vperm.xlu1 %5163, %v3894_v24   ;;  %4317 = vperm.xlu0 %5162, %v3899_v43   ;;  %v5407_v10 = vpop.eup %5406  ;;  %v7875_v14 = vpop.xlane.xlu0 %3524  ;;  %v3808_v43 = vld [vmem:[%s5539_s30 + $0x68] sm:$0xff]  ;;  %v3903_v21 = vsub.f32 %v3813_v48, %v3858_v26 }
 0x3e7   : > { %v7877_v42 = vmul.f32 %v5407_v10, %v3724_v20  ;;  %v5409_v24 = vpop.eup %5408  ;;  %v3898_v22 = vsub.f32 %v3808_v43, %v3853_v32  ;;  %v3597_v10 = vmul.f32 0.0051020407, %v7850_v9  ;;  %v3598_v32 = vmul.f32 0.0051020407, %v7763_v44 }
 0x3e8   : > { %v7890_v33 = vmul.f32 %v5409_v24, %v3725_v7  ;;  %v3857_v9 = vmul.f32 %v7858_v54, %v7535_v38  ;;  %v3812_v7 = vld [vmem:[%s5539_s30 + $0x88] sm:$0xff]  ;;  %v3599_v44 = vmul.f32 0.0051020407, %v7856_v45  ;;  %v8641_v45 = vld [vmem:[#allocation4_spill] sm:$0xff] }
 0x3ea   : > { %3982 = vperm.xlu1 %5163, %v7801_v36   ;;  %4017 = vperm.xlu0 %5162, %v7858_v54   ;;  %v3638_v36 = vadd.f32 1e-05, %v3593_v17  ;;  %v7888_v47 = vpop.xlane.xlu0 %3532  ;;  %v3860_v51 = vmul.f32 %v7890_v33, %v7560_v49  ;;  %v3810_v17 = vld [vmem:[%s5539_s30 + $0x78] sm:$0xff] }
 0x3eb   : > { %v3900_v30 = vsub.f32 %v3810_v17, %v3855_v27 }
 0x3ec   : > { %5414 = vrsqrt.f32 %v3638_v36 }
 0x3ed   : > { %5416 = vrsqrt.f32 %v3639_v57  ;;  %v3817_v57 = vld [vmem:[%s5539_s30 + $0xb0] sm:$0xff] }
 0x3ee   : > { %4302 = vperm.xlu1 %5163, %v3896_v56   ;;  %4327 = vperm.xlu0 %5162, %v3901_v58   ;;  %v5411_v1 = vpop.eup %5410  ;;  %v7894_v11 = vpop.xlane.xlu0 %3540  ;;  %v3815_v56 = vld [vmem:[%s5539_s30 + $0xa0] sm:$0xff]  ;;  %v3727_v58 = vld [vmem:[%s5534_s27 + $0xb0] sm:$0xff] }
 0x3ef   : > { %v7896_v5 = vmul.f32 %v5411_v1, %v3726_v28  ;;  %v5413_v29 = vpop.eup %5412  ;;  %v3905_v55 = vsub.f32 %v3815_v56, %v3860_v51  ;;  %v3902_v1 = vsub.f32 %v3812_v7, %v3857_v9  ;;  %v3859_v56 = vmul.f32 %v7877_v42, %v7549_v19 }
 0x3f0   : > { %v7910_v49 = vmul.f32 %v5413_v29, %v3727_v58  ;;  %v3601_v19 = vmul.f32 0.0051020407, %v7869_v0  ;;  %v3602_v0 = vmul.f32 0.0051020407, %v7776_v16 }
 0x3f2   : > { %3992 = vperm.xlu1 %5163, %v7816_v39   ;;  %4027 = vperm.xlu0 %5162, %v7877_v42   ;;  %v3640_v39 = vadd.f32 1e-05, %v3595_v40  ;;  %v7908_v20 = vpop.xlane.xlu0 %3548  ;;  %v3862_v43 = vmul.f32 %v7910_v49, %v7574_v62  ;;  %v3729_v40 = vld [vmem:[%s5534_s27 + $0xc0] sm:$0xff]  ;;  %v3730_v62 = vld [vmem:[%s5534_s27 + $0xc8] sm:$0xff]  ;;  %v3647_v16 = vadd.f32 1e-05, %v3602_v0 }
 0x3f3   : > { %v3820_v0 = vld [vmem:[%s5539_s30 + $0xc8] sm:$0xff] }
 0x3f4   : > { %5418 = vrsqrt.f32 %v3640_v39  ;;  %v3907_v38 = vsub.f32 %v3817_v57, %v3862_v43  ;;  %v3600_v39 = vmul.f32 0.0051020407, %v7770_v8  ;;  %v3646_v43 = vadd.f32 1e-05, %v3601_v19 }
 0x3f5   : > { %5420 = vrsqrt.f32 %v3641_v37 }
 0x3f6   : > { %4312 = vperm.xlu1 %5163, %v3898_v22   ;;  %4337 = vperm.xlu0 %5162, %v3903_v21   ;;  %v5415_v36 = vpop.eup %5414  ;;  %v3933_v26 = vpop.permute.xlu0 %3932  ;;  %v3643_v22 = vadd.f32 1e-05, %v3598_v32  ;;  %v3645_v32 = vadd.f32 1e-05, %v3600_v39 }
 0x3f7   : > { %v7914_v24 = vmul.f32 %v5415_v36, %v3728_v18  ;;  %v5417_v48 = vpop.eup %5416  ;;  %v4155_v27 = vmul.f32 %v8640_v63, %v3933_v26  ;;  %v4156_v51 = vmul.f32 %v8641_v45, %v3933_v26  ;;  %v3819_v36 = vld [vmem:[%s5539_s30 + $0xc0] sm:$0xff]  ;;  %v3731_v18 = vld [vmem:[%s5534_s27 + $0xd0] sm:$0xff] }
 0x3f8   : > { %v7928_v54 = vmul.f32 %v5417_v48, %v3729_v40  ;;  %v3861_v48 = vmul.f32 %v7896_v5, %v7563_v31  ;;  %v3816_v40 = vld [vmem:[%s5539_s30 + $0xa8] sm:$0xff] }
 0x3fa   : > { %4002 = vperm.xlu1 %5163, %v7835_v13   ;;  %4037 = vperm.xlu0 %5162, %v7896_v5   ;;  %v3642_v13 = vadd.f32 1e-05, %v3597_v10  ;;  %v3864_v58 = vmul.f32 %v7928_v54, %v7588_v15  ;;  %v7940_v10 = vpop.permute.xlu1 %3942  ;;  %v3906_v31 = vsub.f32 %v3816_v40, %v3861_v48  ;;  %v8642_v5 = vld [vmem:[#allocation9_spill] sm:$0xff]  ;;  %v3825_v48 = vld [vmem:[%s5539_s30 + $0xf0] sm:$0xff] }
 0x3fc   : > { %5422 = vrsqrt.f32 %v3642_v13  ;;  %v3909_v42 = vsub.f32 %v3819_v36, %v3864_v58  ;;  %v3823_v36 = vld [vmem:[%s5539_s30 + $0xe0] sm:$0xff] }
 0x3fd   : > { %5424 = vrsqrt.f32 %v3643_v22 }
 0x3fe   : > { %4322 = vperm.xlu1 %5163, %v3900_v30   ;;  %4347 = vperm.xlu0 %5162, %v3905_v55   ;;  %v5419_v28 = vpop.eup %5418  ;;  %v3814_v55 = vld [vmem:[%s5539_s30 + $0x98] sm:$0xff] }
 0x3ff   : > { %v7934_v17 = vmul.f32 %v5419_v28, %v3730_v62  ;;  %v5421_v37 = vpop.eup %5420  ;;  %v3904_v15 = vsub.f32 %v3814_v55, %v3859_v56  ;;  %v3603_v28 = vmul.f32 0.0051020407, %v7875_v14  ;;  %v3604_v56 = vmul.f32 0.0051020407, %v7782_v25  ;;  %v3818_v55 = vld [vmem:[%s5539_s30 + $0xb8] sm:$0xff] }
 0x400   : > { %v7926_v21 = vpop.xlane.xlu0 %3556  ;;  %v7951_v13 = vmul.f32 %v5421_v37, %v3731_v18  ;;  %v3863_v37 = vmul.f32 %v7914_v24, %v7577_v41  ;;  %v3735_v18 = vld [vmem:[%s5534_s27 + $0xf0] sm:$0xff] }
 0x401   : > { %v3648_v14 = vadd.f32 1e-05, %v3603_v28  ;;  %v3649_v25 = vadd.f32 1e-05, %v3604_v56  ;;  %v3741_v56 = vld [vmem:[%s5534_s27 + $0x120] sm:$0xff] }
 0x402   : > { %4012 = vperm.xlu1 %5163, %v7852_v12   ;;  %4047 = vperm.xlu0 %5162, %v7914_v24   ;;  %v3644_v12 = vadd.f32 1e-05, %v3599_v44  ;;  %v3866_v22 = vmul.f32 %v7951_v13, %v7602_v3  ;;  %v3908_v19 = vsub.f32 %v3818_v55, %v3863_v37  ;;  %v3611_v37 = vmul.f32 0.0051020407, %v7926_v21  ;;  %v3826_v21 = vld [vmem:[%s5539_s30 + $0xf8] sm:$0xff] }
 0x404   : > { %5426 = vrsqrt.f32 %v3644_v12  ;;  %v8643_v12 = vld [vmem:[#allocation10_spill] sm:$0xff]  ;;  %v3656_v55 = vadd.f32 1e-05, %v3611_v37  ;;  %v3835_v37 = vld [vmem:[%s5539_s30 + $0x140] sm:$0xff] }
 0x405   : > { %5428 = vrsqrt.f32 %v3645_v32  ;;  %v3605_v32 = vmul.f32 0.0051020407, %v7888_v47  ;;  %v3865_v47 = vmul.f32 %v7934_v17, %v7591_v46 }
 0x406   : > { %4332 = vperm.xlu1 %5163, %v3902_v1   ;;  %4357 = vperm.xlu0 %5162, %v3907_v38   ;;  %v5423_v26 = vpop.eup %5422  ;;  %v3821_v1 = vld [vmem:[%s5539_s30 + $0xd0] sm:$0xff]  ;;  %v3733_v38 = vld [vmem:[%s5534_s27 + $0xe0] sm:$0xff]  ;;  %5430 = vrsqrt.f32 %v3646_v43 }
 0x407   : > { %v5425_v7 = vpop.eup %5424  ;;  %v3911_v3 = vsub.f32 %v3821_v1, %v3866_v22  ;;  %5432 = vrsqrt.f32 %v3647_v16  ;;  %v3910_v22 = vsub.f32 %v3820_v0, %v3865_v47 }
 0x408   : > { %v4248_v29 = vpop.permute.xlu0 %4247  ;;  %v7971_v63 = vmul.f32 %v5425_v7, %v3733_v38  ;;  %5434 = vrsqrt.f32 %v3648_v14  ;;  %v3737_v7 = vld [vmem:[%s5534_s27 + $0x100] sm:$0xff]  ;;  %v3829_v14 = vld [vmem:[%s5539_s30 + $0x110] sm:$0xff] }
 0x409   : > { %v4470_v30 = vadd.f32 %v4248_v29, %v4155_v27  ;;  %v4471_v8 = vadd.f32 %v4248_v29, %v4156_v51  ;;  %5436 = vrsqrt.f32 %v3649_v25 }
 0x40a   : > { %4022 = vperm.xlu1 %5163, %v7871_v52   ;;  %4057 = vperm.xlu0 %5162, %v7934_v17   ;;  %v3732_v52 = vld [vmem:[%s5534_s27 + $0xd8] sm:$0xff] }
 0x40b   : > { %4560 = vst [vmem:[%s5549_s12] sm:$0xff] %v4470_v30  ;;  %4561 = vst.msk [vmem:[%s5549_s12 + $0x8] sm:$0xff] %vm2983_vm2, %v4471_v8  ;;  %v7959_v57 = vmul.f32 %v5423_v26, %v3732_v52  ;;  %v3868_v30 = vmul.f32 %v7971_v63, %v7616_v59 }
 0x40d   : > { %v7953_v9 = vpop.xlane.xlu1 %3560  ;;  %v3913_v41 = vsub.f32 %v3823_v36, %v3868_v30 }
 0x40e   : > { %4342 = vperm.xlu1 %5163, %v3904_v15   ;;  %4367 = vperm.xlu0 %5162, %v3909_v42   ;;  %v5427_v27 = vpop.eup %5426  ;;  %v3736_v15 = vld [vmem:[%s5534_s27 + $0xf8] sm:$0xff]  ;;  %v3650_v42 = vadd.f32 1e-05, %v3605_v32 }
 0x40f   : > { %v5429_v8 = vpop.eup %5428 }
 0x410   : > { %v7990_v24 = vmul.f32 %v5429_v8, %v3735_v18  ;;  %v5431_v59 = vpop.eup %5430  ;;  %5438 = vrsqrt.f32 %v3650_v42 }
 0x411   : > { %v3948_v44 = vpop.permute.xlu1 %3947  ;;  %v7994_v26 = vmul.f32 %v5431_v59, %v3736_v15  ;;  %v5433_v43 = vpop.eup %5432  ;;  %v3743_v59 = vld [vmem:[%s5534_s27 + $0x130] sm:$0xff] }
 0x412   : > { %4032 = vperm.xlu1 %5163, %v7890_v33   ;;  %4067 = vperm.xlu0 %5162, %v7959_v57   ;;  %v4161_v62 = vmul.f32 %v8642_v5, %v3948_v44  ;;  %v4162_v39 = vmul.f32 %v8643_v12, %v3948_v44  ;;  %v3734_v33 = vld [vmem:[%s5534_s27 + $0xe8] sm:$0xff]  ;;  %v3870_v52 = vmul.f32 %v7990_v24, %v7630_v4  ;;  %v5435_v4 = vpop.eup %5434  ;;  %v3827_v5 = vld [vmem:[%s5539_s30 + $0x100] sm:$0xff] }
 0x413   : > { %v7978_v58 = vmul.f32 %v5427_v27, %v3734_v33  ;;  %v8006_v17 = vmul.f32 %v5433_v43, %v3737_v7  ;;  %v3738_v44 = vld [vmem:[%s5534_s27 + $0x108] sm:$0xff]  ;;  %v5437_v28 = vpop.eup %5436  ;;  %v3871_v36 = vmul.f32 %v7994_v26, %v7633_v35  ;;  %v8644_v35 = vld [vmem:[#allocation7_spill] sm:$0xff] }
 0x414   : > { %v3915_v46 = vsub.f32 %v3825_v48, %v3870_v52  ;;  %v8010_v38 = vmul.f32 %v5435_v4, %v3738_v44  ;;  %v3744_v48 = vld [vmem:[%s5534_s27 + $0x138] sm:$0xff] }
 0x415   : > { %v4263_v45 = vpop.permute.xlu1 %4262  ;;  %v3872_v16 = vmul.f32 %v8006_v17, %v7644_v34  ;;  %v3916_v42 = vsub.f32 %v3826_v21, %v3871_v36  ;;  %v8648_v44 = vld [vmem:[#allocation12_spill] sm:$0xff] }
 0x416   : > { %v4476_v51 = vadd.f32 %v4263_v45, %v4161_v62  ;;  %v4477_v29 = vadd.f32 %v4263_v45, %v4162_v39  ;;  %4352 = vperm.xlu1 %5163, %v3906_v31   ;;  %4377 = vperm.xlu0 %5162, %v3911_v3   ;;  %v3822_v31 = vld [vmem:[%s5539_s30 + $0xd8] sm:$0xff]  ;;  %v3739_v62 = vld [vmem:[%s5534_s27 + $0x110] sm:$0xff] }
 0x417   : > { %v3740_v3 = vld [vmem:[%s5534_s27 + $0x118] sm:$0xff] }
 0x418   : > { %4566 = vst [vmem:[%s5549_s12 + $0x30] sm:$0xff] %v4476_v51  ;;  %4567 = vst.msk [vmem:[%s5549_s12 + $0x38] sm:$0xff] %vm2983_vm2, %v4477_v29  ;;  %v3824_v29 = vld [vmem:[%s5539_s30 + $0xe8] sm:$0xff]  ;;  %v3748_v21 = vld [vmem:[%s5534_s27 + $0x158] sm:$0xff] }
 0x419   : > { %v3953_v0 = vpop.permute.xlu1 %3952 }
 0x41a   : > { %4042 = vperm.xlu1 %5163, %v7910_v49   ;;  %4077 = vperm.xlu0 %5162, %v7978_v58   ;;  %v3606_v49 = vmul.f32 0.0051020407, %v7789_v23  ;;  %v3607_v23 = vmul.f32 0.0051020407, %v7894_v11  ;;  %v3867_v11 = vmul.f32 %v7959_v57, %v7605_v6  ;;  %v3917_v6 = vsub.f32 %v3827_v5, %v3872_v16  ;;  %v5439_v34 = vpop.eup %5438  ;;  %v3828_v5 = vld [vmem:[%s5539_s30 + $0x108] sm:$0xff] }
 0x41b   : > { %v8022_v57 = vmul.f32 %v5437_v28, %v3739_v62  ;;  %v8026_v45 = vmul.f32 %v5439_v34, %v3740_v3  ;;  %v3833_v62 = vld [vmem:[%s5539_s30 + $0x130] sm:$0xff] }
 0x41c   : > { %v3651_v40 = vadd.f32 1e-05, %v3606_v49  ;;  %v3652_v1 = vadd.f32 1e-05, %v3607_v23  ;;  %v3912_v39 = vsub.f32 %v3822_v31, %v3867_v11  ;;  %v4159_v49 = vmul.f32 %v8644_v35, %v7940_v10  ;;  %v8649_v11 = vld [vmem:[#allocation100_spill] sm:$0xff]  ;;  %v8655_v35 = vld [vmem:[#allocation14_spill] sm:$0xff] }
 0x41d   : > { %v3874_v33 = vmul.f32 %v8022_v57, %v7658_v53 }
 0x41e   : > { %4362 = vperm.xlu1 %5163, %v3908_v19   ;;  %4387 = vperm.xlu0 %5162, %v3913_v41   ;;  %5440 = vrsqrt.f32 %v3651_v40  ;;  %v3831_v41 = vld [vmem:[%s5539_s30 + $0x120] sm:$0xff] }
 0x41f   : > { %5442 = vrsqrt.f32 %v3652_v1  ;;  %v3919_v8 = vsub.f32 %v3829_v14, %v3874_v33  ;;  %v4164_v1 = vmul.f32 %v8648_v44, %v3953_v0 }
 0x422   : > { %4052 = vperm.xlu1 %5163, %v7928_v54   ;;  %4087 = vperm.xlu0 %5162, %v7994_v26   ;;  %v3608_v54 = vmul.f32 0.0051020407, %v7798_v2  ;;  %v3609_v2 = vmul.f32 0.0051020407, %v7908_v20  ;;  %v3869_v20 = vmul.f32 %v7978_v58, %v7619_v61  ;;  %v3742_v58 = vld [vmem:[%s5534_s27 + $0x128] sm:$0xff]  ;;  %v8645_v26 = vld [vmem:[#allocation8_spill] sm:$0xff] }
 0x423   : > { %v4160_v47 = vmul.f32 %v8645_v26, %v7940_v10 }
 0x424   : > { %v3653_v12 = vadd.f32 1e-05, %v3608_v54  ;;  %v3654_v27 = vadd.f32 1e-05, %v3609_v2  ;;  %v3914_v30 = vsub.f32 %v3824_v29, %v3869_v20 }
 0x426   : > { %4372 = vperm.xlu1 %5163, %v3910_v22   ;;  %4397 = vperm.xlu0 %5162, %v3915_v46   ;;  %5444 = vrsqrt.f32 %v3653_v12  ;;  %v8646_v22 = vld [vmem:[#allocation97_spill] sm:$0xff]  ;;  %v8647_v46 = vld [vmem:[#allocation11_spill] sm:$0xff] }
 0x427   : > { %5446 = vrsqrt.f32 %v3654_v27  ;;  %v3873_v10 = vmul.f32 %v8010_v38, %v8646_v22  ;;  %v4163_v4 = vmul.f32 %v8647_v46, %v3953_v0  ;;  %v3749_v46 = vld [vmem:[%s5534_s27 + $0x160] sm:$0xff] }
 0x428   : > { %v5441_v51 = vpop.eup %5440 }
 0x429   : > { %v8038_v61 = vmul.f32 %v5441_v51, %v3741_v56  ;;  %v5443_v53 = vpop.eup %5442  ;;  %v8651_v51 = vld [vmem:[#allocation102_spill] sm:$0xff] }
 0x42a   : > { %4062 = vperm.xlu1 %5163, %v7951_v13   ;;  %4097 = vperm.xlu0 %5162, %v8010_v38   ;;  %v3610_v13 = vmul.f32 0.0051020407, %v7806_v50  ;;  %v8044_v25 = vmul.f32 %v5443_v53, %v3742_v58  ;;  %v3745_v38 = vld [vmem:[%s5534_s27 + $0x140] sm:$0xff] }
 0x42b   : > { %v3876_v32 = vmul.f32 %v8038_v61, %v7672_v60 }
 0x42c   : > { %v3655_v50 = vadd.f32 1e-05, %v3610_v13  ;;  %v3746_v13 = vld [vmem:[%s5534_s27 + $0x148] sm:$0xff] }
 0x42d   : > { %v3921_v60 = vsub.f32 %v3831_v41, %v3876_v32 }
 0x42e   : > { %4382 = vperm.xlu1 %5163, %v3912_v39   ;;  %4407 = vperm.xlu0 %5162, %v3917_v6   ;;  %5448 = vrsqrt.f32 %v3655_v50  ;;  %v3918_v39 = vsub.f32 %v3828_v5, %v3873_v10  ;;  %v3830_v50 = vld [vmem:[%s5539_s30 + $0x118] sm:$0xff] }
 0x42f   : > { %5450 = vrsqrt.f32 %v3656_v55 }
 0x430   : > { %v5445_v19 = vpop.eup %5444 }
 0x431   : > { %v8057_v52 = vmul.f32 %v5445_v19, %v3743_v59  ;;  %v5447_v43 = vpop.eup %5446  ;;  %v8652_v19 = vld [vmem:[#allocation99_spill] sm:$0xff] }
 0x432   : > { %4072 = vperm.xlu1 %5163, %v7971_v63   ;;  %4107 = vperm.xlu0 %5162, %v8026_v45   ;;  %v3612_v63 = vmul.f32 0.0051020407, %v7953_v9  ;;  %v8067_v54 = vmul.f32 %v5447_v43, %v3744_v48  ;;  %v3877_v41 = vmul.f32 %v8044_v25, %v8652_v19  ;;  %v8653_v59 = vld [vmem:[#allocation103_spill] sm:$0xff] }
 0x433   : > { %v3878_v16 = vmul.f32 %v8057_v52, %v8649_v11 }
 0x434   : > { %v3657_v9 = vadd.f32 1e-05, %v3612_v63 }
 0x435   : > { %v3565_v18 = vpop.xlane.xlu0 %3564  ;;  %v3923_v6 = vsub.f32 %v3833_v62, %v3878_v16 }
 0x436   : > { %4392 = vperm.xlu1 %5163, %v3914_v30   ;;  %4417 = vperm.xlu0 %5162, %v3919_v8   ;;  %v3613_v15 = vmul.f32 0.0051020407, %v3565_v18  ;;  %5452 = vrsqrt.f32 %v3657_v9  ;;  %v3747_v30 = vld [vmem:[%s5534_s27 + $0x150] sm:$0xff] }
 0x438   : > { %v3658_v23 = vadd.f32 1e-05, %v3613_v15  ;;  %v5449_v28 = vpop.eup %5448  ;;  %v8654_v15 = vld [vmem:[#allocation13_spill] sm:$0xff] }
 0x439   : > { %v8079_v34 = vmul.f32 %v5449_v28, %v3745_v38  ;;  %v5451_v3 = vpop.eup %5450  ;;  %v3839_v38 = vld [vmem:[%s5539_s30 + $0x160] sm:$0xff] }
 0x43a   : > { %4082 = vperm.xlu1 %5163, %v7990_v24   ;;  %4117 = vperm.xlu0 %5162, %v8044_v25   ;;  %5454 = vrsqrt.f32 %v3658_v23  ;;  %v8082_v20 = vmul.f32 %v5451_v3, %v3746_v13  ;;  %v8656_v23 = vld [vmem:[#allocation15_spill] sm:$0xff]  ;;  %v8661_v3 = vld [vmem:[#allocation18_spill] sm:$0xff] }
 0x43b   : > { %v3880_v29 = vmul.f32 %v8079_v34, %v8651_v51 }
 0x43d   : > { %v4258_v24 = vpop.permute.xlu0 %4257  ;;  %v3925_v55 = vsub.f32 %v3835_v37, %v3880_v29  ;;  %v8662_v29 = vld [vmem:[#allocation81_spill] sm:$0xff]  ;;  %v3836_v37 = vld [vmem:[%s5539_s30 + $0x148] sm:$0xff] }
 0x43e   : > { %v4474_v7 = vadd.f32 %v4258_v24, %v4159_v49  ;;  %v4475_v40 = vadd.f32 %v4258_v24, %v4160_v47  ;;  %4402 = vperm.xlu1 %5163, %v3916_v42   ;;  %4427 = vperm.xlu0 %5162, %v3921_v60   ;;  %v3832_v47 = vld [vmem:[%s5539_s30 + $0x128] sm:$0xff]  ;;  %v3837_v60 = vld [vmem:[%s5539_s30 + $0x150] sm:$0xff] }
 0x43f   : > { %v3922_v25 = vsub.f32 %v3832_v47, %v3877_v41 }
 0x440   : > { %4564 = vst [vmem:[%s5549_s12 + $0x20] sm:$0xff] %v4474_v7  ;;  %4565 = vst.msk [vmem:[%s5549_s12 + $0x28] sm:$0xff] %vm2983_vm2, %v4475_v40  ;;  %v5453_v14 = vpop.eup %5452 }
 0x441   : > { %v4268_v31 = vpop.permute.xlu0 %4267 }
 0x442   : > { %v4478_v12 = vadd.f32 %v4268_v31, %v4163_v4  ;;  %v4479_v2 = vadd.f32 %v4268_v31, %v4164_v1  ;;  %4092 = vperm.xlu1 %5163, %v8006_v17   ;;  %4127 = vperm.xlu0 %5162, %v8067_v54   ;;  %v8650_v17 = vld [vmem:[#allocation98_spill] sm:$0xff]  ;;  %v8658_v4 = vld [vmem:[#allocation101_spill] sm:$0xff]  ;;  %v3834_v31 = vld [vmem:[%s5539_s30 + $0x138] sm:$0xff] }
 0x443   : > { %v3875_v33 = vmul.f32 %v8026_v45, %v8650_v17  ;;  %v8095_v45 = vmul.f32 %v5453_v14, %v3747_v30  ;;  %v3879_v44 = vmul.f32 %v8067_v54, %v8658_v4  ;;  %v3881_v14 = vmul.f32 %v8082_v20, %v8662_v29  ;;  %v8679_v29 = vld [vmem:[#allocation34_spill] sm:$0xff] }
 0x444   : > { %4568 = vst [vmem:[%s5549_s12 + $0x40] sm:$0xff] %v4478_v12  ;;  %4569 = vst.msk [vmem:[%s5549_s12 + $0x48] sm:$0xff] %vm2983_vm2, %v4479_v2  ;;  %v5455_v63 = vpop.eup %5454  ;;  %v8659_v2 = vld [vmem:[#allocation104_spill] sm:$0xff] }
 0x445   : > { %v4278_v27 = vpop.permute.xlu0 %4277  ;;  %v3920_v58 = vsub.f32 %v3830_v50, %v3875_v33  ;;  %v3882_v9 = vmul.f32 %v8095_v45, %v8653_v59  ;;  %v3924_v12 = vsub.f32 %v3834_v31, %v3879_v44 }
 0x446   : > { %4412 = vperm.xlu1 %5163, %v3918_v39   ;;  %4437 = vperm.xlu0 %5162, %v3923_v6   ;;  %v8660_v39 = vld [vmem:[#allocation17_spill] sm:$0xff] }
 0x447   : > { %v3927_v48 = vsub.f32 %v3837_v60, %v3882_v9  ;;  %v8669_v60 = vld [vmem:[#allocation79_spill] sm:$0xff] }
 0x449   : > { %v8088_v56 = vpop.permute.xlu0 %3977 }
 0x44a   : > { %v3569_v8 = vpop.xlane.xlu1 %3568  ;;  %4102 = vperm.xlu1 %5163, %v8022_v57   ;;  %4137 = vperm.xlu0 %5162, %v8082_v20   ;;  %v8100_v57 = vmul.f32 %v5455_v63, %v3748_v21  ;;  %v3926_v63 = vsub.f32 %v3836_v37, %v3881_v14  ;;  %v8665_v20 = vld [vmem:[#allocation21_spill] sm:$0xff]  ;;  %v8666_v21 = vld [vmem:[#allocation22_spill] sm:$0xff] }
 0x44b   : > { %v3614_v53 = vmul.f32 0.0051020407, %v3569_v8  ;;  %v8663_v8 = vld [vmem:[#allocation19_spill] sm:$0xff] }
 0x44d   : > { %v3659_v36 = vadd.f32 1e-05, %v3614_v53  ;;  %v8097_v18 = vpop.permute.xlu0 %4287 }
 0x44e   : > { %v3958_v32 = vpop.permute.xlu1 %3957  ;;  %4422 = vperm.xlu1 %5163, %v3920_v58   ;;  %4447 = vperm.xlu0 %5162, %v3925_v55   ;;  %v8664_v58 = vld [vmem:[#allocation20_spill] sm:$0xff] }
 0x44f   : > { %5456 = vrsqrt.f32 %v3659_v36  ;;  %v4165_v42 = vmul.f32 %v8654_v15, %v3958_v32  ;;  %v4166_v49 = vmul.f32 %v8655_v35, %v3958_v32  ;;  %v4173_v36 = vmul.f32 %v8665_v20, %v8088_v56  ;;  %v8667_v35 = vld [vmem:[#allocation23_spill] sm:$0xff] }
 0x450   : > { %v4174_v32 = vmul.f32 %v8666_v21, %v8088_v56  ;;  %v8681_v21 = vld [vmem:[#allocation36_spill] sm:$0xff] }
 0x451   : > { %v8108_v26 = vpop.permute.xlu0 %3987 }
 0x452   : > { %v4273_v43 = vpop.permute.xlu1 %4272  ;;  %4112 = vperm.xlu1 %5163, %v8038_v61   ;;  %4147 = vperm.xlu0 %5162, %v8100_v57   ;;  %v8657_v61 = vld [vmem:[#allocation16_spill] sm:$0xff] }
 0x453   : > { %v4480_v0 = vadd.f32 %v4273_v43, %v4165_v42  ;;  %v4481_v24 = vadd.f32 %v4273_v43, %v4166_v49  ;;  %v8668_v49 = vld [vmem:[#allocation24_spill] sm:$0xff]  ;;  %v3883_v43 = vmul.f32 %v8100_v57, %v8669_v60 }
 0x455   : > { %4570 = vst [vmem:[%s5549_s12 + $0x50] sm:$0xff] %v4480_v0  ;;  %4571 = vst.msk [vmem:[%s5549_s12 + $0x58] sm:$0xff] %vm2983_vm2, %v4481_v24  ;;  %v4298_v7 = vpop.permute.xlu0 %4297  ;;  %v8670_v0 = vld [vmem:[#allocation25_spill] sm:$0xff] }
 0x456   : > { %v3963_v40 = vpop.permute.xlu1 %3962  ;;  %4432 = vperm.xlu1 %5163, %v3922_v25   ;;  %4457 = vperm.xlu0 %5162, %v3927_v48   ;;  %v4177_v24 = vmul.f32 %v8670_v0, %v8108_v26  ;;  %v8671_v25 = vld [vmem:[#allocation26_spill] sm:$0xff]  ;;  %v8685_v0 = vld [vmem:[#allocation40_spill] sm:$0xff] }
 0x457   : > { %v4167_v22 = vmul.f32 %v8656_v23, %v3963_v40  ;;  %v4168_v10 = vmul.f32 %v8657_v61, %v3963_v40  ;;  %v4178_v48 = vmul.f32 %v8671_v25, %v8108_v26  ;;  %v3838_v61 = vld [vmem:[%s5539_s30 + $0x158] sm:$0xff]  ;;  %v8686_v25 = vld [vmem:[#allocation41_spill] sm:$0xff] }
 0x458   : > { %v3928_v57 = vsub.f32 %v3838_v61, %v3883_v43  ;;  %v8684_v43 = vld [vmem:[#allocation39_spill] sm:$0xff] }
 0x459   : > { %v5457_v1 = vpop.eup %5456  ;;  %v4482_v11 = vadd.f32 %v4278_v27, %v4167_v22  ;;  %v4483_v16 = vadd.f32 %v4278_v27, %v4168_v10  ;;  %v8122_v28 = vpop.permute.xlu0 %3997 }
 0x45a   : > { %v3968_v5 = vpop.permute.xlu1 %3967  ;;  %4122 = vperm.xlu1 %5163, %v8057_v52   ;;  %v3794_v62 = vmul.f32 %v5457_v1, %v3749_v46  ;;  %v8673_v1 = vld [vmem:[#allocation28_spill] sm:$0xff] }
 0x45b   : > { %4572 = vst [vmem:[%s5549_s12 + $0x60] sm:$0xff] %v4482_v11  ;;  %4573 = vst.msk [vmem:[%s5549_s12 + $0x68] sm:$0xff] %vm2983_vm2, %v4483_v16  ;;  %v4169_v6 = vmul.f32 %v8660_v39, %v3968_v5  ;;  %v4170_v27 = vmul.f32 %v8661_v3, %v3968_v5  ;;  %v8674_v16 = vld [vmem:[#allocation29_spill] sm:$0xff]  ;;  %v8675_v5 = vld [vmem:[#allocation30_spill] sm:$0xff] }
 0x45c   : > { %v3884_v54 = vmul.f32 %v3794_v62, %v8659_v2  ;;  %v4181_v31 = vmul.f32 %v8674_v16, %v8122_v28  ;;  %v8690_v16 = vld [vmem:[#allocation45_spill] sm:$0xff] }
 0x45d   : > { %v4308_v13 = vpop.permute.xlu0 %4307 }
 0x45e   : > { %v4283_v17 = vpop.permute.xlu1 %4282  ;;  %4442 = vperm.xlu1 %5163, %v3924_v12   ;;  %v3929_v33 = vsub.f32 %v3839_v38, %v3884_v54 }
 0x45f   : > { %v4484_v52 = vadd.f32 %v4283_v17, %v4169_v6  ;;  %v4485_v51 = vadd.f32 %v4283_v17, %v4170_v27  ;;  %v8676_v17 = vld [vmem:[#allocation31_spill] sm:$0xff] }
 0x460   : > { %4467 = vperm.xlu0 %5162, %v3929_v33   ;;  %v8677_v33 = vld [vmem:[#allocation32_spill] sm:$0xff] }
 0x461   : > { %4574 = vst [vmem:[%s5549_s12 + $0x70] sm:$0xff] %v4484_v52  ;;  %4575 = vst.msk [vmem:[%s5549_s12 + $0x78] sm:$0xff] %vm2983_vm2, %v4485_v51  ;;  %v8138_v50 = vpop.permute.xlu0 %4007  ;;  %v8678_v52 = vld [vmem:[#allocation33_spill] sm:$0xff] }
 0x462   : > { %v3973_v30 = vpop.permute.xlu1 %3972  ;;  %4132 = vperm.xlu1 %5163, %v8079_v34   ;;  %v4185_v51 = vmul.f32 %v8678_v52, %v8138_v50  ;;  %v4186_v14 = vmul.f32 %v8679_v29, %v8138_v50  ;;  %v8694_v52 = vld [vmem:[#allocation49_spill] sm:$0xff]  ;;  %v8695_v29 = vld [vmem:[#allocation50_spill] sm:$0xff] }
 0x463   : > { %v4171_v53 = vmul.f32 %v8663_v8, %v3973_v30  ;;  %v4172_v55 = vmul.f32 %v8664_v58, %v3973_v30 }
 0x465   : > { %v4486_v19 = vadd.f32 %v8097_v18, %v4171_v53  ;;  %v4487_v41 = vadd.f32 %v8097_v18, %v4172_v55  ;;  %v4318_v59 = vpop.permute.xlu0 %4317 }
 0x466   : > { %v4293_v9 = vpop.permute.xlu1 %4292  ;;  %4452 = vperm.xlu1 %5163, %v3926_v63  }
 0x467   : > { %4576 = vst [vmem:[%s5549_s12 + $0x80] sm:$0xff] %v4486_v19  ;;  %4577 = vst.msk [vmem:[%s5549_s12 + $0x88] sm:$0xff] %vm2983_vm2, %v4487_v41  ;;  %v4488_v34 = vadd.f32 %v4293_v9, %v4173_v36  ;;  %v4489_v15 = vadd.f32 %v4293_v9, %v4174_v32  ;;  %v8680_v36 = vld [vmem:[#allocation35_spill] sm:$0xff]  ;;  %v8682_v19 = vld [vmem:[#allocation37_spill] sm:$0xff] }
 0x469   : > { %4578 = vst [vmem:[%s5549_s12 + $0x90] sm:$0xff] %v4488_v34  ;;  %4579 = vst.msk [vmem:[%s5549_s12 + $0x98] sm:$0xff] %vm2983_vm2, %v4489_v15  ;;  %v4018_v42 = vpop.permute.xlu0 %4017 }
 0x46a   : > { %v3983_v56 = vpop.permute.xlu1 %3982  ;;  %4142 = vperm.xlu1 %5163, %v8095_v45   ;;  %v4189_v41 = vmul.f32 %v8682_v19, %v4018_v42  ;;  %v8698_v19 = vld [vmem:[#allocation53_spill] sm:$0xff] }
 0x46b   : > { %v4175_v18 = vmul.f32 %v8667_v35, %v3983_v56  ;;  %v4176_v47 = vmul.f32 %v8668_v49, %v3983_v56 }
 0x46d   : > { %v4490_v40 = vadd.f32 %v4298_v7, %v4175_v18  ;;  %v4491_v23 = vadd.f32 %v4298_v7, %v4176_v47  ;;  %v4328_v22 = vpop.permute.xlu0 %4327  ;;  %v8672_v7 = vld [vmem:[#allocation27_spill] sm:$0xff] }
 0x46e   : > { %v4303_v45 = vpop.permute.xlu1 %4302  ;;  %4152 = vperm.xlu1 %5163, %v3794_v62   ;;  %v4182_v62 = vmul.f32 %v8675_v5, %v8122_v28  ;;  %v8691_v5 = vld [vmem:[#allocation46_spill] sm:$0xff] }
 0x46f   : > { %4580 = vst [vmem:[%s5549_s12 + $0xa0] sm:$0xff] %v4490_v40  ;;  %4581 = vst.msk [vmem:[%s5549_s12 + $0xa8] sm:$0xff] %vm2983_vm2, %v4491_v23  ;;  %v4492_v10 = vadd.f32 %v4303_v45, %v4177_v24  ;;  %v4493_v46 = vadd.f32 %v4303_v45, %v4178_v48  ;;  %v8687_v40 = vld [vmem:[#allocation42_spill] sm:$0xff] }
 0x471   : > { %4582 = vst [vmem:[%s5549_s12 + $0xb0] sm:$0xff] %v4492_v10  ;;  %4583 = vst.msk [vmem:[%s5549_s12 + $0xb8] sm:$0xff] %vm2983_vm2, %v4493_v46  ;;  %v4028_v4 = vpop.permute.xlu0 %4027 }
 0x472   : > { %v3993_v26 = vpop.permute.xlu1 %3992  ;;  %4462 = vperm.xlu1 %5163, %v3928_v57   ;;  %v4193_v48 = vmul.f32 %v8686_v25, %v4028_v4  ;;  %v4194_v23 = vmul.f32 %v8687_v40, %v4028_v4  ;;  %v8702_v25 = vld [vmem:[#allocation57_spill] sm:$0xff]  ;;  %v8703_v40 = vld [vmem:[#allocation58_spill] sm:$0xff] }
 0x473   : > { %v4179_v44 = vmul.f32 %v8672_v7, %v3993_v26  ;;  %v4180_v11 = vmul.f32 %v8673_v1, %v3993_v26  ;;  %v8689_v1 = vld [vmem:[#allocation44_spill] sm:$0xff] }
 0x475   : > { %v4494_v38 = vadd.f32 %v4308_v13, %v4179_v44  ;;  %v4495_v12 = vadd.f32 %v4308_v13, %v4180_v11  ;;  %v4338_v2 = vpop.permute.xlu0 %4337  ;;  %v8688_v44 = vld [vmem:[#allocation43_spill] sm:$0xff] }
 0x476   : > { %v4313_v54 = vpop.permute.xlu1 %4312 }
 0x477   : > { %4584 = vst [vmem:[%s5549_s12 + $0xc0] sm:$0xff] %v4494_v38  ;;  %4585 = vst.msk [vmem:[%s5549_s12 + $0xc8] sm:$0xff] %vm2983_vm2, %v4495_v12  ;;  %v4496_v39 = vadd.f32 %v4313_v54, %v4181_v31  ;;  %v4497_v6 = vadd.f32 %v4313_v54, %v4182_v62 }
 0x479   : > { %4586 = vst [vmem:[%s5549_s12 + $0xd0] sm:$0xff] %v4496_v39  ;;  %4587 = vst.msk [vmem:[%s5549_s12 + $0xd8] sm:$0xff] %vm2983_vm2, %v4497_v6  ;;  %v4038_v3 = vpop.permute.xlu0 %4037 }
 0x47a   : > { %v4003_v27 = vpop.permute.xlu1 %4002  ;;  %v4197_v31 = vmul.f32 %v8690_v16, %v4038_v3  ;;  %v4198_v62 = vmul.f32 %v8691_v5, %v4038_v3 }
 0x47b   : > { %v4183_v28 = vmul.f32 %v8676_v17, %v4003_v27  ;;  %v4184_v13 = vmul.f32 %v8677_v33, %v4003_v27  ;;  %v8693_v33 = vld [vmem:[#allocation48_spill] sm:$0xff] }
 0x47d   : > { %v4498_v37 = vadd.f32 %v4318_v59, %v4183_v28  ;;  %v4499_v30 = vadd.f32 %v4318_v59, %v4184_v13  ;;  %v4348_v8 = vpop.permute.xlu0 %4347  ;;  %v8683_v59 = vld [vmem:[#allocation38_spill] sm:$0xff]  ;;  %v8692_v28 = vld [vmem:[#allocation47_spill] sm:$0xff] }
 0x47e   : > { %v4323_v53 = vpop.permute.xlu1 %4322  ;;  %v4190_v9 = vmul.f32 %v8683_v59, %v4018_v42  ;;  %v8699_v59 = vld [vmem:[#allocation54_spill] sm:$0xff] }
 0x47f   : > { %4588 = vst [vmem:[%s5549_s12 + $0xe0] sm:$0xff] %v4498_v37  ;;  %4589 = vst.msk [vmem:[%s5549_s12 + $0xe8] sm:$0xff] %vm2983_vm2, %v4499_v30  ;;  %v4500_v58 = vadd.f32 %v4323_v53, %v4185_v51  ;;  %v4501_v55 = vadd.f32 %v4323_v53, %v4186_v14 }
 0x481   : > { %4590 = vst [vmem:[%s5549_s12 + $0xf0] sm:$0xff] %v4500_v58  ;;  %4591 = vst.msk [vmem:[%s5549_s12 + $0xf8] sm:$0xff] %vm2983_vm2, %v4501_v55  ;;  %v4048_v63 = vpop.permute.xlu0 %4047 }
 0x482   : > { %v4013_v20 = vpop.permute.xlu1 %4012  ;;  %v4201_v51 = vmul.f32 %v8694_v52, %v4048_v63  ;;  %v4202_v14 = vmul.f32 %v8695_v29, %v4048_v63 }
 0x483   : > { %v4187_v50 = vmul.f32 %v8680_v36, %v4013_v20  ;;  %v4188_v32 = vmul.f32 %v8681_v21, %v4013_v20  ;;  %v8697_v21 = vld [vmem:[#allocation52_spill] sm:$0xff] }
 0x485   : > { %v4502_v34 = vadd.f32 %v4328_v22, %v4187_v50  ;;  %v4503_v15 = vadd.f32 %v4328_v22, %v4188_v32  ;;  %v4358_v56 = vpop.permute.xlu0 %4357  ;;  %v8696_v50 = vld [vmem:[#allocation51_spill] sm:$0xff] }
 0x486   : > { %v4333_v35 = vpop.permute.xlu1 %4332 }
 0x487   : > { %4592 = vst [vmem:[%s5549_s12 + $0x100] sm:$0xff] %v4502_v34  ;;  %4593 = vst.msk [vmem:[%s5549_s12 + $0x108] sm:$0xff] %vm2983_vm2, %v4503_v15  ;;  %v4504_v18 = vadd.f32 %v4333_v35, %v4189_v41  ;;  %v4505_v49 = vadd.f32 %v4333_v35, %v4190_v9 }
 0x489   : > { %4594 = vst [vmem:[%s5549_s12 + $0x110] sm:$0xff] %v4504_v18  ;;  %4595 = vst.msk [vmem:[%s5549_s12 + $0x118] sm:$0xff] %vm2983_vm2, %v4505_v49  ;;  %v4058_v47 = vpop.permute.xlu0 %4057 }
 0x48a   : > { %v4023_v60 = vpop.permute.xlu1 %4022  ;;  %v4205_v41 = vmul.f32 %v8698_v19, %v4058_v47  ;;  %v4206_v9 = vmul.f32 %v8699_v59, %v4058_v47  ;;  %v8715_v19 = vld [vmem:[#allocation70_spill] sm:$0xff] }
 0x48b   : > { %v4191_v42 = vmul.f32 %v8684_v43, %v4023_v60  ;;  %v4192_v24 = vmul.f32 %v8685_v0, %v4023_v60  ;;  %v8701_v0 = vld [vmem:[#allocation56_spill] sm:$0xff] }
 0x48d   : > { %v4506_v22 = vadd.f32 %v4338_v2, %v4191_v42  ;;  %v4507_v61 = vadd.f32 %v4338_v2, %v4192_v24  ;;  %v4368_v45 = vpop.permute.xlu0 %4367  ;;  %v8700_v42 = vld [vmem:[#allocation55_spill] sm:$0xff] }
 0x48e   : > { %v4343_v10 = vpop.permute.xlu1 %4342 }
 0x48f   : > { %4596 = vst [vmem:[%s5549_s12 + $0x120] sm:$0xff] %v4506_v22  ;;  %4597 = vst.msk [vmem:[%s5549_s12 + $0x128] sm:$0xff] %vm2983_vm2, %v4507_v61  ;;  %v4508_v46 = vadd.f32 %v4343_v10, %v4193_v48  ;;  %v4509_v57 = vadd.f32 %v4343_v10, %v4194_v23 }
 0x491   : > { %4598 = vst [vmem:[%s5549_s12 + $0x130] sm:$0xff] %v4508_v46  ;;  %4599 = vst.msk [vmem:[%s5549_s12 + $0x138] sm:$0xff] %vm2983_vm2, %v4509_v57  ;;  %v4068_v26 = vpop.permute.xlu0 %4067 }
 0x492   : > { %v4033_v7 = vpop.permute.xlu1 %4032  ;;  %v4209_v48 = vmul.f32 %v8702_v25, %v4068_v26  ;;  %v4210_v23 = vmul.f32 %v8703_v40, %v4068_v26  ;;  %v8705_v26 = vld [vmem:[#allocation60_spill] sm:$0xff] }
 0x493   : > { %v4195_v4 = vmul.f32 %v8688_v44, %v4033_v7  ;;  %v4196_v11 = vmul.f32 %v8689_v1, %v4033_v7  ;;  %v8704_v44 = vld [vmem:[#allocation59_spill] sm:$0xff] }
 0x495   : > { %v4510_v38 = vadd.f32 %v4348_v8, %v4195_v4  ;;  %v4511_v12 = vadd.f32 %v4348_v8, %v4196_v11  ;;  %v4378_v2 = vpop.permute.xlu0 %4377  ;;  %v8706_v11 = vld [vmem:[#allocation61_spill] sm:$0xff] }
 0x496   : > { %v4353_v54 = vpop.permute.xlu1 %4352 }
 0x497   : > { %4600 = vst [vmem:[%s5549_s12 + $0x140] sm:$0xff] %v4510_v38  ;;  %4601 = vst.msk [vmem:[%s5549_s12 + $0x148] sm:$0xff] %vm2983_vm2, %v4511_v12  ;;  %v4512_v39 = vadd.f32 %v4353_v54, %v4197_v31  ;;  %v4513_v6 = vadd.f32 %v4353_v54, %v4198_v62  ;;  %v8707_v31 = vld [vmem:[#allocation62_spill] sm:$0xff] }
 0x499   : > { %4602 = vst [vmem:[%s5549_s12 + $0x150] sm:$0xff] %v4512_v39  ;;  %4603 = vst.msk [vmem:[%s5549_s12 + $0x158] sm:$0xff] %vm2983_vm2, %v4513_v6  ;;  %v4078_v27 = vpop.permute.xlu0 %4077 }
 0x49a   : > { %v4043_v17 = vpop.permute.xlu1 %4042  ;;  %v4213_v16 = vmul.f32 %v8706_v11, %v4078_v27  ;;  %v4214_v5 = vmul.f32 %v8707_v31, %v4078_v27  ;;  %v8709_v27 = vld [vmem:[#allocation64_spill] sm:$0xff]  ;;  %v8723_v11 = vld [vmem:[#allocation78_spill] sm:$0xff] }
 0x49b   : > { %v4199_v3 = vmul.f32 %v8692_v28, %v4043_v17  ;;  %v4200_v13 = vmul.f32 %v8693_v33, %v4043_v17  ;;  %v8708_v17 = vld [vmem:[#allocation63_spill] sm:$0xff] }
 0x49d   : > { %v4514_v37 = vadd.f32 %v4358_v56, %v4199_v3  ;;  %v4515_v30 = vadd.f32 %v4358_v56, %v4200_v13  ;;  %v4388_v8 = vpop.permute.xlu0 %4387  ;;  %v8710_v13 = vld [vmem:[#allocation65_spill] sm:$0xff] }
 0x49e   : > { %v4363_v53 = vpop.permute.xlu1 %4362 }
 0x49f   : > { %4604 = vst [vmem:[%s5549_s12 + $0x160] sm:$0xff] %v4514_v37  ;;  %4605 = vst.msk [vmem:[%s5549_s12 + $0x168] sm:$0xff] %vm2983_vm2, %v4515_v30  ;;  %v4516_v58 = vadd.f32 %v4363_v53, %v4201_v51  ;;  %v4517_v55 = vadd.f32 %v4363_v53, %v4202_v14  ;;  %v8711_v51 = vld [vmem:[#allocation66_spill] sm:$0xff] }
 0x4a1   : > { %4606 = vst [vmem:[%s5549_s12 + $0x170] sm:$0xff] %v4516_v58  ;;  %4607 = vst.msk [vmem:[%s5549_s12 + $0x178] sm:$0xff] %vm2983_vm2, %v4517_v55  ;;  %v4088_v20 = vpop.permute.xlu0 %4087 }
 0x4a2   : > { %v4053_v36 = vpop.permute.xlu1 %4052  ;;  %v4217_v52 = vmul.f32 %v8710_v13, %v4088_v20  ;;  %v4218_v29 = vmul.f32 %v8711_v51, %v4088_v20  ;;  %v8713_v20 = vld [vmem:[#allocation68_spill] sm:$0xff] }
 0x4a3   : > { %v4203_v63 = vmul.f32 %v8696_v50, %v4053_v36  ;;  %v4204_v32 = vmul.f32 %v8697_v21, %v4053_v36  ;;  %v8712_v36 = vld [vmem:[#allocation67_spill] sm:$0xff]  ;;  %v8714_v21 = vld [vmem:[#allocation69_spill] sm:$0xff] }
 0x4a5   : > { %v4518_v34 = vadd.f32 %v4368_v45, %v4203_v63  ;;  %v4519_v15 = vadd.f32 %v4368_v45, %v4204_v32  ;;  %v4398_v56 = vpop.permute.xlu0 %4397 }
 0x4a6   : > { %v4373_v35 = vpop.permute.xlu1 %4372 }
 0x4a7   : > { %4608 = vst [vmem:[%s5549_s12 + $0x180] sm:$0xff] %v4518_v34  ;;  %4609 = vst.msk [vmem:[%s5549_s12 + $0x188] sm:$0xff] %vm2983_vm2, %v4519_v15  ;;  %v4520_v18 = vadd.f32 %v4373_v35, %v4205_v41  ;;  %v4521_v49 = vadd.f32 %v4373_v35, %v4206_v9 }
 0x4a9   : > { %4610 = vst [vmem:[%s5549_s12 + $0x190] sm:$0xff] %v4520_v18  ;;  %4611 = vst.msk [vmem:[%s5549_s12 + $0x198] sm:$0xff] %vm2983_vm2, %v4521_v49  ;;  %v4098_v60 = vpop.permute.xlu0 %4097  ;;  %v8716_v49 = vld [vmem:[#allocation71_spill] sm:$0xff] }
 0x4aa   : > { %v4063_v43 = vpop.permute.xlu1 %4062  ;;  %v4221_v32 = vmul.f32 %v8714_v21, %v4098_v60  ;;  %v4222_v41 = vmul.f32 %v8715_v19, %v4098_v60  ;;  %v8717_v60 = vld [vmem:[#allocation72_spill] sm:$0xff] }
 0x4ab   : > { %v4207_v47 = vmul.f32 %v8700_v42, %v4063_v43  ;;  %v4208_v24 = vmul.f32 %v8701_v0, %v4063_v43 }
 0x4ad   : > { %v4522_v22 = vadd.f32 %v4378_v2, %v4207_v47  ;;  %v4523_v61 = vadd.f32 %v4378_v2, %v4208_v24  ;;  %v4408_v57 = vpop.permute.xlu0 %4407  ;;  %v8718_v47 = vld [vmem:[#allocation73_spill] sm:$0xff]  ;;  %v8719_v24 = vld [vmem:[#allocation74_spill] sm:$0xff] }
 0x4ae   : > { %v4383_v45 = vpop.permute.xlu1 %4382 }
 0x4af   : > { %4612 = vst [vmem:[%s5549_s12 + $0x1a0] sm:$0xff] %v4522_v22  ;;  %4613 = vst.msk [vmem:[%s5549_s12 + $0x1a8] sm:$0xff] %vm2983_vm2, %v4523_v61  ;;  %v4524_v10 = vadd.f32 %v4383_v45, %v4209_v48  ;;  %v4525_v46 = vadd.f32 %v4383_v45, %v4210_v23 }
 0x4b1   : > { %4614 = vst [vmem:[%s5549_s12 + $0x1b0] sm:$0xff] %v4524_v10  ;;  %4615 = vst.msk [vmem:[%s5549_s12 + $0x1b8] sm:$0xff] %vm2983_vm2, %v4525_v46  ;;  %v4108_v12 = vpop.permute.xlu0 %4107  ;;  %v8720_v46 = vld [vmem:[#allocation75_spill] sm:$0xff] }
 0x4b2   : > { %v4073_v7 = vpop.permute.xlu1 %4072  ;;  %v4225_v0 = vmul.f32 %v8718_v47, %v4108_v12  ;;  %v4226_v25 = vmul.f32 %v8719_v24, %v4108_v12 }
 0x4b3   : > { %v4211_v4 = vmul.f32 %v8704_v44, %v4073_v7  ;;  %v4212_v1 = vmul.f32 %v8705_v26, %v4073_v7  ;;  %v8721_v7 = vld [vmem:[#allocation76_spill] sm:$0xff]  ;;  %v8722_v26 = vld [vmem:[#allocation77_spill] sm:$0xff] }
 0x4b5   : > { %v4526_v62 = vadd.f32 %v4388_v8, %v4211_v4  ;;  %v4527_v38 = vadd.f32 %v4388_v8, %v4212_v1  ;;  %v4418_v33 = vpop.permute.xlu0 %4417 }
 0x4b6   : > { %v4393_v2 = vpop.permute.xlu1 %4392 }
 0x4b7   : > { %4616 = vst [vmem:[%s5549_s12 + $0x1c0] sm:$0xff] %v4526_v62  ;;  %4617 = vst.msk [vmem:[%s5549_s12 + $0x1c8] sm:$0xff] %vm2983_vm2, %v4527_v38  ;;  %v4528_v54 = vadd.f32 %v4393_v2, %v4213_v16  ;;  %v4529_v39 = vadd.f32 %v4393_v2, %v4214_v5 }
 0x4b9   : > { %4618 = vst [vmem:[%s5549_s12 + $0x1d0] sm:$0xff] %v4528_v54  ;;  %4619 = vst.msk [vmem:[%s5549_s12 + $0x1d8] sm:$0xff] %vm2983_vm2, %v4529_v39  ;;  %v4118_v58 = vpop.permute.xlu0 %4117  ;;  %v8724_v39 = vld [vmem:[#allocation80_spill] sm:$0xff] }
 0x4ba   : > { %v4083_v6 = vpop.permute.xlu1 %4082  ;;  %v4229_v1 = vmul.f32 %v8722_v26, %v4118_v58  ;;  %v4230_v16 = vmul.f32 %v8723_v11, %v4118_v58 }
 0x4bb   : > { %v4215_v28 = vmul.f32 %v8708_v17, %v4083_v6  ;;  %v4216_v3 = vmul.f32 %v8709_v27, %v4083_v6  ;;  %v8725_v17 = vld [vmem:[#allocation82_spill] sm:$0xff]  ;;  %v8726_v27 = vld [vmem:[#allocation83_spill] sm:$0xff] }
 0x4bd   : > { %v4530_v14 = vadd.f32 %v4398_v56, %v4215_v28  ;;  %v4531_v37 = vadd.f32 %v4398_v56, %v4216_v3  ;;  %v4428_v35 = vpop.permute.xlu0 %4427 }
 0x4be   : > { %v4403_v30 = vpop.permute.xlu1 %4402 }
 0x4bf   : > { %4620 = vst [vmem:[%s5549_s12 + $0x1e0] sm:$0xff] %v4530_v14  ;;  %4621 = vst.msk [vmem:[%s5549_s12 + $0x1e8] sm:$0xff] %vm2983_vm2, %v4531_v37  ;;  %v4532_v8 = vadd.f32 %v4403_v30, %v4217_v52  ;;  %v4533_v53 = vadd.f32 %v4403_v30, %v4218_v29 }
 0x4c1   : > { %4622 = vst [vmem:[%s5549_s12 + $0x1f0] sm:$0xff] %v4532_v8  ;;  %4623 = vst.msk [vmem:[%s5549_s12 + $0x1f8] sm:$0xff] %vm2983_vm2, %v4533_v53  ;;  %v4128_v23 = vpop.permute.xlu0 %4127  ;;  %v8728_v53 = vld [vmem:[#allocation86_spill] sm:$0xff] }
 0x4c2   : > { %v4093_v55 = vpop.permute.xlu1 %4092  ;;  %v4233_v3 = vmul.f32 %v8726_v27, %v4128_v23 }
 0x4c3   : > { %v4219_v50 = vmul.f32 %v8712_v36, %v4093_v55  ;;  %v4220_v63 = vmul.f32 %v8713_v20, %v4093_v55  ;;  %v8729_v55 = vld [vmem:[#allocation87_spill] sm:$0xff] }
 0x4c5   : > { %v4534_v59 = vadd.f32 %v4408_v57, %v4219_v50  ;;  %v4535_v9 = vadd.f32 %v4408_v57, %v4220_v63  ;;  %v4438_v4 = vpop.permute.xlu0 %4437  ;;  %v8730_v50 = vld [vmem:[#allocation88_spill] sm:$0xff]  ;;  %v8731_v63 = vld [vmem:[#allocation89_spill] sm:$0xff] }
 0x4c6   : > { %v4413_v34 = vpop.permute.xlu1 %4412 }
 0x4c7   : > { %4624 = vst [vmem:[%s5549_s12 + $0x200] sm:$0xff] %v4534_v59  ;;  %4625 = vst.msk [vmem:[%s5549_s12 + $0x208] sm:$0xff] %vm2983_vm2, %v4535_v9  ;;  %v4536_v15 = vadd.f32 %v4413_v34, %v4221_v32  ;;  %v4537_v56 = vadd.f32 %v4413_v34, %v4222_v41 }
 0x4c9   : > { %4626 = vst [vmem:[%s5549_s12 + $0x210] sm:$0xff] %v4536_v15  ;;  %4627 = vst.msk [vmem:[%s5549_s12 + $0x218] sm:$0xff] %vm2983_vm2, %v4537_v56  ;;  %v4138_v2 = vpop.permute.xlu0 %4137  ;;  %v8732_v56 = vld [vmem:[#allocation91_spill] sm:$0xff] }
 0x4ca   : > { %v4103_v18 = vpop.permute.xlu1 %4102  ;;  %v4237_v20 = vmul.f32 %v8730_v50, %v4138_v2  ;;  %v4238_v21 = vmul.f32 %v8731_v63, %v4138_v2 }
 0x4cb   : > { %v4223_v43 = vmul.f32 %v8716_v49, %v4103_v18  ;;  %v4224_v42 = vmul.f32 %v8717_v60, %v4103_v18  ;;  %v8733_v18 = vld [vmem:[#allocation92_spill] sm:$0xff] }
 0x4cd   : > { %v4538_v48 = vadd.f32 %v4418_v33, %v4223_v43  ;;  %v4539_v40 = vadd.f32 %v4418_v33, %v4224_v42  ;;  %v8727_v33 = vld [vmem:[#allocation84_spill] sm:$0xff]  ;;  %v4448_v30 = vpop.permute.xlu0 %4447 }
 0x4ce   : > { %v4423_v22 = vpop.permute.xlu1 %4422  ;;  %v4234_v13 = vmul.f32 %v8727_v33, %v4128_v23  ;;  %v8736_v23 = vld [vmem:[#allocation93_spill] sm:$0xff] }
 0x4cf   : > { %4628 = vst [vmem:[%s5549_s12 + $0x220] sm:$0xff] %v4538_v48  ;;  %4629 = vst.msk [vmem:[%s5549_s12 + $0x228] sm:$0xff] %vm2983_vm2, %v4539_v40  ;;  %v4540_v61 = vadd.f32 %v4423_v22, %v4225_v0  ;;  %v4541_v45 = vadd.f32 %v4423_v22, %v4226_v25  ;;  %v8734_v0 = vld [vmem:[#allocation95_spill] sm:$0xff]  ;;  %v8735_v25 = vld [vmem:[#allocation96_spill] sm:$0xff] }
 0x4d1   : > { %4630 = vst [vmem:[%s5549_s12 + $0x230] sm:$0xff] %v4540_v61  ;;  %4631 = vst.msk [vmem:[%s5549_s12 + $0x238] sm:$0xff] %vm2983_vm2, %v4541_v45  ;;  %v4148_v41 = vpop.permute.xlu0 %4147  ;;  %v8737_v61 = vld [vmem:[#allocation94_spill] sm:$0xff] }
 0x4d2   : > { %v4113_v10 = vpop.permute.xlu1 %4112  ;;  %v4241_v22 = vmul.f32 %v8736_v23, %v4148_v41  ;;  %v4242_v45 = vmul.f32 %v8737_v61, %v4148_v41 }
 0x4d3   : > { %v4227_v57 = vmul.f32 %v8720_v46, %v4113_v10  ;;  %v4228_v44 = vmul.f32 %v8721_v7, %v4113_v10 }
 0x4d5   : > { %v4542_v31 = vadd.f32 %v4428_v35, %v4227_v57  ;;  %v4543_v5 = vadd.f32 %v4428_v35, %v4228_v44  ;;  %v4458_v43 = vpop.permute.xlu0 %4457 }
 0x4d6   : > { %v4433_v62 = vpop.permute.xlu1 %4432 }
 0x4d7   : > { %4632 = vst [vmem:[%s5549_s12 + $0x240] sm:$0xff] %v4542_v31  ;;  %4633 = vst.msk [vmem:[%s5549_s12 + $0x248] sm:$0xff] %vm2983_vm2, %v4543_v5  ;;  %v4544_v38 = vadd.f32 %v4433_v62, %v4229_v1  ;;  %v4545_v12 = vadd.f32 %v4433_v62, %v4230_v16 }
 0x4d9   : > { %4634 = vst [vmem:[%s5549_s12 + $0x250] sm:$0xff] %v4544_v38  ;;  %4635 = vst.msk [vmem:[%s5549_s12 + $0x258] sm:$0xff] %vm2983_vm2, %v4545_v12 }
 0x4da   : > { %v4123_v54 = vpop.permute.xlu1 %4122 }
 0x4db   : > { %v4231_v6 = vmul.f32 %v8724_v39, %v4123_v54  ;;  %v4232_v28 = vmul.f32 %v8725_v17, %v4123_v54 }
 0x4dd   : > { %v4546_v52 = vadd.f32 %v4438_v4, %v4231_v6  ;;  %v4547_v51 = vadd.f32 %v4438_v4, %v4232_v28 }
 0x4de   : > { %v4443_v29 = vpop.permute.xlu1 %4442 }
 0x4df   : > { %4636 = vst [vmem:[%s5549_s12 + $0x260] sm:$0xff] %v4546_v52  ;;  %4637 = vst.msk [vmem:[%s5549_s12 + $0x268] sm:$0xff] %vm2983_vm2, %v4547_v51  ;;  %v4548_v14 = vadd.f32 %v4443_v29, %v4233_v3  ;;  %v4549_v37 = vadd.f32 %v4443_v29, %v4234_v13  ;;  %v4468_v40 = vpop.permute.xlu0 %4467 }
 0x4e1   : > { %4638 = vst [vmem:[%s5549_s12 + $0x270] sm:$0xff] %v4548_v14  ;;  %4639 = vst.msk [vmem:[%s5549_s12 + $0x278] sm:$0xff] %vm2983_vm2, %v4549_v37 }
 0x4e2   : > { %v4133_v8 = vpop.permute.xlu1 %4132 }
 0x4e3   : > { %v4235_v58 = vmul.f32 %v8728_v53, %v4133_v8  ;;  %v4236_v36 = vmul.f32 %v8729_v55, %v4133_v8 }
 0x4e5   : > { %v4550_v32 = vadd.f32 %v4448_v30, %v4235_v58  ;;  %v4551_v19 = vadd.f32 %v4448_v30, %v4236_v36 }
 0x4e6   : > { %v4453_v59 = vpop.permute.xlu1 %4452 }
 0x4e7   : > { %4640 = vst [vmem:[%s5549_s12 + $0x280] sm:$0xff] %v4550_v32  ;;  %4641 = vst.msk [vmem:[%s5549_s12 + $0x288] sm:$0xff] %vm2983_vm2, %v4551_v19  ;;  %v4552_v9 = vadd.f32 %v4453_v59, %v4237_v20  ;;  %v4553_v34 = vadd.f32 %v4453_v59, %v4238_v21 }
 0x4e9   : > { %4642 = vst [vmem:[%s5549_s12 + $0x290] sm:$0xff] %v4552_v9  ;;  %4643 = vst.msk [vmem:[%s5549_s12 + $0x298] sm:$0xff] %vm2983_vm2, %v4553_v34 }
 0x4ea   : > { %v4143_v15 = vpop.permute.xlu1 %4142 }
 0x4eb   : > { %v4239_v35 = vmul.f32 %v8732_v56, %v4143_v15  ;;  %v4240_v49 = vmul.f32 %v8733_v18, %v4143_v15 }
 0x4ed   : > { %v4554_v60 = vadd.f32 %v4458_v43, %v4239_v35  ;;  %v4555_v42 = vadd.f32 %v4458_v43, %v4240_v49 }
 0x4ee   : > { %v4153_v47 = vpop.permute.xlu1 %4152 }
 0x4ef   : > { %4644 = vst [vmem:[%s5549_s12 + $0x2a0] sm:$0xff] %v4554_v60  ;;  %4645 = vst.msk [vmem:[%s5549_s12 + $0x2a8] sm:$0xff] %vm2983_vm2, %v4555_v42  ;;  %v4243_v24 = vmul.f32 %v8734_v0, %v4153_v47  ;;  %v4244_v48 = vmul.f32 %v8735_v25, %v4153_v47 }
 0x4f1   : > { %v4558_v10 = vadd.f32 %v4468_v40, %v4243_v24  ;;  %v4559_v46 = vadd.f32 %v4468_v40, %v4244_v48 }
 0x4f2   : > { %v4463_v57 = vpop.permute.xlu1 %4462 }
 0x4f3   : > { %4648 = vst [vmem:[%s5549_s12 + $0x2c0] sm:$0xff] %v4558_v10  ;;  %4649 = vst.msk [vmem:[%s5549_s12 + $0x2c8] sm:$0xff] %vm2983_vm2, %v4559_v46  ;;  %v4556_v7 = vadd.f32 %v4463_v57, %v4241_v22  ;;  %v4557_v44 = vadd.f32 %v4463_v57, %v4242_v45 }
 0x4f5   : > { %4646 = vst [vmem:[%s5549_s12 + $0x2b0] sm:$0xff] %v4556_v7  ;;  %4647 = vst.msk [vmem:[%s5549_s12 + $0x2b8] sm:$0xff] %vm2983_vm2, %v4557_v44 }
 0x4f6 PF: > { %s15_s20 = sadd.s32 1, %s5480_s20   ;;  %s8738_s18 = smov %s5476_s19 }
 0x4f7   : > { %p12_p6 = scmp.ge.s32.totalorder %s15_s20, 4   ;;  %s8739_s19 = smov %s8741_s21 }
 0x4f9   :  { %14 = sbr.rel (!%p12_p6) target bundleno = 2 (0x2), region = 80 }

</bundles_post_ra>
